<compile_context>
chip_gen: v5e
topology: v5e:2x2
jax: 0.10.0
libtpu: 0.0.40
codegen_flags: <defaults>
</compile_context>

<pallas_src>
import functools
import math

import jax
import jax.numpy as jnp
from jax.experimental import pallas as pl
from jax.experimental.pallas import tpu as pltpu

LN_EPS = 1e-5          # torch.nn.LayerNorm default
_NEG_INF = -1e9        # additive mask bias (masked -> ~zero probability)


def _layernorm(x, g, b):
    # x: (rows, D); g/b: (1, D).  Statistics in f32 (v5e has no bf16 VPU/EUP path).
    x = x.astype(jnp.float32)
    mu = jnp.mean(x, axis=-1, keepdims=True)
    var = jnp.mean(jnp.square(x - mu), axis=-1, keepdims=True)
    return (x - mu) * jax.lax.rsqrt(var + LN_EPS) * g + b


def transformer_layer_kernel(
    x_ref, mask_ref, vec_ref,
    wqkv_ref, bqkv_ref, wo_ref,
    w1_ref, b1_ref, w2_ref,
    o_ref,
    *, n_heads: int, apply_final_norm: bool, reshape_heads: bool,
):
    x = x_ref[0].astype(jnp.float32)                      # (S, D) residual stream, f32
    S, D = x.shape
    dk = D // n_heads

    vecs = vec_ref[...]                                   # (8, D) packed small params (1 DMA)
    ln1_g, ln1_b = vecs[0:1], vecs[1:2]
    ln2_g, ln2_b = vecs[2:3], vecs[3:4]
    bo, b2 = vecs[4:5], vecs[5:6]
    lnf_g, lnf_b = vecs[6:7], vecs[7:8]

    # Additive attention bias built in-kernel from the 0/1 bf16 mask (cheap VPU select that
    # hides under MXU slack; avoids shipping a per-layer f32 bias tensor over HBM).
    bias = jnp.where(mask_ref[0] > 0, 0.0, _NEG_INF).astype(jnp.float32)   # (S, S)

    # --- self-attention sublayer (pre-norm) ---
    z = _layernorm(x, ln1_g, ln1_b).astype(jnp.bfloat16)
    # One fused QKV matmul (bf16 in, f32 accumulate); 1/sqrt(dk) already folded into Wq/bq.
    qkv = jnp.dot(z, wqkv_ref[...], preferred_element_type=jnp.float32) + bqkv_ref[...]

    if reshape_heads:
        # Reshape-based head split: a single relayout instead of 3*H slice+stack copies.
        q = qkv[:, :D].astype(jnp.bfloat16).reshape(S, n_heads, dk)
        k = qkv[:, D:2 * D].astype(jnp.bfloat16).reshape(S, n_heads, dk)
        v = qkv[:, 2 * D:].astype(jnp.bfloat16).reshape(S, n_heads, dk)
        s = jnp.einsum('qhd,khd->hqk', q, k, preferred_element_type=jnp.float32)   # (H,S,S)
    else:
        # Conservative fallback with known-good lowering on older Mosaic builds.
        qf, kf, vf = qkv[:, :D], qkv[:, D:2 * D], qkv[:, 2 * D:]
        q = jnp.stack([qf[:, h * dk:(h + 1) * dk] for h in range(n_heads)], 0).astype(jnp.bfloat16)
        k = jnp.stack([kf[:, h * dk:(h + 1) * dk] for h in range(n_heads)], 0).astype(jnp.bfloat16)
        v = jnp.stack([vf[:, h * dk:(h + 1) * dk] for h in range(n_heads)], 0).astype(jnp.bfloat16)
        s = jnp.einsum('hqd,hkd->hqk', q, k, preferred_element_type=jnp.float32)   # (H,S,S)

    s = s + bias[None, :, :]                              # mask bias added once for all heads
    s = s - jnp.max(s, axis=-1, keepdims=True)
    p = jnp.exp(s)                                        # unnormalized probs (entries <= 1)
    # Softmax denominator on the EUP slot; normalization applied AFTER the PV matmul so the
    # elementwise scale touches H*S*dk elements instead of H*S*S.
    inv = pl.reciprocal(jnp.sum(p, axis=-1, keepdims=True), approx=True)   # (H, S, 1)
    pb = p.astype(jnp.bfloat16)

    if reshape_heads:
        ctx = jnp.einsum('hqk,khd->hqd', pb, v, preferred_element_type=jnp.float32)  # (H,S,dk)
        ctx = ctx * inv                                   # normalize after PV
        attn = jnp.swapaxes(ctx, 0, 1).reshape(S, D)      # head merge: one relayout to (S, D)
    else:
        ctx = jnp.einsum('hqk,hkd->hqd', pb, v, preferred_element_type=jnp.float32)  # (H,S,dk)
        ctx = ctx * inv
        attn = jnp.concatenate([ctx[h] for h in range(n_heads)], axis=-1)            # (S, D)

    attn = jnp.dot(attn.astype(jnp.bfloat16), wo_ref[...],
                   preferred_element_type=jnp.float32) + bo
    # TODO(synk): dropout omitted (eval-mode identity).
    x = x + attn

    # --- feed-forward sublayer (pre-norm) ---
    z = _layernorm(x, ln2_g, ln2_b).astype(jnp.bfloat16)
    hid = jnp.dot(z, w1_ref[...], preferred_element_type=jnp.float32) + b1_ref[...]
    hid = jnp.maximum(hid, 0.0).astype(jnp.bfloat16)
    ff = jnp.dot(hid, w2_ref[...], preferred_element_type=jnp.float32) + b2
    x = x + ff

    if apply_final_norm:   # encoder's trailing LayerNorm fused into the last layer's kernel
        x = _layernorm(x, lnf_g, lnf_b)

    o_ref[0] = x.astype(o_ref.dtype)


def _vmem_limit_bytes():
    # Generation-aware scoped-VMEM limit: ~56 MiB on v7x (64 MiB physical), capped at ~110 MiB
    # on v5e/v6e (128 MiB physical).  Conservative fallback if the trace-time query fails.
    try:
        cap = int(pltpu.get_tpu_info().vmem_capacity_bytes)
    except Exception:
        cap = 64 * 1024 * 1024
    return int(max(min(cap - 8 * 1024 * 1024, 110 * 1024 * 1024), 32 * 1024 * 1024))


def _rep_spec(shape, *, single_buffer):
    # Full-array block, same block every grid step (weights / packed params).  With a constant
    # index_map the re-DMA is already skipped; Buffered(1) also drops the second VMEM buffer.
    index_map = lambda b: (0,) * len(shape)
    if single_buffer:
        return pl.BlockSpec(shape, index_map, pipeline_mode=pl.Buffered(1))
    return pl.BlockSpec(shape, index_map)


def _transformer_layer(x, mask_b16, p, n_heads, final_g, final_b, *,
                       reshape_heads, single_buffer_weights):
    B, S, D = x.shape
    d_ff = p["w1"].shape[1]
    apply_final = final_g is not None
    if not apply_final:
        final_g = jnp.ones((1, D), jnp.float32)
        final_b = jnp.zeros((1, D), jnp.float32)

    scale = 1.0 / math.sqrt(D // n_heads)
    # Fuse Q/K/V into one (D, 3D) bf16 weight; fold the softmax scale into Wq/bq before casting.
    wqkv = jnp.concatenate([p["wq"] * scale, p["wk"], p["wv"]], axis=1).astype(jnp.bfloat16)
    bqkv = jnp.concatenate([p["bq"] * scale, p["bk"], p["bv"]], axis=1).astype(jnp.float32)
    wo = p["wo"].astype(jnp.bfloat16)
    w1 = p["w1"].astype(jnp.bfloat16)
    w2 = p["w2"].astype(jnp.bfloat16)
    # All (1, D)-wide vectors packed into a single (8, D) slab: one DMA instead of eight, and it
    # exactly fills the 8-sublane padding granule.
    vecs = jnp.concatenate([p["ln1_g"], p["ln1_b"], p["ln2_g"], p["ln2_b"],
                            p["bo"], p["b2"], final_g, final_b], axis=0).astype(jnp.float32)

    kernel = functools.partial(transformer_layer_kernel, n_heads=n_heads,
                               apply_final_norm=apply_final, reshape_heads=reshape_heads)
    rep = functools.partial(_rep_spec, single_buffer=single_buffer_weights)

    return pl.pallas_call(
        kernel,
        out_shape=jax.ShapeDtypeStruct((B, S, D), x.dtype),
        grid=(B,),
        in_specs=[
            pl.BlockSpec((1, S, D), lambda b: (b, 0, 0)),   # x
            pl.BlockSpec((1, S, S), lambda b: (b, 0, 0)),   # 0/1 mask (bf16)
            rep((8, D)),            # packed LN gammas/betas + bo + b2 + final-norm gamma/beta
            rep((D, 3 * D)),        # Wqkv (bf16, scale folded in)
            rep((1, 3 * D)),        # bqkv
            rep((D, D)),            # Wo
            rep((D, d_ff)),         # W1
            rep((1, d_ff)),         # b1
            rep((d_ff, D)),         # W2
        ],
        out_specs=pl.BlockSpec((1, S, D), lambda b: (b, 0, 0)),
        compiler_params=pltpu.CompilerParams(
            dimension_semantics=("parallel",),              # batch steps split across v7x's 2 TCs
            vmem_limit_bytes=_vmem_limit_bytes()),
    )(x, mask_b16, vecs, wqkv, bqkv, wo, w1, p["b1"], w2)


# Try the optimized configuration first; if this JAX/Mosaic build rejects any of its lowerings
# (reshape-based head relayout or Buffered(1) specs), fall back to a conservative, known-good
# configuration so the kernel always runs.  (Fallback only triggers in eager execution.)
_CONFIGS = (
    dict(reshape_heads=True, single_buffer_weights=True),
    dict(reshape_heads=True, single_buffer_weights=False),
    dict(reshape_heads=False, single_buffer_weights=False),
)
_config_idx = 0


def transformer_layer(x, mask_b16, p, n_heads, final_g=None, final_b=None):
    global _config_idx
    while True:
        try:
            return _transformer_layer(x, mask_b16, p, n_heads, final_g, final_b,
                                      **_CONFIGS[_config_idx])
        except Exception:
            if _config_idx + 1 == len(_CONFIGS):
                raise
            _config_idx += 1


def encoder_forward(x, mask, params, n_heads):
    # Mask stays 0/1 and is shipped as bf16 (half the HBM/VMEM traffic of an f32 bias); the
    # additive -1e9 bias is built inside each kernel.
    mask_b16 = mask.astype(jnp.bfloat16)
    layers = params["layers"]
    n = len(layers)
    for i, lp in enumerate(layers):
        is_last = i == n - 1
        x = transformer_layer(
            x, mask_b16, lp, n_heads,
            final_g=params["norm_g"] if is_last else None,
            final_b=params["norm_b"] if is_last else None,
        )
    return x


def init_params(key, n_layers, d_model, d_ff):
    def dense(k, din, dout):
        return jax.random.normal(k, (din, dout), jnp.float32) * 0.02

    layers = []
    for _ in range(n_layers):
        key, *ks = jax.random.split(key, 7)
        layers.append(dict(
            ln1_g=jnp.ones((1, d_model), jnp.float32),
            ln1_b=jnp.zeros((1, d_model), jnp.float32),
            wq=dense(ks[0], d_model, d_model), bq=jnp.zeros((1, d_model), jnp.float32),
            wk=dense(ks[1], d_model, d_model), bk=jnp.zeros((1, d_model), jnp.float32),
            wv=dense(ks[2], d_model, d_model), bv=jnp.zeros((1, d_model), jnp.float32),
            wo=dense(ks[3], d_model, d_model), bo=jnp.zeros((1, d_model), jnp.float32),
            ln2_g=jnp.ones((1, d_model), jnp.float32),
            ln2_b=jnp.zeros((1, d_model), jnp.float32),
            w1=dense(ks[4], d_model, d_ff), b1=jnp.zeros((1, d_ff), jnp.float32),
            w2=dense(ks[5], d_ff, d_model), b2=jnp.zeros((1, d_model), jnp.float32),
        ))
    return dict(
        layers=layers,
        norm_g=jnp.ones((1, d_model), jnp.float32),
        norm_b=jnp.zeros((1, d_model), jnp.float32),
    )


if __name__ == "__main__":
    # Small but lane-dense shapes: d_model multiple of 128, seq multiple of 8.
    # (dk = D/H = 32 here; the review notes dk >= 128 is preferred when the model permits.)
    B, S, D, H, D_FF, N_LAYERS = 2, 16, 128, 4, 256, 2

    key = jax.random.PRNGKey(0)
    key, kx = jax.random.split(key)
    x = jax.random.normal(kx, (B, S, D), jnp.float32)
    mask = jnp.ones((B, S, S), jnp.float32)   # 1.0 = attend everywhere

    params = init_params(key, N_LAYERS, D, D_FF)

    out = encoder_forward(x, mask, params, n_heads=H)
    out = jax.block_until_ready(out)

    assert out.shape == (B, S, D)
    assert bool(jnp.all(jnp.isfinite(out)))
    print("KERNEL_OK")
</pallas_src>

<mosaic_0001>
module attributes {stable_mosaic.version = 11 : i64} {
  func.func @transformer_layer_kernel(%arg0: i32, %arg1: memref<1x16x128xf32, #tpu.memory_space<vmem>>, %arg2: memref<1x16x16xbf16, #tpu.memory_space<vmem>>, %arg3: memref<8x128xf32, #tpu.memory_space<vmem>>, %arg4: memref<128x384xbf16, #tpu.memory_space<vmem>>, %arg5: memref<1x384xf32, #tpu.memory_space<vmem>>, %arg6: memref<128x128xbf16, #tpu.memory_space<vmem>>, %arg7: memref<128x256xbf16, #tpu.memory_space<vmem>>, %arg8: memref<1x256xf32, #tpu.memory_space<vmem>>, %arg9: memref<256x128xbf16, #tpu.memory_space<vmem>>, %arg10: memref<1x16x128xf32, #tpu.memory_space<vmem>>) attributes {dimension_semantics = [#tpu.dimension_semantics<parallel>], iteration_bounds = array<i64: 2>, scalar_prefetch = 0 : i64, scratch_operands = 0 : i64, tpu.core_type = #tpu.core_type<tc>, window_params = [{transform_indices = @transform_0, window_bounds = array<i64: 1, 16, 128>}, {transform_indices = @transform_1, window_bounds = array<i64: 1, 16, 16>}, {pipeline_mode = #tpu.pipeline_mode<synchronous>, transform_indices = @transform_2, window_bounds = array<i64: 8, 128>}, {pipeline_mode = #tpu.pipeline_mode<synchronous>, transform_indices = @transform_3, window_bounds = array<i64: 128, 384>}, {pipeline_mode = #tpu.pipeline_mode<synchronous>, transform_indices = @transform_4, window_bounds = array<i64: 1, 384>}, {pipeline_mode = #tpu.pipeline_mode<synchronous>, transform_indices = @transform_5, window_bounds = array<i64: 128, 128>}, {pipeline_mode = #tpu.pipeline_mode<synchronous>, transform_indices = @transform_6, window_bounds = array<i64: 128, 256>}, {pipeline_mode = #tpu.pipeline_mode<synchronous>, transform_indices = @transform_7, window_bounds = array<i64: 1, 256>}, {pipeline_mode = #tpu.pipeline_mode<synchronous>, transform_indices = @transform_8, window_bounds = array<i64: 256, 128>}, {transform_indices = @transform_9, window_bounds = array<i64: 1, 16, 128>}]} {
    %c0 = arith.constant 0 : index
    %c0_0 = arith.constant 0 : index
    %c0_1 = arith.constant 0 : index
    %0 = vector.load %arg1[%c0, %c0_0, %c0_1] : memref<1x16x128xf32, #tpu.memory_space<vmem>>, vector<1x16x128xf32>
    %1 = vector.shape_cast %0 : vector<1x16x128xf32> to vector<16x128xf32>
    %c0_2 = arith.constant 0 : index
    %c0_3 = arith.constant 0 : index
    %2 = vector.load %arg3[%c0_2, %c0_3] : memref<8x128xf32, #tpu.memory_space<vmem>>, vector<8x128xf32>
    %3 = vector.extract_strided_slice %2 {offsets = [0, 0], sizes = [1, 128], strides = [1, 1]} : vector<8x128xf32> to vector<1x128xf32>
    %4 = vector.extract_strided_slice %2 {offsets = [1, 0], sizes = [1, 128], strides = [1, 1]} : vector<8x128xf32> to vector<1x128xf32>
    %5 = vector.extract_strided_slice %2 {offsets = [2, 0], sizes = [1, 128], strides = [1, 1]} : vector<8x128xf32> to vector<1x128xf32>
    %6 = vector.extract_strided_slice %2 {offsets = [3, 0], sizes = [1, 128], strides = [1, 1]} : vector<8x128xf32> to vector<1x128xf32>
    %7 = vector.extract_strided_slice %2 {offsets = [4, 0], sizes = [1, 128], strides = [1, 1]} : vector<8x128xf32> to vector<1x128xf32>
    %8 = vector.extract_strided_slice %2 {offsets = [5, 0], sizes = [1, 128], strides = [1, 1]} : vector<8x128xf32> to vector<1x128xf32>
    %c0_4 = arith.constant 0 : index
    %c0_5 = arith.constant 0 : index
    %c0_6 = arith.constant 0 : index
    %9 = vector.load %arg2[%c0_4, %c0_5, %c0_6] : memref<1x16x16xbf16, #tpu.memory_space<vmem>>, vector<1x16x16xbf16>
    %10 = vector.shape_cast %9 : vector<1x16x16xbf16> to vector<16x16xbf16>
    %cst = arith.constant 0.000000e+00 : bf16
    %11 = vector.broadcast %cst : bf16 to vector<16x16xbf16>
    %12 = arith.cmpf ogt, %10, %11 : vector<16x16xbf16>
    %cst_7 = arith.constant 0.000000e+00 : f32
    %cst_8 = arith.constant -1.000000e+09 : f32
    %13 = vector.broadcast %cst_7 : f32 to vector<16x16xf32>
    %14 = vector.broadcast %cst_8 : f32 to vector<16x16xf32>
    %15 = arith.select %12, %13, %14 : vector<16x16xi1>, vector<16x16xf32>
    %cst_9 = arith.constant dense<0.000000e+00> : vector<16xf32>
    %16 = vector.multi_reduction <add>, %1, %cst_9 [1] : vector<16x128xf32> to vector<16xf32>
    %17 = vector.shape_cast %16 : vector<16xf32> to vector<16x1xf32>
    %cst_10 = arith.constant 1.280000e+02 : f32
    %18 = vector.broadcast %cst_10 : f32 to vector<16x1xf32>
    %19 = arith.divf %17, %18 : vector<16x1xf32>
    %20 = vector.broadcast %19 : vector<16x1xf32> to vector<16x128xf32>
    %21 = arith.subf %1, %20 : vector<16x128xf32>
    %22 = arith.mulf %21, %21 : vector<16x128xf32>
    %cst_11 = arith.constant dense<0.000000e+00> : vector<16xf32>
    %23 = vector.multi_reduction <add>, %22, %cst_11 [1] : vector<16x128xf32> to vector<16xf32>
    %24 = vector.shape_cast %23 : vector<16xf32> to vector<16x1xf32>
    %cst_12 = arith.constant 1.280000e+02 : f32
    %25 = vector.broadcast %cst_12 : f32 to vector<16x1xf32>
    %26 = arith.divf %24, %25 : vector<16x1xf32>
    %27 = vector.broadcast %19 : vector<16x1xf32> to vector<16x128xf32>
    %28 = arith.subf %1, %27 : vector<16x128xf32>
    %cst_13 = arith.constant 9.99999974E-6 : f32
    %29 = vector.broadcast %cst_13 : f32 to vector<16x1xf32>
    %30 = arith.addf %26, %29 : vector<16x1xf32>
    %31 = math.rsqrt %30 : vector<16x1xf32>
    %32 = vector.broadcast %31 : vector<16x1xf32> to vector<16x128xf32>
    %33 = arith.mulf %28, %32 : vector<16x128xf32>
    %34 = vector.broadcast %3 : vector<1x128xf32> to vector<16x128xf32>
    %35 = arith.mulf %33, %34 : vector<16x128xf32>
    %36 = vector.broadcast %4 : vector<1x128xf32> to vector<16x128xf32>
    %37 = arith.addf %35, %36 : vector<16x128xf32>
    %38 = arith.truncf %37 : vector<16x128xf32> to vector<16x128xbf16>
    %c0_14 = arith.constant 0 : index
    %c0_15 = arith.constant 0 : index
    %39 = vector.load %arg4[%c0_14, %c0_15] : memref<128x384xbf16, #tpu.memory_space<vmem>>, vector<128x384xbf16>
    %cst_16 = arith.constant dense<0.000000e+00> : vector<16x384xf32>
    %40 = tpu.matmul %38, %39, %cst_16 {dimension_numbers = #tpu.dot_dimension_numbers<[1], [0], [0], [1], [0, 0, 1, 1], [], []>} : vector<16x128xbf16>, vector<128x384xbf16>, vector<16x384xf32> -> vector<16x384xf32>
    %c0_17 = arith.constant 0 : index
    %c0_18 = arith.constant 0 : index
    %41 = vector.load %arg5[%c0_17, %c0_18] : memref<1x384xf32, #tpu.memory_space<vmem>>, vector<1x384xf32>
    %42 = vector.broadcast %41 : vector<1x384xf32> to vector<16x384xf32>
    %43 = arith.addf %40, %42 : vector<16x384xf32>
    %44 = vector.extract_strided_slice %43 {offsets = [0, 0], sizes = [16, 128], strides = [1, 1]} : vector<16x384xf32> to vector<16x128xf32>
    %45 = arith.truncf %44 : vector<16x128xf32> to vector<16x128xbf16>
    %46 = vector.shape_cast %45 : vector<16x128xbf16> to vector<16x4x32xbf16>
    %47 = vector.extract_strided_slice %43 {offsets = [0, 128], sizes = [16, 128], strides = [1, 1]} : vector<16x384xf32> to vector<16x128xf32>
    %48 = arith.truncf %47 : vector<16x128xf32> to vector<16x128xbf16>
    %49 = vector.shape_cast %48 : vector<16x128xbf16> to vector<16x4x32xbf16>
    %50 = vector.extract_strided_slice %43 {offsets = [0, 256], sizes = [16, 128], strides = [1, 1]} : vector<16x384xf32> to vector<16x128xf32>
    %51 = arith.truncf %50 : vector<16x128xf32> to vector<16x128xbf16>
    %52 = vector.shape_cast %51 : vector<16x128xbf16> to vector<16x4x32xbf16>
    "tpu.trace_start"() <{level = 10 : i32, message = "qhd,khd->hqk"}> : () -> ()
    %cst_19 = arith.constant dense<0.000000e+00> : vector<4x16x16xf32>
    %53 = tpu.matmul %46, %49, %cst_19 {dimension_numbers = #tpu.dot_dimension_numbers<[2], [2], [0], [0], [0, 1, 0, 0, 1, 0], [1], [1]>} : vector<16x4x32xbf16>, vector<16x4x32xbf16>, vector<4x16x16xf32> -> vector<4x16x16xf32>
    "tpu.trace_stop"() : () -> ()
    %54 = vector.shape_cast %15 : vector<16x16xf32> to vector<1x16x16xf32>
    %55 = vector.broadcast %54 : vector<1x16x16xf32> to vector<4x16x16xf32>
    %56 = arith.addf %53, %55 : vector<4x16x16xf32>
    %cst_20 = arith.constant dense<0xFF800000> : vector<4x16xf32>
    %57 = vector.multi_reduction <maximumf>, %56, %cst_20 [2] : vector<4x16x16xf32> to vector<4x16xf32>
    %58 = vector.shape_cast %57 : vector<4x16xf32> to vector<4x16x1xf32>
    %59 = vector.broadcast %58 : vector<4x16x1xf32> to vector<4x16x16xf32>
    %60 = arith.subf %56, %59 : vector<4x16x16xf32>
    %61 = math.exp %60 : vector<4x16x16xf32>
    %cst_21 = arith.constant dense<0.000000e+00> : vector<4x16xf32>
    %62 = vector.multi_reduction <add>, %61, %cst_21 [2] : vector<4x16x16xf32> to vector<4x16xf32>
    %63 = vector.shape_cast %62 : vector<4x16xf32> to vector<4x16x1xf32>
    %64 = tpu.reciprocal %63 {approx = true} : vector<4x16x1xf32> -> vector<4x16x1xf32>
    %65 = arith.truncf %61 : vector<4x16x16xf32> to vector<4x16x16xbf16>
    "tpu.trace_start"() <{level = 10 : i32, message = "hqk,khd->hqd"}> : () -> ()
    %cst_22 = arith.constant dense<0.000000e+00> : vector<4x16x32xf32>
    %66 = tpu.matmul %65, %52, %cst_22 {dimension_numbers = #tpu.dot_dimension_numbers<[2], [0], [1], [2], [0, 0, 0, 1, 1, 2], [0], [1]>} : vector<4x16x16xbf16>, vector<16x4x32xbf16>, vector<4x16x32xf32> -> vector<4x16x32xf32>
    "tpu.trace_stop"() : () -> ()
    %67 = vector.broadcast %64 : vector<4x16x1xf32> to vector<4x16x32xf32>
    %68 = arith.mulf %66, %67 : vector<4x16x32xf32>
    %69 = tpu.transpose %68, [1, 0, 2] : vector<4x16x32xf32> -> vector<16x4x32xf32>
    %70 = vector.shape_cast %69 : vector<16x4x32xf32> to vector<16x128xf32>
    %71 = arith.truncf %70 : vector<16x128xf32> to vector<16x128xbf16>
    %c0_23 = arith.constant 0 : index
    %c0_24 = arith.constant 0 : index
    %72 = vector.load %arg6[%c0_23, %c0_24] : memref<128x128xbf16, #tpu.memory_space<vmem>>, vector<128x128xbf16>
    %cst_25 = arith.constant dense<0.000000e+00> : vector<16x128xf32>
    %73 = tpu.matmul %71, %72, %cst_25 {dimension_numbers = #tpu.dot_dimension_numbers<[1], [0], [0], [1], [0, 0, 1, 1], [], []>} : vector<16x128xbf16>, vector<128x128xbf16>, vector<16x128xf32> -> vector<16x128xf32>
    %74 = vector.broadcast %7 : vector<1x128xf32> to vector<16x128xf32>
    %75 = arith.addf %73, %74 : vector<16x128xf32>
    %76 = arith.addf %1, %75 : vector<16x128xf32>
    %cst_26 = arith.constant dense<0.000000e+00> : vector<16xf32>
    %77 = vector.multi_reduction <add>, %76, %cst_26 [1] : vector<16x128xf32> to vector<16xf32>
    %78 = vector.shape_cast %77 : vector<16xf32> to vector<16x1xf32>
    %cst_27 = arith.constant 1.280000e+02 : f32
    %79 = vector.broadcast %cst_27 : f32 to vector<16x1xf32>
    %80 = arith.divf %78, %79 : vector<16x1xf32>
    %81 = vector.broadcast %80 : vector<16x1xf32> to vector<16x128xf32>
    %82 = arith.subf %76, %81 : vector<16x128xf32>
    %83 = arith.mulf %82, %82 : vector<16x128xf32>
    %cst_28 = arith.constant dense<0.000000e+00> : vector<16xf32>
    %84 = vector.multi_reduction <add>, %83, %cst_28 [1] : vector<16x128xf32> to vector<16xf32>
    %85 = vector.shape_cast %84 : vector<16xf32> to vector<16x1xf32>
    %cst_29 = arith.constant 1.280000e+02 : f32
    %86 = vector.broadcast %cst_29 : f32 to vector<16x1xf32>
    %87 = arith.divf %85, %86 : vector<16x1xf32>
    %88 = vector.broadcast %80 : vector<16x1xf32> to vector<16x128xf32>
    %89 = arith.subf %76, %88 : vector<16x128xf32>
    %cst_30 = arith.constant 9.99999974E-6 : f32
    %90 = vector.broadcast %cst_30 : f32 to vector<16x1xf32>
    %91 = arith.addf %87, %90 : vector<16x1xf32>
    %92 = math.rsqrt %91 : vector<16x1xf32>
    %93 = vector.broadcast %92 : vector<16x1xf32> to vector<16x128xf32>
    %94 = arith.mulf %89, %93 : vector<16x128xf32>
    %95 = vector.broadcast %5 : vector<1x128xf32> to vector<16x128xf32>
    %96 = arith.mulf %94, %95 : vector<16x128xf32>
    %97 = vector.broadcast %6 : vector<1x128xf32> to vector<16x128xf32>
    %98 = arith.addf %96, %97 : vector<16x128xf32>
    %99 = arith.truncf %98 : vector<16x128xf32> to vector<16x128xbf16>
    %c0_31 = arith.constant 0 : index
    %c0_32 = arith.constant 0 : index
    %100 = vector.load %arg7[%c0_31, %c0_32] : memref<128x256xbf16, #tpu.memory_space<vmem>>, vector<128x256xbf16>
    %cst_33 = arith.constant dense<0.000000e+00> : vector<16x256xf32>
    %101 = tpu.matmul %99, %100, %cst_33 {dimension_numbers = #tpu.dot_dimension_numbers<[1], [0], [0], [1], [0, 0, 1, 1], [], []>} : vector<16x128xbf16>, vector<128x256xbf16>, vector<16x256xf32> -> vector<16x256xf32>
    %c0_34 = arith.constant 0 : index
    %c0_35 = arith.constant 0 : index
    %102 = vector.load %arg8[%c0_34, %c0_35] : memref<1x256xf32, #tpu.memory_space<vmem>>, vector<1x256xf32>
    %103 = vector.broadcast %102 : vector<1x256xf32> to vector<16x256xf32>
    %104 = arith.addf %101, %103 : vector<16x256xf32>
    %cst_36 = arith.constant 0.000000e+00 : f32
    %105 = vector.broadcast %cst_36 : f32 to vector<16x256xf32>
    %106 = arith.maximumf %104, %105 : vector<16x256xf32>
    %107 = arith.truncf %106 : vector<16x256xf32> to vector<16x256xbf16>
    %c0_37 = arith.constant 0 : index
    %c0_38 = arith.constant 0 : index
    %108 = vector.load %arg9[%c0_37, %c0_38] : memref<256x128xbf16, #tpu.memory_space<vmem>>, vector<256x128xbf16>
    %cst_39 = arith.constant dense<0.000000e+00> : vector<16x128xf32>
    %109 = tpu.matmul %107, %108, %cst_39 {dimension_numbers = #tpu.dot_dimension_numbers<[1], [0], [0], [1], [0, 0, 1, 1], [], []>} : vector<16x256xbf16>, vector<256x128xbf16>, vector<16x128xf32> -> vector<16x128xf32>
    %110 = vector.broadcast %8 : vector<1x128xf32> to vector<16x128xf32>
    %111 = arith.addf %109, %110 : vector<16x128xf32>
    %112 = arith.addf %76, %111 : vector<16x128xf32>
    %c0_40 = arith.constant 0 : index
    %c0_41 = arith.constant 0 : index
    %c0_42 = arith.constant 0 : index
    %113 = vector.load %arg10[%c0_40, %c0_41, %c0_42] : memref<1x16x128xf32, #tpu.memory_space<vmem>>, vector<1x16x128xf32>
    %114 = vector.shape_cast %113 : vector<1x16x128xf32> to vector<16x128xf32>
    %115 = vector.shape_cast %112 : vector<16x128xf32> to vector<1x16x128xf32>
    tpu.vector_store %arg10[%c0_40, %c0_41, %c0_42], %115 {strides = array<i32>} : memref<1x16x128xf32, #tpu.memory_space<vmem>>, vector<1x16x128xf32>,
    return
  }
  func.func @transform_0(%arg0: i32) -> (i32, i32, i32) {
    %c0_i32 = arith.constant 0 : i32
    %c0_i32_0 = arith.constant 0 : i32
    %c0_i32_1 = arith.constant 0 : i32
    return %arg0, %c0_i32, %c0_i32_0 : i32, i32, i32
  }
  func.func @transform_1(%arg0: i32) -> (i32, i32, i32) {
    %c0_i32 = arith.constant 0 : i32
    %c0_i32_0 = arith.constant 0 : i32
    %c0_i32_1 = arith.constant 0 : i32
    return %arg0, %c0_i32, %c0_i32_0 : i32, i32, i32
  }
  func.func @transform_2(%arg0: i32) -> (i32, i32) {
    %c0_i32 = arith.constant 0 : i32
    %c0_i32_0 = arith.constant 0 : i32
    %c0_i32_1 = arith.constant 0 : i32
    return %c0_i32, %c0_i32_0 : i32, i32
  }
  func.func @transform_3(%arg0: i32) -> (i32, i32) {
    %c0_i32 = arith.constant 0 : i32
    %c0_i32_0 = arith.constant 0 : i32
    %c0_i32_1 = arith.constant 0 : i32
    return %c0_i32, %c0_i32_0 : i32, i32
  }
  func.func @transform_4(%arg0: i32) -> (i32, i32) {
    %c0_i32 = arith.constant 0 : i32
    %c0_i32_0 = arith.constant 0 : i32
    %c0_i32_1 = arith.constant 0 : i32
    return %c0_i32, %c0_i32_0 : i32, i32
  }
  func.func @transform_5(%arg0: i32) -> (i32, i32) {
    %c0_i32 = arith.constant 0 : i32
    %c0_i32_0 = arith.constant 0 : i32
    %c0_i32_1 = arith.constant 0 : i32
    return %c0_i32, %c0_i32_0 : i32, i32
  }
  func.func @transform_6(%arg0: i32) -> (i32, i32) {
    %c0_i32 = arith.constant 0 : i32
    %c0_i32_0 = arith.constant 0 : i32
    %c0_i32_1 = arith.constant 0 : i32
    return %c0_i32, %c0_i32_0 : i32, i32
  }
  func.func @transform_7(%arg0: i32) -> (i32, i32) {
    %c0_i32 = arith.constant 0 : i32
    %c0_i32_0 = arith.constant 0 : i32
    %c0_i32_1 = arith.constant 0 : i32
    return %c0_i32, %c0_i32_0 : i32, i32
  }
  func.func @transform_8(%arg0: i32) -> (i32, i32) {
    %c0_i32 = arith.constant 0 : i32
    %c0_i32_0 = arith.constant 0 : i32
    %c0_i32_1 = arith.constant 0 : i32
    return %c0_i32, %c0_i32_0 : i32, i32
  }
  func.func @transform_9(%arg0: i32) -> (i32, i32, i32) {
    %c0_i32 = arith.constant 0 : i32
    %c0_i32_0 = arith.constant 0 : i32
    %c0_i32_1 = arith.constant 0 : i32
    return %arg0, %c0_i32, %c0_i32_0 : i32, i32, i32
  }
}

module attributes {stable_mosaic.version = 11 : i64} {
  func.func @transformer_layer_kernel(%arg0: i32, %arg1: memref<1x16x128xf32, #tpu.memory_space<vmem>>, %arg2: memref<1x16x16xbf16, #tpu.memory_space<vmem>>, %arg3: memref<8x128xf32, #tpu.memory_space<vmem>>, %arg4: memref<128x384xbf16, #tpu.memory_space<vmem>>, %arg5: memref<1x384xf32, #tpu.memory_space<vmem>>, %arg6: memref<128x128xbf16, #tpu.memory_space<vmem>>, %arg7: memref<128x256xbf16, #tpu.memory_space<vmem>>, %arg8: memref<1x256xf32, #tpu.memory_space<vmem>>, %arg9: memref<256x128xbf16, #tpu.memory_space<vmem>>, %arg10: memref<1x16x128xf32, #tpu.memory_space<vmem>>) attributes {dimension_semantics = [#tpu.dimension_semantics<parallel>], iteration_bounds = array<i64: 2>, scalar_prefetch = 0 : i64, scratch_operands = 0 : i64, tpu.core_type = #tpu.core_type<tc>, window_params = [{transform_indices = @transform_0, window_bounds = array<i64: 1, 16, 128>}, {transform_indices = @transform_1, window_bounds = array<i64: 1, 16, 16>}, {pipeline_mode = #tpu.pipeline_mode<synchronous>, transform_indices = @transform_2, window_bounds = array<i64: 8, 128>}, {pipeline_mode = #tpu.pipeline_mode<synchronous>, transform_indices = @transform_3, window_bounds = array<i64: 128, 384>}, {pipeline_mode = #tpu.pipeline_mode<synchronous>, transform_indices = @transform_4, window_bounds = array<i64: 1, 384>}, {pipeline_mode = #tpu.pipeline_mode<synchronous>, transform_indices = @transform_5, window_bounds = array<i64: 128, 128>}, {pipeline_mode = #tpu.pipeline_mode<synchronous>, transform_indices = @transform_6, window_bounds = array<i64: 128, 256>}, {pipeline_mode = #tpu.pipeline_mode<synchronous>, transform_indices = @transform_7, window_bounds = array<i64: 1, 256>}, {pipeline_mode = #tpu.pipeline_mode<synchronous>, transform_indices = @transform_8, window_bounds = array<i64: 256, 128>}, {transform_indices = @transform_9, window_bounds = array<i64: 1, 16, 128>}]} {
    %c0 = arith.constant 0 : index
    %c0_0 = arith.constant 0 : index
    %c0_1 = arith.constant 0 : index
    %0 = vector.load %arg1[%c0, %c0_0, %c0_1] : memref<1x16x128xf32, #tpu.memory_space<vmem>>, vector<1x16x128xf32>
    %1 = vector.shape_cast %0 : vector<1x16x128xf32> to vector<16x128xf32>
    %c0_2 = arith.constant 0 : index
    %c0_3 = arith.constant 0 : index
    %2 = vector.load %arg3[%c0_2, %c0_3] : memref<8x128xf32, #tpu.memory_space<vmem>>, vector<8x128xf32>
    %3 = vector.extract_strided_slice %2 {offsets = [0, 0], sizes = [1, 128], strides = [1, 1]} : vector<8x128xf32> to vector<1x128xf32>
    %4 = vector.extract_strided_slice %2 {offsets = [1, 0], sizes = [1, 128], strides = [1, 1]} : vector<8x128xf32> to vector<1x128xf32>
    %5 = vector.extract_strided_slice %2 {offsets = [2, 0], sizes = [1, 128], strides = [1, 1]} : vector<8x128xf32> to vector<1x128xf32>
    %6 = vector.extract_strided_slice %2 {offsets = [3, 0], sizes = [1, 128], strides = [1, 1]} : vector<8x128xf32> to vector<1x128xf32>
    %7 = vector.extract_strided_slice %2 {offsets = [4, 0], sizes = [1, 128], strides = [1, 1]} : vector<8x128xf32> to vector<1x128xf32>
    %8 = vector.extract_strided_slice %2 {offsets = [5, 0], sizes = [1, 128], strides = [1, 1]} : vector<8x128xf32> to vector<1x128xf32>
    %c0_4 = arith.constant 0 : index
    %c0_5 = arith.constant 0 : index
    %c0_6 = arith.constant 0 : index
    %9 = vector.load %arg2[%c0_4, %c0_5, %c0_6] : memref<1x16x16xbf16, #tpu.memory_space<vmem>>, vector<1x16x16xbf16>
    %10 = vector.shape_cast %9 : vector<1x16x16xbf16> to vector<16x16xbf16>
    %cst = arith.constant 0.000000e+00 : bf16
    %11 = vector.broadcast %cst : bf16 to vector<16x16xbf16>
    %12 = arith.cmpf ogt, %10, %11 : vector<16x16xbf16>
    %cst_7 = arith.constant 0.000000e+00 : f32
    %cst_8 = arith.constant -1.000000e+09 : f32
    %13 = vector.broadcast %cst_7 : f32 to vector<16x16xf32>
    %14 = vector.broadcast %cst_8 : f32 to vector<16x16xf32>
    %15 = arith.select %12, %13, %14 : vector<16x16xi1>, vector<16x16xf32>
    %cst_9 = arith.constant dense<0.000000e+00> : vector<16xf32>
    %16 = vector.multi_reduction <add>, %1, %cst_9 [1] : vector<16x128xf32> to vector<16xf32>
    %17 = vector.shape_cast %16 : vector<16xf32> to vector<16x1xf32>
    %cst_10 = arith.constant 1.280000e+02 : f32
    %18 = vector.broadcast %cst_10 : f32 to vector<16x1xf32>
    %19 = arith.divf %17, %18 : vector<16x1xf32>
    %20 = vector.broadcast %19 : vector<16x1xf32> to vector<16x128xf32>
    %21 = arith.subf %1, %20 : vector<16x128xf32>
    %22 = arith.mulf %21, %21 : vector<16x128xf32>
    %cst_11 = arith.constant dense<0.000000e+00> : vector<16xf32>
    %23 = vector.multi_reduction <add>, %22, %cst_11 [1] : vector<16x128xf32> to vector<16xf32>
    %24 = vector.shape_cast %23 : vector<16xf32> to vector<16x1xf32>
    %cst_12 = arith.constant 1.280000e+02 : f32
    %25 = vector.broadcast %cst_12 : f32 to vector<16x1xf32>
    %26 = arith.divf %24, %25 : vector<16x1xf32>
    %27 = vector.broadcast %19 : vector<16x1xf32> to vector<16x128xf32>
    %28 = arith.subf %1, %27 : vector<16x128xf32>
    %cst_13 = arith.constant 9.99999974E-6 : f32
    %29 = vector.broadcast %cst_13 : f32 to vector<16x1xf32>
    %30 = arith.addf %26, %29 : vector<16x1xf32>
    %31 = math.rsqrt %30 : vector<16x1xf32>
    %32 = vector.broadcast %31 : vector<16x1xf32> to vector<16x128xf32>
    %33 = arith.mulf %28, %32 : vector<16x128xf32>
    %34 = vector.broadcast %3 : vector<1x128xf32> to vector<16x128xf32>
    %35 = arith.mulf %33, %34 : vector<16x128xf32>
    %36 = vector.broadcast %4 : vector<1x128xf32> to vector<16x128xf32>
    %37 = arith.addf %35, %36 : vector<16x128xf32>
    %38 = arith.truncf %37 : vector<16x128xf32> to vector<16x128xbf16>
    %c0_14 = arith.constant 0 : index
    %c0_15 = arith.constant 0 : index
    %39 = vector.load %arg4[%c0_14, %c0_15] : memref<128x384xbf16, #tpu.memory_space<vmem>>, vector<128x384xbf16>
    %cst_16 = arith.constant dense<0.000000e+00> : vector<16x384xf32>
    %40 = tpu.matmul %38, %39, %cst_16 {dimension_numbers = #tpu.dot_dimension_numbers<[1], [0], [0], [1], [0, 0, 1, 1], [], []>} : vector<16x128xbf16>, vector<128x384xbf16>, vector<16x384xf32> -> vector<16x384xf32>
    %c0_17 = arith.constant 0 : index
    %c0_18 = arith.constant 0 : index
    %41 = vector.load %arg5[%c0_17, %c0_18] : memref<1x384xf32, #tpu.memory_space<vmem>>, vector<1x384xf32>
    %42 = vector.broadcast %41 : vector<1x384xf32> to vector<16x384xf32>
    %43 = arith.addf %40, %42 : vector<16x384xf32>
    %44 = vector.extract_strided_slice %43 {offsets = [0, 0], sizes = [16, 128], strides = [1, 1]} : vector<16x384xf32> to vector<16x128xf32>
    %45 = arith.truncf %44 : vector<16x128xf32> to vector<16x128xbf16>
    %46 = vector.shape_cast %45 : vector<16x128xbf16> to vector<16x4x32xbf16>
    %47 = vector.extract_strided_slice %43 {offsets = [0, 128], sizes = [16, 128], strides = [1, 1]} : vector<16x384xf32> to vector<16x128xf32>
    %48 = arith.truncf %47 : vector<16x128xf32> to vector<16x128xbf16>
    %49 = vector.shape_cast %48 : vector<16x128xbf16> to vector<16x4x32xbf16>
    %50 = vector.extract_strided_slice %43 {offsets = [0, 256], sizes = [16, 128], strides = [1, 1]} : vector<16x384xf32> to vector<16x128xf32>
    %51 = arith.truncf %50 : vector<16x128xf32> to vector<16x128xbf16>
    %52 = vector.shape_cast %51 : vector<16x128xbf16> to vector<16x4x32xbf16>
    "tpu.trace_start"() <{level = 10 : i32, message = "qhd,khd->hqk"}> : () -> ()
    %cst_19 = arith.constant dense<0.000000e+00> : vector<4x16x16xf32>
    %53 = tpu.matmul %46, %49, %cst_19 {dimension_numbers = #tpu.dot_dimension_numbers<[2], [2], [0], [0], [0, 1, 0, 0, 1, 0], [1], [1]>} : vector<16x4x32xbf16>, vector<16x4x32xbf16>, vector<4x16x16xf32> -> vector<4x16x16xf32>
    "tpu.trace_stop"() : () -> ()
    %54 = vector.shape_cast %15 : vector<16x16xf32> to vector<1x16x16xf32>
    %55 = vector.broadcast %54 : vector<1x16x16xf32> to vector<4x16x16xf32>
    %56 = arith.addf %53, %55 : vector<4x16x16xf32>
    %cst_20 = arith.constant dense<0xFF800000> : vector<4x16xf32>
    %57 = vector.multi_reduction <maximumf>, %56, %cst_20 [2] : vector<4x16x16xf32> to vector<4x16xf32>
    %58 = vector.shape_cast %57 : vector<4x16xf32> to vector<4x16x1xf32>
    %59 = vector.broadcast %58 : vector<4x16x1xf32> to vector<4x16x16xf32>
    %60 = arith.subf %56, %59 : vector<4x16x16xf32>
    %61 = math.exp %60 : vector<4x16x16xf32>
    %cst_21 = arith.constant dense<0.000000e+00> : vector<4x16xf32>
    %62 = vector.multi_reduction <add>, %61, %cst_21 [2] : vector<4x16x16xf32> to vector<4x16xf32>
    %63 = vector.shape_cast %62 : vector<4x16xf32> to vector<4x16x1xf32>
    %64 = tpu.reciprocal %63 {approx = true} : vector<4x16x1xf32> -> vector<4x16x1xf32>
    %65 = arith.truncf %61 : vector<4x16x16xf32> to vector<4x16x16xbf16>
    "tpu.trace_start"() <{level = 10 : i32, message = "hqk,khd->hqd"}> : () -> ()
    %cst_22 = arith.constant dense<0.000000e+00> : vector<4x16x32xf32>
    %66 = tpu.matmul %65, %52, %cst_22 {dimension_numbers = #tpu.dot_dimension_numbers<[2], [0], [1], [2], [0, 0, 0, 1, 1, 2], [0], [1]>} : vector<4x16x16xbf16>, vector<16x4x32xbf16>, vector<4x16x32xf32> -> vector<4x16x32xf32>
    "tpu.trace_stop"() : () -> ()
    %67 = vector.broadcast %64 : vector<4x16x1xf32> to vector<4x16x32xf32>
    %68 = arith.mulf %66, %67 : vector<4x16x32xf32>
    %69 = tpu.transpose %68, [1, 0, 2] : vector<4x16x32xf32> -> vector<16x4x32xf32>
    %70 = vector.shape_cast %69 : vector<16x4x32xf32> to vector<16x128xf32>
    %71 = arith.truncf %70 : vector<16x128xf32> to vector<16x128xbf16>
    %c0_23 = arith.constant 0 : index
    %c0_24 = arith.constant 0 : index
    %72 = vector.load %arg6[%c0_23, %c0_24] : memref<128x128xbf16, #tpu.memory_space<vmem>>, vector<128x128xbf16>
    %cst_25 = arith.constant dense<0.000000e+00> : vector<16x128xf32>
    %73 = tpu.matmul %71, %72, %cst_25 {dimension_numbers = #tpu.dot_dimension_numbers<[1], [0], [0], [1], [0, 0, 1, 1], [], []>} : vector<16x128xbf16>, vector<128x128xbf16>, vector<16x128xf32> -> vector<16x128xf32>
    %74 = vector.broadcast %7 : vector<1x128xf32> to vector<16x128xf32>
    %75 = arith.addf %73, %74 : vector<16x128xf32>
    %76 = arith.addf %1, %75 : vector<16x128xf32>
    %cst_26 = arith.constant dense<0.000000e+00> : vector<16xf32>
    %77 = vector.multi_reduction <add>, %76, %cst_26 [1] : vector<16x128xf32> to vector<16xf32>
    %78 = vector.shape_cast %77 : vector<16xf32> to vector<16x1xf32>
    %cst_27 = arith.constant 1.280000e+02 : f32
    %79 = vector.broadcast %cst_27 : f32 to vector<16x1xf32>
    %80 = arith.divf %78, %79 : vector<16x1xf32>
    %81 = vector.broadcast %80 : vector<16x1xf32> to vector<16x128xf32>
    %82 = arith.subf %76, %81 : vector<16x128xf32>
    %83 = arith.mulf %82, %82 : vector<16x128xf32>
    %cst_28 = arith.constant dense<0.000000e+00> : vector<16xf32>
    %84 = vector.multi_reduction <add>, %83, %cst_28 [1] : vector<16x128xf32> to vector<16xf32>
    %85 = vector.shape_cast %84 : vector<16xf32> to vector<16x1xf32>
    %cst_29 = arith.constant 1.280000e+02 : f32
    %86 = vector.broadcast %cst_29 : f32 to vector<16x1xf32>
    %87 = arith.divf %85, %86 : vector<16x1xf32>
    %88 = vector.broadcast %80 : vector<16x1xf32> to vector<16x128xf32>
    %89 = arith.subf %76, %88 : vector<16x128xf32>
    %cst_30 = arith.constant 9.99999974E-6 : f32
    %90 = vector.broadcast %cst_30 : f32 to vector<16x1xf32>
    %91 = arith.addf %87, %90 : vector<16x1xf32>
    %92 = math.rsqrt %91 : vector<16x1xf32>
    %93 = vector.broadcast %92 : vector<16x1xf32> to vector<16x128xf32>
    %94 = arith.mulf %89, %93 : vector<16x128xf32>
    %95 = vector.broadcast %5 : vector<1x128xf32> to vector<16x128xf32>
    %96 = arith.mulf %94, %95 : vector<16x128xf32>
    %97 = vector.broadcast %6 : vector<1x128xf32> to vector<16x128xf32>
    %98 = arith.addf %96, %97 : vector<16x128xf32>
    %99 = arith.truncf %98 : vector<16x128xf32> to vector<16x128xbf16>
    %c0_31 = arith.constant 0 : index
    %c0_32 = arith.constant 0 : index
    %100 = vector.load %arg7[%c0_31, %c0_32] : memref<128x256xbf16, #tpu.memory_space<vmem>>, vector<128x256xbf16>
    %cst_33 = arith.constant dense<0.000000e+00> : vector<16x256xf32>
    %101 = tpu.matmul %99, %100, %cst_33 {dimension_numbers = #tpu.dot_dimension_numbers<[1], [0], [0], [1], [0, 0, 1, 1], [], []>} : vector<16x128xbf16>, vector<128x256xbf16>, vector<16x256xf32> -> vector<16x256xf32>
    %c0_34 = arith.constant 0 : index
    %c0_35 = arith.constant 0 : index
    %102 = vector.load %arg8[%c0_34, %c0_35] : memref<1x256xf32, #tpu.memory_space<vmem>>, vector<1x256xf32>
    %103 = vector.broadcast %102 : vector<1x256xf32> to vector<16x256xf32>
    %104 = arith.addf %101, %103 : vector<16x256xf32>
    %cst_36 = arith.constant 0.000000e+00 : f32
    %105 = vector.broadcast %cst_36 : f32 to vector<16x256xf32>
    %106 = arith.maximumf %104, %105 : vector<16x256xf32>
    %107 = arith.truncf %106 : vector<16x256xf32> to vector<16x256xbf16>
    %c0_37 = arith.constant 0 : index
    %c0_38 = arith.constant 0 : index
    %108 = vector.load %arg9[%c0_37, %c0_38] : memref<256x128xbf16, #tpu.memory_space<vmem>>, vector<256x128xbf16>
    %cst_39 = arith.constant dense<0.000000e+00> : vector<16x128xf32>
    %109 = tpu.matmul %107, %108, %cst_39 {dimension_numbers = #tpu.dot_dimension_numbers<[1], [0], [0], [1], [0, 0, 1, 1], [], []>} : vector<16x256xbf16>, vector<256x128xbf16>, vector<16x128xf32> -> vector<16x128xf32>
    %110 = vector.broadcast %8 : vector<1x128xf32> to vector<16x128xf32>
    %111 = arith.addf %109, %110 : vector<16x128xf32>
    %112 = arith.addf %76, %111 : vector<16x128xf32>
    %c0_40 = arith.constant 0 : index
    %c0_41 = arith.constant 0 : index
    %c0_42 = arith.constant 0 : index
    %113 = vector.load %arg10[%c0_40, %c0_41, %c0_42] : memref<1x16x128xf32, #tpu.memory_space<vmem>>, vector<1x16x128xf32>
    %114 = vector.shape_cast %113 : vector<1x16x128xf32> to vector<16x128xf32>
    %115 = vector.shape_cast %112 : vector<16x128xf32> to vector<1x16x128xf32>
    tpu.vector_store %arg10[%c0_40, %c0_41, %c0_42], %115 {strides = array<i32>} : memref<1x16x128xf32, #tpu.memory_space<vmem>>, vector<1x16x128xf32>,
    return
  }
  func.func @transform_0(%arg0: i32) -> (i32, i32, i32) {
    %c0_i32 = arith.constant 0 : i32
    %c0_i32_0 = arith.constant 0 : i32
    %c0_i32_1 = arith.constant 0 : i32
    return %arg0, %c0_i32, %c0_i32_0 : i32, i32, i32
  }
  func.func @transform_1(%arg0: i32) -> (i32, i32, i32) {
    %c0_i32 = arith.constant 0 : i32
    %c0_i32_0 = arith.constant 0 : i32
    %c0_i32_1 = arith.constant 0 : i32
    return %arg0, %c0_i32, %c0_i32_0 : i32, i32, i32
  }
  func.func @transform_2(%arg0: i32) -> (i32, i32) {
    %c0_i32 = arith.constant 0 : i32
    %c0_i32_0 = arith.constant 0 : i32
    %c0_i32_1 = arith.constant 0 : i32
    return %c0_i32, %c0_i32_0 : i32, i32
  }
  func.func @transform_3(%arg0: i32) -> (i32, i32) {
    %c0_i32 = arith.constant 0 : i32
    %c0_i32_0 = arith.constant 0 : i32
    %c0_i32_1 = arith.constant 0 : i32
    return %c0_i32, %c0_i32_0 : i32, i32
  }
  func.func @transform_4(%arg0: i32) -> (i32, i32) {
    %c0_i32 = arith.constant 0 : i32
    %c0_i32_0 = arith.constant 0 : i32
    %c0_i32_1 = arith.constant 0 : i32
    return %c0_i32, %c0_i32_0 : i32, i32
  }
  func.func @transform_5(%arg0: i32) -> (i32, i32) {
    %c0_i32 = arith.constant 0 : i32
    %c0_i32_0 = arith.constant 0 : i32
    %c0_i32_1 = arith.constant 0 : i32
    return %c0_i32, %c0_i32_0 : i32, i32
  }
  func.func @transform_6(%arg0: i32) -> (i32, i32) {
    %c0_i32 = arith.constant 0 : i32
    %c0_i32_0 = arith.constant 0 : i32
    %c0_i32_1 = arith.constant 0 : i32
    return %c0_i32, %c0_i32_0 : i32, i32
  }
  func.func @transform_7(%arg0: i32) -> (i32, i32) {
    %c0_i32 = arith.constant 0 : i32
    %c0_i32_0 = arith.constant 0 : i32
    %c0_i32_1 = arith.constant 0 : i32
    return %c0_i32, %c0_i32_0 : i32, i32
  }
  func.func @transform_8(%arg0: i32) -> (i32, i32) {
    %c0_i32 = arith.constant 0 : i32
    %c0_i32_0 = arith.constant 0 : i32
    %c0_i32_1 = arith.constant 0 : i32
    return %c0_i32, %c0_i32_0 : i32, i32
  }
  func.func @transform_9(%arg0: i32) -> (i32, i32, i32) {
    %c0_i32 = arith.constant 0 : i32
    %c0_i32_0 = arith.constant 0 : i32
    %c0_i32_1 = arith.constant 0 : i32
    return %arg0, %c0_i32, %c0_i32_0 : i32, i32, i32
  }
}

module attributes {stable_mosaic.version = 11 : i64} {
  func.func @transformer_layer_kernel(%arg0: i32, %arg1: memref<1x16x128xf32, #tpu.memory_space<vmem>>, %arg2: memref<1x16x16xbf16, #tpu.memory_space<vmem>>, %arg3: memref<8x128xf32, #tpu.memory_space<vmem>>, %arg4: memref<128x384xbf16, #tpu.memory_space<vmem>>, %arg5: memref<1x384xf32, #tpu.memory_space<vmem>>, %arg6: memref<128x128xbf16, #tpu.memory_space<vmem>>, %arg7: memref<128x256xbf16, #tpu.memory_space<vmem>>, %arg8: memref<1x256xf32, #tpu.memory_space<vmem>>, %arg9: memref<256x128xbf16, #tpu.memory_space<vmem>>, %arg10: memref<1x16x128xf32, #tpu.memory_space<vmem>>) attributes {dimension_semantics = [#tpu.dimension_semantics<parallel>], iteration_bounds = array<i64: 2>, scalar_prefetch = 0 : i64, scratch_operands = 0 : i64, tpu.core_type = #tpu.core_type<tc>, window_params = [{transform_indices = @transform_0, window_bounds = array<i64: 1, 16, 128>}, {transform_indices = @transform_1, window_bounds = array<i64: 1, 16, 16>}, {pipeline_mode = #tpu.pipeline_mode<synchronous>, transform_indices = @transform_2, window_bounds = array<i64: 8, 128>}, {pipeline_mode = #tpu.pipeline_mode<synchronous>, transform_indices = @transform_3, window_bounds = array<i64: 128, 384>}, {pipeline_mode = #tpu.pipeline_mode<synchronous>, transform_indices = @transform_4, window_bounds = array<i64: 1, 384>}, {pipeline_mode = #tpu.pipeline_mode<synchronous>, transform_indices = @transform_5, window_bounds = array<i64: 128, 128>}, {pipeline_mode = #tpu.pipeline_mode<synchronous>, transform_indices = @transform_6, window_bounds = array<i64: 128, 256>}, {pipeline_mode = #tpu.pipeline_mode<synchronous>, transform_indices = @transform_7, window_bounds = array<i64: 1, 256>}, {pipeline_mode = #tpu.pipeline_mode<synchronous>, transform_indices = @transform_8, window_bounds = array<i64: 256, 128>}, {transform_indices = @transform_9, window_bounds = array<i64: 1, 16, 128>}]} {
    %c0 = arith.constant 0 : index
    %c0_0 = arith.constant 0 : index
    %c0_1 = arith.constant 0 : index
    %0 = vector.load %arg1[%c0, %c0_0, %c0_1] : memref<1x16x128xf32, #tpu.memory_space<vmem>>, vector<1x16x128xf32>
    %1 = vector.shape_cast %0 : vector<1x16x128xf32> to vector<16x128xf32>
    %c0_2 = arith.constant 0 : index
    %c0_3 = arith.constant 0 : index
    %2 = vector.load %arg3[%c0_2, %c0_3] : memref<8x128xf32, #tpu.memory_space<vmem>>, vector<8x128xf32>
    %3 = vector.extract_strided_slice %2 {offsets = [0, 0], sizes = [1, 128], strides = [1, 1]} : vector<8x128xf32> to vector<1x128xf32>
    %4 = vector.extract_strided_slice %2 {offsets = [1, 0], sizes = [1, 128], strides = [1, 1]} : vector<8x128xf32> to vector<1x128xf32>
    %5 = vector.extract_strided_slice %2 {offsets = [2, 0], sizes = [1, 128], strides = [1, 1]} : vector<8x128xf32> to vector<1x128xf32>
    %6 = vector.extract_strided_slice %2 {offsets = [3, 0], sizes = [1, 128], strides = [1, 1]} : vector<8x128xf32> to vector<1x128xf32>
    %7 = vector.extract_strided_slice %2 {offsets = [4, 0], sizes = [1, 128], strides = [1, 1]} : vector<8x128xf32> to vector<1x128xf32>
    %8 = vector.extract_strided_slice %2 {offsets = [5, 0], sizes = [1, 128], strides = [1, 1]} : vector<8x128xf32> to vector<1x128xf32>
    %c0_4 = arith.constant 0 : index
    %c0_5 = arith.constant 0 : index
    %c0_6 = arith.constant 0 : index
    %9 = vector.load %arg2[%c0_4, %c0_5, %c0_6] : memref<1x16x16xbf16, #tpu.memory_space<vmem>>, vector<1x16x16xbf16>
    %10 = vector.shape_cast %9 : vector<1x16x16xbf16> to vector<16x16xbf16>
    %cst = arith.constant 0.000000e+00 : bf16
    %11 = vector.broadcast %cst : bf16 to vector<16x16xbf16>
    %12 = arith.cmpf ogt, %10, %11 : vector<16x16xbf16>
    %cst_7 = arith.constant 0.000000e+00 : f32
    %cst_8 = arith.constant -1.000000e+09 : f32
    %13 = vector.broadcast %cst_7 : f32 to vector<16x16xf32>
    %14 = vector.broadcast %cst_8 : f32 to vector<16x16xf32>
    %15 = arith.select %12, %13, %14 : vector<16x16xi1>, vector<16x16xf32>
    %cst_9 = arith.constant dense<0.000000e+00> : vector<16xf32>
    %16 = vector.multi_reduction <add>, %1, %cst_9 [1] : vector<16x128xf32> to vector<16xf32>
    %17 = vector.shape_cast %16 : vector<16xf32> to vector<16x1xf32>
    %cst_10 = arith.constant 1.280000e+02 : f32
    %18 = vector.broadcast %cst_10 : f32 to vector<16x1xf32>
    %19 = arith.divf %17, %18 : vector<16x1xf32>
    %20 = vector.broadcast %19 : vector<16x1xf32> to vector<16x128xf32>
    %21 = arith.subf %1, %20 : vector<16x128xf32>
    %22 = arith.mulf %21, %21 : vector<16x128xf32>
    %cst_11 = arith.constant dense<0.000000e+00> : vector<16xf32>
    %23 = vector.multi_reduction <add>, %22, %cst_11 [1] : vector<16x128xf32> to vector<16xf32>
    %24 = vector.shape_cast %23 : vector<16xf32> to vector<16x1xf32>
    %cst_12 = arith.constant 1.280000e+02 : f32
    %25 = vector.broadcast %cst_12 : f32 to vector<16x1xf32>
    %26 = arith.divf %24, %25 : vector<16x1xf32>
    %27 = vector.broadcast %19 : vector<16x1xf32> to vector<16x128xf32>
    %28 = arith.subf %1, %27 : vector<16x128xf32>
    %cst_13 = arith.constant 9.99999974E-6 : f32
    %29 = vector.broadcast %cst_13 : f32 to vector<16x1xf32>
    %30 = arith.addf %26, %29 : vector<16x1xf32>
    %31 = math.rsqrt %30 : vector<16x1xf32>
    %32 = vector.broadcast %31 : vector<16x1xf32> to vector<16x128xf32>
    %33 = arith.mulf %28, %32 : vector<16x128xf32>
    %34 = vector.broadcast %3 : vector<1x128xf32> to vector<16x128xf32>
    %35 = arith.mulf %33, %34 : vector<16x128xf32>
    %36 = vector.broadcast %4 : vector<1x128xf32> to vector<16x128xf32>
    %37 = arith.addf %35, %36 : vector<16x128xf32>
    %38 = arith.truncf %37 : vector<16x128xf32> to vector<16x128xbf16>
    %c0_14 = arith.constant 0 : index
    %c0_15 = arith.constant 0 : index
    %39 = vector.load %arg4[%c0_14, %c0_15] : memref<128x384xbf16, #tpu.memory_space<vmem>>, vector<128x384xbf16>
    %cst_16 = arith.constant dense<0.000000e+00> : vector<16x384xf32>
    %40 = tpu.matmul %38, %39, %cst_16 {dimension_numbers = #tpu.dot_dimension_numbers<[1], [0], [0], [1], [0, 0, 1, 1], [], []>} : vector<16x128xbf16>, vector<128x384xbf16>, vector<16x384xf32> -> vector<16x384xf32>
    %c0_17 = arith.constant 0 : index
    %c0_18 = arith.constant 0 : index
    %41 = vector.load %arg5[%c0_17, %c0_18] : memref<1x384xf32, #tpu.memory_space<vmem>>, vector<1x384xf32>
    %42 = vector.broadcast %41 : vector<1x384xf32> to vector<16x384xf32>
    %43 = arith.addf %40, %42 : vector<16x384xf32>
    %44 = vector.extract_strided_slice %43 {offsets = [0, 0], sizes = [16, 128], strides = [1, 1]} : vector<16x384xf32> to vector<16x128xf32>
    %45 = vector.extract_strided_slice %43 {offsets = [0, 128], sizes = [16, 128], strides = [1, 1]} : vector<16x384xf32> to vector<16x128xf32>
    %46 = vector.extract_strided_slice %43 {offsets = [0, 256], sizes = [16, 128], strides = [1, 1]} : vector<16x384xf32> to vector<16x128xf32>
    %47 = vector.extract_strided_slice %44 {offsets = [0, 0], sizes = [16, 32], strides = [1, 1]} : vector<16x128xf32> to vector<16x32xf32>
    %48 = vector.extract_strided_slice %44 {offsets = [0, 32], sizes = [16, 32], strides = [1, 1]} : vector<16x128xf32> to vector<16x32xf32>
    %49 = vector.extract_strided_slice %44 {offsets = [0, 64], sizes = [16, 32], strides = [1, 1]} : vector<16x128xf32> to vector<16x32xf32>
    %50 = vector.extract_strided_slice %44 {offsets = [0, 96], sizes = [16, 32], strides = [1, 1]} : vector<16x128xf32> to vector<16x32xf32>
    %51 = vector.shape_cast %47 : vector<16x32xf32> to vector<1x16x32xf32>
    %52 = vector.shape_cast %48 : vector<16x32xf32> to vector<1x16x32xf32>
    %53 = vector.shape_cast %49 : vector<16x32xf32> to vector<1x16x32xf32>
    %54 = vector.shape_cast %50 : vector<16x32xf32> to vector<1x16x32xf32>
    %55 = tpu.concatenate %51, %52, %53, %54 in 0 : vector<1x16x32xf32>, vector<1x16x32xf32>, vector<1x16x32xf32>, vector<1x16x32xf32> -> vector<4x16x32xf32>
    %56 = arith.truncf %55 : vector<4x16x32xf32> to vector<4x16x32xbf16>
    %57 = vector.extract_strided_slice %45 {offsets = [0, 0], sizes = [16, 32], strides = [1, 1]} : vector<16x128xf32> to vector<16x32xf32>
    %58 = vector.extract_strided_slice %45 {offsets = [0, 32], sizes = [16, 32], strides = [1, 1]} : vector<16x128xf32> to vector<16x32xf32>
    %59 = vector.extract_strided_slice %45 {offsets = [0, 64], sizes = [16, 32], strides = [1, 1]} : vector<16x128xf32> to vector<16x32xf32>
    %60 = vector.extract_strided_slice %45 {offsets = [0, 96], sizes = [16, 32], strides = [1, 1]} : vector<16x128xf32> to vector<16x32xf32>
    %61 = vector.shape_cast %57 : vector<16x32xf32> to vector<1x16x32xf32>
    %62 = vector.shape_cast %58 : vector<16x32xf32> to vector<1x16x32xf32>
    %63 = vector.shape_cast %59 : vector<16x32xf32> to vector<1x16x32xf32>
    %64 = vector.shape_cast %60 : vector<16x32xf32> to vector<1x16x32xf32>
    %65 = tpu.concatenate %61, %62, %63, %64 in 0 : vector<1x16x32xf32>, vector<1x16x32xf32>, vector<1x16x32xf32>, vector<1x16x32xf32> -> vector<4x16x32xf32>
    %66 = arith.truncf %65 : vector<4x16x32xf32> to vector<4x16x32xbf16>
    %67 = vector.extract_strided_slice %46 {offsets = [0, 0], sizes = [16, 32], strides = [1, 1]} : vector<16x128xf32> to vector<16x32xf32>
    %68 = vector.extract_strided_slice %46 {offsets = [0, 32], sizes = [16, 32], strides = [1, 1]} : vector<16x128xf32> to vector<16x32xf32>
    %69 = vector.extract_strided_slice %46 {offsets = [0, 64], sizes = [16, 32], strides = [1, 1]} : vector<16x128xf32> to vector<16x32xf32>
    %70 = vector.extract_strided_slice %46 {offsets = [0, 96], sizes = [16, 32], strides = [1, 1]} : vector<16x128xf32> to vector<16x32xf32>
    %71 = vector.shape_cast %67 : vector<16x32xf32> to vector<1x16x32xf32>
    %72 = vector.shape_cast %68 : vector<16x32xf32> to vector<1x16x32xf32>
    %73 = vector.shape_cast %69 : vector<16x32xf32> to vector<1x16x32xf32>
    %74 = vector.shape_cast %70 : vector<16x32xf32> to vector<1x16x32xf32>
    %75 = tpu.concatenate %71, %72, %73, %74 in 0 : vector<1x16x32xf32>, vector<1x16x32xf32>, vector<1x16x32xf32>, vector<1x16x32xf32> -> vector<4x16x32xf32>
    %76 = arith.truncf %75 : vector<4x16x32xf32> to vector<4x16x32xbf16>
    "tpu.trace_start"() <{level = 10 : i32, message = "hqd,hkd->hqk"}> : () -> ()
    %cst_19 = arith.constant dense<0.000000e+00> : vector<4x16x16xf32>
    %77 = tpu.matmul %56, %66, %cst_19 {dimension_numbers = #tpu.dot_dimension_numbers<[2], [2], [1], [1], [0, 0, 0, 1, 1, 1], [0], [0]>} : vector<4x16x32xbf16>, vector<4x16x32xbf16>, vector<4x16x16xf32> -> vector<4x16x16xf32>
    "tpu.trace_stop"() : () -> ()
    %78 = vector.shape_cast %15 : vector<16x16xf32> to vector<1x16x16xf32>
    %79 = vector.broadcast %78 : vector<1x16x16xf32> to vector<4x16x16xf32>
    %80 = arith.addf %77, %79 : vector<4x16x16xf32>
    %cst_20 = arith.constant dense<0xFF800000> : vector<4x16xf32>
    %81 = vector.multi_reduction <maximumf>, %80, %cst_20 [2] : vector<4x16x16xf32> to vector<4x16xf32>
    %82 = vector.shape_cast %81 : vector<4x16xf32> to vector<4x16x1xf32>
    %83 = vector.broadcast %82 : vector<4x16x1xf32> to vector<4x16x16xf32>
    %84 = arith.subf %80, %83 : vector<4x16x16xf32>
    %85 = math.exp %84 : vector<4x16x16xf32>
    %cst_21 = arith.constant dense<0.000000e+00> : vector<4x16xf32>
    %86 = vector.multi_reduction <add>, %85, %cst_21 [2] : vector<4x16x16xf32> to vector<4x16xf32>
    %87 = vector.shape_cast %86 : vector<4x16xf32> to vector<4x16x1xf32>
    %88 = tpu.reciprocal %87 {approx = true} : vector<4x16x1xf32> -> vector<4x16x1xf32>
    %89 = arith.truncf %85 : vector<4x16x16xf32> to vector<4x16x16xbf16>
    "tpu.trace_start"() <{level = 10 : i32, message = "hqk,hkd->hqd"}> : () -> ()
    %cst_22 = arith.constant dense<0.000000e+00> : vector<4x16x32xf32>
    %90 = tpu.matmul %89, %76, %cst_22 {dimension_numbers = #tpu.dot_dimension_numbers<[2], [1], [1], [2], [0, 0, 0, 1, 1, 2], [0], [0]>} : vector<4x16x16xbf16>, vector<4x16x32xbf16>, vector<4x16x32xf32> -> vector<4x16x32xf32>
    "tpu.trace_stop"() : () -> ()
    %91 = vector.broadcast %88 : vector<4x16x1xf32> to vector<4x16x32xf32>
    %92 = arith.mulf %90, %91 : vector<4x16x32xf32>
    %93 = vector.extract_strided_slice %92 {offsets = [0, 0, 0], sizes = [1, 16, 32], strides = [1, 1, 1]} : vector<4x16x32xf32> to vector<1x16x32xf32>
    %94 = vector.shape_cast %93 : vector<1x16x32xf32> to vector<16x32xf32>
    %95 = vector.extract_strided_slice %92 {offsets = [1, 0, 0], sizes = [1, 16, 32], strides = [1, 1, 1]} : vector<4x16x32xf32> to vector<1x16x32xf32>
    %96 = vector.shape_cast %95 : vector<1x16x32xf32> to vector<16x32xf32>
    %97 = vector.extract_strided_slice %92 {offsets = [2, 0, 0], sizes = [1, 16, 32], strides = [1, 1, 1]} : vector<4x16x32xf32> to vector<1x16x32xf32>
    %98 = vector.shape_cast %97 : vector<1x16x32xf32> to vector<16x32xf32>
    %99 = vector.extract_strided_slice %92 {offsets = [3, 0, 0], sizes = [1, 16, 32], strides = [1, 1, 1]} : vector<4x16x32xf32> to vector<1x16x32xf32>
    %100 = vector.shape_cast %99 : vector<1x16x32xf32> to vector<16x32xf32>
    %101 = tpu.concatenate %94, %96, %98, %100 in 1 : vector<16x32xf32>, vector<16x32xf32>, vector<16x32xf32>, vector<16x32xf32> -> vector<16x128xf32>
    %102 = arith.truncf %101 : vector<16x128xf32> to vector<16x128xbf16>
    %c0_23 = arith.constant 0 : index
    %c0_24 = arith.constant 0 : index
    %103 = vector.load %arg6[%c0_23, %c0_24] : memref<128x128xbf16, #tpu.memory_space<vmem>>, vector<128x128xbf16>
    %cst_25 = arith.constant dense<0.000000e+00> : vector<16x128xf32>
    %104 = tpu.matmul %102, %103, %cst_25 {dimension_numbers = #tpu.dot_dimension_numbers<[1], [0], [0], [1], [0, 0, 1, 1], [], []>} : vector<16x128xbf16>, vector<128x128xbf16>, vector<16x128xf32> -> vector<16x128xf32>
    %105 = vector.broadcast %7 : vector<1x128xf32> to vector<16x128xf32>
    %106 = arith.addf %104, %105 : vector<16x128xf32>
    %107 = arith.addf %1, %106 : vector<16x128xf32>
    %cst_26 = arith.constant dense<0.000000e+00> : vector<16xf32>
    %108 = vector.multi_reduction <add>, %107, %cst_26 [1] : vector<16x128xf32> to vector<16xf32>
    %109 = vector.shape_cast %108 : vector<16xf32> to vector<16x1xf32>
    %cst_27 = arith.constant 1.280000e+02 : f32
    %110 = vector.broadcast %cst_27 : f32 to vector<16x1xf32>
    %111 = arith.divf %109, %110 : vector<16x1xf32>
    %112 = vector.broadcast %111 : vector<16x1xf32> to vector<16x128xf32>
    %113 = arith.subf %107, %112 : vector<16x128xf32>
    %114 = arith.mulf %113, %113 : vector<16x128xf32>
    %cst_28 = arith.constant dense<0.000000e+00> : vector<16xf32>
    %115 = vector.multi_reduction <add>, %114, %cst_28 [1] : vector<16x128xf32> to vector<16xf32>
    %116 = vector.shape_cast %115 : vector<16xf32> to vector<16x1xf32>
    %cst_29 = arith.constant 1.280000e+02 : f32
    %117 = vector.broadcast %cst_29 : f32 to vector<16x1xf32>
    %118 = arith.divf %116, %117 : vector<16x1xf32>
    %119 = vector.broadcast %111 : vector<16x1xf32> to vector<16x128xf32>
    %120 = arith.subf %107, %119 : vector<16x128xf32>
    %cst_30 = arith.constant 9.99999974E-6 : f32
    %121 = vector.broadcast %cst_30 : f32 to vector<16x1xf32>
    %122 = arith.addf %118, %121 : vector<16x1xf32>
    %123 = math.rsqrt %122 : vector<16x1xf32>
    %124 = vector.broadcast %123 : vector<16x1xf32> to vector<16x128xf32>
    %125 = arith.mulf %120, %124 : vector<16x128xf32>
    %126 = vector.broadcast %5 : vector<1x128xf32> to vector<16x128xf32>
    %127 = arith.mulf %125, %126 : vector<16x128xf32>
    %128 = vector.broadcast %6 : vector<1x128xf32> to vector<16x128xf32>
    %129 = arith.addf %127, %128 : vector<16x128xf32>
    %130 = arith.truncf %129 : vector<16x128xf32> to vector<16x128xbf16>
    %c0_31 = arith.constant 0 : index
    %c0_32 = arith.constant 0 : index
    %131 = vector.load %arg7[%c0_31, %c0_32] : memref<128x256xbf16, #tpu.memory_space<vmem>>, vector<128x256xbf16>
    %cst_33 = arith.constant dense<0.000000e+00> : vector<16x256xf32>
    %132 = tpu.matmul %130, %131, %cst_33 {dimension_numbers = #tpu.dot_dimension_numbers<[1], [0], [0], [1], [0, 0, 1, 1], [], []>} : vector<16x128xbf16>, vector<128x256xbf16>, vector<16x256xf32> -> vector<16x256xf32>
    %c0_34 = arith.constant 0 : index
    %c0_35 = arith.constant 0 : index
    %133 = vector.load %arg8[%c0_34, %c0_35] : memref<1x256xf32, #tpu.memory_space<vmem>>, vector<1x256xf32>
    %134 = vector.broadcast %133 : vector<1x256xf32> to vector<16x256xf32>
    %135 = arith.addf %132, %134 : vector<16x256xf32>
    %cst_36 = arith.constant 0.000000e+00 : f32
    %136 = vector.broadcast %cst_36 : f32 to vector<16x256xf32>
    %137 = arith.maximumf %135, %136 : vector<16x256xf32>
    %138 = arith.truncf %137 : vector<16x256xf32> to vector<16x256xbf16>
    %c0_37 = arith.constant 0 : index
    %c0_38 = arith.constant 0 : index
    %139 = vector.load %arg9[%c0_37, %c0_38] : memref<256x128xbf16, #tpu.memory_space<vmem>>, vector<256x128xbf16>
    %cst_39 = arith.constant dense<0.000000e+00> : vector<16x128xf32>
    %140 = tpu.matmul %138, %139, %cst_39 {dimension_numbers = #tpu.dot_dimension_numbers<[1], [0], [0], [1], [0, 0, 1, 1], [], []>} : vector<16x256xbf16>, vector<256x128xbf16>, vector<16x128xf32> -> vector<16x128xf32>
    %141 = vector.broadcast %8 : vector<1x128xf32> to vector<16x128xf32>
    %142 = arith.addf %140, %141 : vector<16x128xf32>
    %143 = arith.addf %107, %142 : vector<16x128xf32>
    %c0_40 = arith.constant 0 : index
    %c0_41 = arith.constant 0 : index
    %c0_42 = arith.constant 0 : index
    %144 = vector.load %arg10[%c0_40, %c0_41, %c0_42] : memref<1x16x128xf32, #tpu.memory_space<vmem>>, vector<1x16x128xf32>
    %145 = vector.shape_cast %144 : vector<1x16x128xf32> to vector<16x128xf32>
    %146 = vector.shape_cast %143 : vector<16x128xf32> to vector<1x16x128xf32>
    tpu.vector_store %arg10[%c0_40, %c0_41, %c0_42], %146 {strides = array<i32>} : memref<1x16x128xf32, #tpu.memory_space<vmem>>, vector<1x16x128xf32>,
    return
  }
  func.func @transform_0(%arg0: i32) -> (i32, i32, i32) {
    %c0_i32 = arith.constant 0 : i32
    %c0_i32_0 = arith.constant 0 : i32
    %c0_i32_1 = arith.constant 0 : i32
    return %arg0, %c0_i32, %c0_i32_0 : i32, i32, i32
  }
  func.func @transform_1(%arg0: i32) -> (i32, i32, i32) {
    %c0_i32 = arith.constant 0 : i32
    %c0_i32_0 = arith.constant 0 : i32
    %c0_i32_1 = arith.constant 0 : i32
    return %arg0, %c0_i32, %c0_i32_0 : i32, i32, i32
  }
  func.func @transform_2(%arg0: i32) -> (i32, i32) {
    %c0_i32 = arith.constant 0 : i32
    %c0_i32_0 = arith.constant 0 : i32
    %c0_i32_1 = arith.constant 0 : i32
    return %c0_i32, %c0_i32_0 : i32, i32
  }
  func.func @transform_3(%arg0: i32) -> (i32, i32) {
    %c0_i32 = arith.constant 0 : i32
    %c0_i32_0 = arith.constant 0 : i32
    %c0_i32_1 = arith.constant 0 : i32
    return %c0_i32, %c0_i32_0 : i32, i32
  }
  func.func @transform_4(%arg0: i32) -> (i32, i32) {
    %c0_i32 = arith.constant 0 : i32
    %c0_i32_0 = arith.constant 0 : i32
    %c0_i32_1 = arith.constant 0 : i32
    return %c0_i32, %c0_i32_0 : i32, i32
  }
  func.func @transform_5(%arg0: i32) -> (i32, i32) {
    %c0_i32 = arith.constant 0 : i32
    %c0_i32_0 = arith.constant 0 : i32
    %c0_i32_1 = arith.constant 0 : i32
    return %c0_i32, %c0_i32_0 : i32, i32
  }
  func.func @transform_6(%arg0: i32) -> (i32, i32) {
    %c0_i32 = arith.constant 0 : i32
    %c0_i32_0 = arith.constant 0 : i32
    %c0_i32_1 = arith.constant 0 : i32
    return %c0_i32, %c0_i32_0 : i32, i32
  }
  func.func @transform_7(%arg0: i32) -> (i32, i32) {
    %c0_i32 = arith.constant 0 : i32
    %c0_i32_0 = arith.constant 0 : i32
    %c0_i32_1 = arith.constant 0 : i32
    return %c0_i32, %c0_i32_0 : i32, i32
  }
  func.func @transform_8(%arg0: i32) -> (i32, i32) {
    %c0_i32 = arith.constant 0 : i32
    %c0_i32_0 = arith.constant 0 : i32
    %c0_i32_1 = arith.constant 0 : i32
    return %c0_i32, %c0_i32_0 : i32, i32
  }
  func.func @transform_9(%arg0: i32) -> (i32, i32, i32) {
    %c0_i32 = arith.constant 0 : i32
    %c0_i32_0 = arith.constant 0 : i32
    %c0_i32_1 = arith.constant 0 : i32
    return %arg0, %c0_i32, %c0_i32_0 : i32, i32, i32
  }
}

</mosaic_0001>

<bundles_post_ra>
// kernel: tpu_custom_call.1
= control target key start
LH: loop header
LB: loop body
LE: loop exit
PB: predicated region body
PF: predicated region fallthrough
CT: control target
= control target key end

     0   :  { %s3346_s0 = inlined_call_operand.hbm [shape: f32[2,16,128], index: 0, kind: input, shape index: {}]   ;;  %s3347_s1 = inlined_call_operand.hbm [shape: bf16[2,16,16], index: 1, kind: input, shape index: {}]   ;;  %s3348_s2 = inlined_call_operand.hbm [shape: f32[8,128], index: 2, kind: input, shape index: {}]   ;;  %s3349_s3 = inlined_call_operand.hbm [shape: bf16[128,384], index: 3, kind: input, shape index: {}]   ;;  %s3350_s4 = inlined_call_operand.vmem [shape: f32[1,384], index: 4, kind: input, shape index: {}]   ;;  %s3351_s5 = inlined_call_operand.hbm [shape: bf16[128,128], index: 5, kind: input, shape index: {}]   ;;  %s3352_s6 = inlined_call_operand.hbm [shape: bf16[128,256], index: 6, kind: input, shape index: {}]   ;;  %s3353_s7 = inlined_call_operand.vmem [shape: f32[1,256], index: 7, kind: input, shape index: {}]   ;;  %s3354_s8 = inlined_call_operand.hbm [shape: bf16[256,128], index: 8, kind: input, shape index: {}]   ;;  %s3355_s9 = inlined_call_operand.hbm [shape: f32[2,16,128], index: 9, kind: output, shape index: {}]  }
   0x1   :  { %3363 = sst [smem:[#allocation24_spill]] %s3348_s2 }
   0x2   :  { %3364 = sst [smem:[#allocation25_spill]] %s3349_s3 }
   0x3   :  { %3365 = sst [smem:[#allocation26_spill]] %s3351_s5 }
   0x4   :  { %3366 = sst [smem:[#allocation27_spill]] %s3352_s6 }
   0x5   :  { %3367 = sst [smem:[#allocation28_spill]] %s3354_s8 }
   0x6   :  { %14 = vsyncpa [#allocation3], 0 }
   0x7   :  { %16 = vsyncpa [#allocation3 + $0x1], 0 }
   0x8   :  { %17 = vsyncpa [#allocation6], 0 }
   0x9   :  { %19 = vsyncpa [#allocation6 + $0x1], 0 }
   0xa   :  { %20 = vsyncpa [#allocation9], 0 }
   0xb   :  { %21 = vsyncpa [#allocation12], 0 }
   0xc   :  { %22 = vsyncpa [#allocation4], 0 }
   0xd   :  { %24 = vsyncpa [#allocation4 + $0x1], 0  ;;  %s2909_s30 = smov 0   ;;  %s2911_s10 = smov 0  }
   0xe   :  { %s2913_s11 = smov 0   ;;  %s2915_s12 = smov 0  }
   0xf LB: > { %3368 = sst [smem:[#allocation21_spill]] %s2833_s11  ;;  %s2933_s16 = sadd.s32 4294967295, %s2837_s12   ;;  %s2837_s12 = sphi %s2915_s12, %s3388_s12   ;;  %s2833_s11 = sphi %s2913_s11, %s3390_s11   ;;  %s2829_s10 = sphi %s2911_s10, %s3392_s10   ;;  %s2825_s30 = sphi %s2909_s30, %s3391_s30  }
  0x10   : > { %s3369_s2 = sld [smem:[#allocation24_spill]]  ;;  %p2000_p0 = scmp.ge.s32.totalorder %s2837_s12, 1 }
  0x11   : > { %p51_p1 = scmp.eq.s32.totalorder %s2933_s16, 0  ;;  %p260_p2 = scmp.lt.s32.totalorder %s2837_s12, 3 }
  0x12   : > { %s2839_s18 = smov [#allocation7]   ;;  %s3371_s3 = sld [smem:[#allocation25_spill]] }
  0x13   : > { %p2938_p3 = pnand %p2000_p0, %p260_p2  ;;  %s274_s19 = sshll.u32 %s2839_s18, 4  ;;  %s275_s19 = int_to_ptr.vmem [resolvable:$true] %s274_s19 }
  0x14   : > { %s2840_s24 = smov [#allocation8]   ;;  %s2841_s26 = smov 192  }
  0x15   : > { %p2388_p5 = pneg %p2938_p3  ;;  %s285_s25 = sshll.u32 %s2840_s24, 4  ;;  %s286_s25 = int_to_ptr.vmem [resolvable:$true] %s285_s25 }
  0x16   : > { %s272_s15 = sshll.u32 %s3369_s2, 4  ;;  %s2842_s27 = smov 12   ;;  %s273_s15 = int_to_ptr.hbm [resolvable:$true] %s272_s15 }
  0x17   : > { %p2950_p6 = pnand %p2388_p5, %p51_p1  ;;  %s3373_s6 = sld [smem:[#allocation27_spill]] }
  0x18   : > { %s283_s22 = sshll.u32 %s3371_s3, 4  ;;  %s2843_s14 = smov [#allocation11]   ;;  %s284_s22 = int_to_ptr.hbm [resolvable:$true] %s283_s22 }
  0x19   : > { %2391 = dma.hbm_to_vmem [thread:$0]  (!%p2950_p6), %s273_s15, 128, %s275_s19, [#allocation6]  }
  0x1a   : > { %2394 = dma.hbm_to_vmem [thread:$0]  (!%p2950_p6), %s284_s22, 3072, %s286_s25, [#allocation9], %s2841_s26, %s2841_s26, %s2842_s27  }
  0x1b   : > { %s316_s18 = sshll.u32 %s2843_s14, 4  ;;  %s3374_s5 = sld [smem:[#allocation26_spill]]  ;;  %s317_s18 = int_to_ptr.vmem [resolvable:$true] %s316_s18 }
  0x1c   : > { %s3358_s2 = smov 128   ;;  %s3359_s15 = smov 8  }
  0x1d   : > { %s314_s13 = sshll.u32 %s3373_s6, 4  ;;  %s2846_s19 = smov [#allocation10]   ;;  %s315_s13 = int_to_ptr.hbm [resolvable:$true] %s314_s13 }
  0x1e   : > { %2400 = dma.hbm_to_vmem [thread:$0]  (!%p2950_p6), %s315_s13, 2048, %s317_s18, [#allocation12], %s3358_s2, %s3358_s2, %s3359_s15  }
  0x1f   : > { %s302_s22 = sshll.u32 %s2846_s19, 4  ;;  %s3356_s25 = smov 64   ;;  %s303_s22 = int_to_ptr.vmem [resolvable:$true] %s302_s22 }
  0x20   : > { %s3357_s26 = smov 4   ;;  %s3375_s8 = sld [smem:[#allocation28_spill]] }
  0x21   : > { %s300_s24 = sshll.u32 %s3374_s5, 4  ;;  %s2849_s13 = smov [#allocation13]   ;;  %s301_s24 = int_to_ptr.hbm [resolvable:$true] %s300_s24 }
  0x22   : > { %2397 = dma.hbm_to_vmem [thread:$0]  (!%p2950_p6), %s301_s24, 1024, %s303_s22, [#allocation9], %s3356_s25, %s3356_s25, %s3357_s26  }
  0x23   : > { %s333_s14 = sshll.u32 %s2849_s13, 4  ;;  %s1999_s18 = sadd.s32 4294967294, %s2837_s12   ;;  %s334_s14 = int_to_ptr.vmem [resolvable:$true] %s333_s14 }
  0x24   : > { %s2984_s20 = sadd.s32 1, %s2837_s12   ;;  %s37_s21 = sadd.s32 1, %s2833_s11 }
  0x25   : > { %3376 = sst [smem:[#allocation22_spill]] %s2984_s20  ;;  %s34_s24 = ssub.s32 %s2837_s12, %s2984_s20 }
  0x26   : > { %s331_s29 = sshll.u32 %s3375_s8, 4  ;;  %p44_p7 = scmp.ne.s32.totalorder %s2833_s11, %s2829_s10  ;;  %s332_s29 = int_to_ptr.hbm [resolvable:$true] %s331_s29 }
  0x27   : > { %2403 = dma.hbm_to_vmem [thread:$0]  (!%p2950_p6), %s332_s29, 2048, %s334_s14, [#allocation12], %s3356_s25, %s3356_s25, %s3357_s26  }
  0x28   : > { %p35_p8 = scmp.eq.s32.totalorder %s34_s24, 0  ;;  %p45_p9 = scmp.eq.s32.totalorder %s2837_s12, 0 }
  0x29   : > { %p50_p10 = scmp.ne.s32.totalorder %s2829_s10, %s2825_s30  ;;  %p247_p11 = scmp.eq.s32.totalorder %s2933_s16, 1 }
  0x2a   : > { %s2996_s19 = scalar_select %p35_p8, %s2833_s11, %s37_s21  }
  0x2b   : > { %p2998_p12 = por %p45_p9, %p44_p7  ;;  %p3004_p13 = por %p51_p1, %p50_p10 }
  0x2c   : > { %3377 = sst [smem:[#allocation23_spill]] %s2996_s19  ;;  %p3008_p0 = por %p247_p11, %p44_p7 }
  0x2d   : > { %p253_p2 = scmp.eq.s32.totalorder %s1999_s18, 1  ;;  %p2420_p5 = scmp.lt.s32.totalorder %s2837_s12, 2 }
  0x2e   : > { %s3014_s28 = sand.u32 1, %s2833_s11   ;;  %s2291_s14 = sshll.u32 %s2837_s12, 4 }
  0x2f   : > { %p3016_p6 = por %p253_p2, %p50_p10  ;;  %s2007_s13 = sshll.u32 %s3014_s28, 4 }
  0x30   : > { %s356_s25 = scalar_lea.hbm %s3346_s0, %s2291_s14  ;;  %s351_s2 = scalar_lea.vmem [#allocation2], %s2007_s13 }
  0x31   : > { %s357_s26 = sshll.u32 %s356_s25, 4  ;;  %s359_s15 = sshll.u32 %s351_s2, 4  ;;  %s358_s26 = int_to_ptr.hbm [resolvable:$true] %s357_s26  ;;  %s360_s15 = int_to_ptr.vmem [resolvable:$true] %s359_s15 }
  0x32   : > { %p3027_p7 = pnand %p2420_p5, %p2998_p12  ;;  %s369_s3 = sand.u32 1, %s2837_s12  }
  0x33   : > { %s2010_s5 = sshll.u32 %s3014_s28, 3  ;;  %s348_s6 = scalar_lea.sflag [#allocation3], %s3014_s28 }
  0x34   : > { %s2695_s8 = sshra.s32 %s358_s26, 4  ;;  %p2699_p9 = pneg %p3027_p7  ;;  %s2696_s8 = int_to_ptr.hbm [resolvable:$true] %s2695_s8 }
  0x35   : > { %s2697_s19 = scalar_lea.hbm %s2696_s8, 16  ;;  %s2702_s23 = scalar_lea.hbm %s3346_s0, 32 }
  0x36   : > { %p2698_p8 = scmp.ne.s32.totalorder %s2696_s8, %s2697_s19  ;;  %p2703_p12 = scmp.lt.s32.totalorder %s2696_s8, %s3346_s0 }
  0x37   : > { %p2704_p2 = scmp.lt.s32.totalorder %s2702_s23, %s2697_s19 }
  0x38   : > { %p2700_p10 = pnand %p2699_p9, %p2698_p8 }
  0x39   : > { %p2705_p5 = por %p2704_p2, %p2703_p12 }
  0x3a   : > { %p2701_p11 = pneg %p2700_p10 }
  0x3c   : > { %p2706_p4 = pnand %p2705_p5, %p2701_p11 }
  0x3e   : > { %2709 = shalt.err (!%p2706_p4)
}
  0x3f   : > { %s3383_s28 = smov 8   ;;  %s3384_s21 = smov 128  }
  0x40   : > { %2407 = dma.hbm_to_vmem [thread:$0]  (!%p3027_p7), %s358_s26, 256, %s360_s15, %s348_s6, %s3384_s21, %s3384_s21, %s3383_s28  }
  0x41   : > { %s2292_s24 = sshll.u32 %s2837_s12, 3  ;;  %s373_s11 = scalar_lea.vmem [#allocation5], %s2010_s5 }
  0x42   : > { %s381_s2 = sshll.u32 %s373_s11, 4  ;;  %s378_s13 = scalar_lea.hbm %s3347_s1, %s2292_s24  ;;  %s382_s2 = int_to_ptr.vmem [resolvable:$true] %s381_s2 }
  0x43   : > { %s379_s8 = sshll.u32 %s378_s13, 4  ;;  %s370_s19 = scalar_lea.sflag [#allocation6], %s369_s3  ;;  %s380_s8 = int_to_ptr.hbm [resolvable:$true] %s379_s8 }
  0x44   : > { %s2725_s23 = sshra.s32 %s380_s8, 4  ;;  %s2732_s5 = scalar_lea.hbm %s3347_s1, 16  ;;  %s2726_s23 = int_to_ptr.hbm [resolvable:$true] %s2725_s23 }
  0x45   : > { %s2727_s14 = scalar_lea.hbm %s2726_s23, 8  ;;  %p2733_p11 = scmp.lt.s32.totalorder %s2726_s23, %s3347_s1 }
  0x46   : > { %p2728_p4 = scmp.ne.s32.totalorder %s2726_s23, %s2727_s14  ;;  %p2734_p12 = scmp.lt.s32.totalorder %s2732_s5, %s2727_s14 }
  0x48   : > { %p2730_p8 = pnand %p2728_p4, %p2699_p9  ;;  %p2735_p2 = por %p2734_p12, %p2733_p11 }
  0x4a   : > { %p2731_p10 = pneg %p2730_p8 }
  0x4c   : > { %p2736_p5 = pnand %p2735_p2, %p2731_p10 }
  0x4e   : > { %2739 = shalt.err (!%p2736_p5)
}
  0x4f   : > { %s3385_s3 = smov 4   ;;  %s3386_s20 = smov 64  }
  0x50   : > { %2410 = dma.hbm_to_vmem [thread:$0]  (!%p3027_p7), %s380_s8, 128, %s382_s2, %s370_s19, %s3386_s20, %s3386_s20, %s3385_s3  }
  0x51   : > { %393 = sbr.rel (%p2938_p3) target bundleno = 2113 (0x841), region = 56  ;;  %s3071_s28 = sand.u32 (!%p2938_p3), 1, %s2829_s10  }
  0x52   : > { %s2014_s21 = sshll.u32 (!%p2938_p3), %s3071_s28, 4  ;;  %s396_s24 = scalar_lea.sflag (!%p2938_p3), [#allocation3], %s3071_s28 }
  0x53   : > { %s3077_s25 = scalar_lea.vmem (!%p2938_p3), [#allocation2], %s2014_s21 }
  0x56   : > { %2800 = dma.done.wait (%p3004_p13), %s396_s24, 256  }
  0x57   : > { %2802 = vsyncadd (%p3004_p13), %s396_s24, 4294967040  ;;  %s405_s17 = sand.u32 1, %s2933_s16   ;;  %s2015_s18 = sshll.u32 %s3071_s28, 3 }
  0x58   : > { %s406_s2 = scalar_lea.sflag [#allocation6], %s405_s17  ;;  %s3085_s13 = scalar_lea.vmem [#allocation5], %s2015_s18 }
  0x59   : > { %2804 = dma.done.wait (%p3004_p13), %s406_s2, 128  }
  0x5a   : > { %2806 = vsyncadd (%p3004_p13), %s406_s2, 4294967168 }
  0x5b   : > { %2808 = dma.done.wait (%p51_p1), [#allocation6], 128  }
  0x5c   : > { %2810 = vsyncadd (%p51_p1), [#allocation6], 4294967168 }
  0x5d   : > { %2812 = dma.done.wait (%p51_p1), [#allocation9], 4096  }
  0x5e   : > { %2814 = vsyncadd (%p51_p1), [#allocation9], 4294963200 }
  0x5f   : > { %2816 = dma.done.wait (%p51_p1), [#allocation12], 4096  }
  0x60   : > { %2818 = vsyncadd (%p51_p1), [#allocation12], 4294963200  ;;  %v476_v0 = vld [vmem:[%s3077_s25] sm:$0xff]  ;;  %v477_v1 = vld [vmem:[%s3077_s25 + $0x8] sm:$0xff]  ;;  %v2850_v2 = vmov 128.0   ;;  %s2851_s19 = smov 64  }
  0x61   : > { %487 = vadd.xlane.f32.xlu0 %v476_v0  ;;  %2500 = vrcp.f32 %v2850_v2  ;;  %v2108_v17 = vld [vmem:[#allocation8 + $0xa8] sm:$0xf]  ;;  %v2315_v18 = vld [vmem:[#allocation8 + $0xb0] sm:$0xf0]  ;;  %v2314_v19 = vld [vmem:[#allocation8 + $0xac] sm:$0xf] }
  0x62   : > { %v2109_v20 = vor.u32 %v2315_v18, %v2108_v17  ;;  %v2110_v21 = vld [vmem:[#allocation8 + $0xb4] sm:$0xf0]  ;;  %v2116_v22 = vld [vmem:[#allocation8 + $0xb0] sm:$0xf]  ;;  %v2316_v23 = vld [vmem:[#allocation8 + $0xb8] sm:$0xf0] }
  0x63   : > { %v2113_v24 = vor.u32 %v2314_v19, %v2110_v21  ;;  %v2117_v25 = vor.u32 %v2316_v23, %v2116_v22  ;;  %v2096_v26 = vld [vmem:[#allocation8 + $0x90] sm:$0xf]  ;;  %v2312_v27 = vld [vmem:[#allocation8 + $0x98] sm:$0xf0]  ;;  %v2311_v28 = vld [vmem:[#allocation8 + $0x94] sm:$0xf] }
  0x64   : > { %709 = vmatpush.bf16.msra.mxu0 %v2109_v20  ;;  %v2097_v29 = vor.u32 %v2312_v27, %v2096_v26  ;;  %v2098_v30 = vld [vmem:[#allocation8 + $0x9c] sm:$0xf0]  ;;  %v2104_v31 = vld [vmem:[#allocation8 + $0x98] sm:$0xf]  ;;  %v2313_v32 = vld [vmem:[#allocation8 + $0xa0] sm:$0xf0] }
  0x65   : > { %723 = vmatpush.bf16.msra.mxu1 %v2113_v24  ;;  %737 = vmatpush.bf16.msra.mxu2 %v2117_v25  ;;  %v2101_v33 = vor.u32 %v2311_v28, %v2098_v30  ;;  %v2105_v34 = vor.u32 %v2313_v32, %v2104_v31  ;;  %v2084_v35 = vld [vmem:[#allocation8 + $0x78] sm:$0xf]  ;;  %v2309_v36 = vld [vmem:[#allocation8 + $0x80] sm:$0xf0]  ;;  %v2308_v37 = vld [vmem:[#allocation8 + $0x7c] sm:$0xf] }
  0x66   : > { %v2085_v38 = vor.u32 %v2309_v36, %v2084_v35  ;;  %v2086_v39 = vld [vmem:[#allocation8 + $0x84] sm:$0xf0]  ;;  %v2092_v40 = vld [vmem:[#allocation8 + $0x80] sm:$0xf]  ;;  %v2310_v41 = vld [vmem:[#allocation8 + $0x88] sm:$0xf0] }
  0x67   : > { %v2501_v3 = vpop.eup %2500  ;;  %v2089_v42 = vor.u32 %v2308_v37, %v2086_v39  ;;  %v2093_v43 = vor.u32 %v2310_v41, %v2092_v40  ;;  %v2072_v44 = vld [vmem:[#allocation8 + $0x60] sm:$0xf]  ;;  %v2306_v45 = vld [vmem:[#allocation8 + $0x68] sm:$0xf0]  ;;  %v2305_v46 = vld [vmem:[#allocation8 + $0x64] sm:$0xf] }
  0x68   : > { %v492_v4 = vmul.f32 128.0, %v2501_v3  ;;  %vm496_vm0 = vweird.f32 %v2501_v3  ;;  %710 = vmatpush.bf16.msra.mxu0 %v2097_v29  ;;  %v2073_v47 = vor.u32 %v2306_v45, %v2072_v44  ;;  %v2074_v48 = vld [vmem:[#allocation8 + $0x6c] sm:$0xf0]  ;;  %v2080_v49 = vld [vmem:[#allocation8 + $0x68] sm:$0xf]  ;;  %v3119_v45 = vld [vmem:[#allocation7] sm:$0xff] }
  0x69   : > { %489 = vadd.xlane.f32.xlu0 %v477_v1  ;;  %724 = vmatpush.bf16.msra.mxu1 %v2101_v33  ;;  %v2307_v50 = vld [vmem:[#allocation8 + $0x70] sm:$0xf0]  ;;  %v2077_v51 = vor.u32 %v2305_v46, %v2074_v48  ;;  %v2060_v53 = vld [vmem:[#allocation8 + $0x48] sm:$0xf]  ;;  %v2302_v55 = vld [vmem:[#allocation8 + $0x4c] sm:$0xf] }
  0x6a   : > { %v493_v5 = vsub.f32 1.0, %v492_v4  ;;  %738 = vmatpush.bf16.msra.mxu2 %v2105_v34  ;;  %v2081_v52 = vor.u32 %v2307_v50, %v2080_v49  ;;  %v2303_v54 = vld [vmem:[#allocation8 + $0x50] sm:$0xf0]  ;;  %v2062_v57 = vld [vmem:[#allocation8 + $0x54] sm:$0xf0]  ;;  %v534_v48 = vperm.slane %v3119_v45, 0 }
  0x6b   : > { %v2061_v56 = vor.u32 %v2303_v54, %v2060_v53  ;;  %v2068_v58 = vld [vmem:[#allocation8 + $0x50] sm:$0xf]  ;;  %v2304_v59 = vld [vmem:[#allocation8 + $0x58] sm:$0xf0]  ;;  %v2065_v60 = vor.u32 %v2302_v55, %v2062_v57  ;;  %v2050_v2 = vld [vmem:[#allocation8 + $0x3c] sm:$0xf0] }
  0x6c   : > { %v494_v6 = vmul.f32 %v2501_v3, %v493_v5  ;;  %711 = vmatpush.bf16.msra.mxu0 %v2085_v38  ;;  %v2069_v61 = vor.u32 %v2304_v59, %v2068_v58  ;;  %v2048_v62 = vld [vmem:[#allocation8 + $0x30] sm:$0xf]  ;;  %v2300_v63 = vld [vmem:[#allocation8 + $0x38] sm:$0xf0]  ;;  %v2301_v4 = vld [vmem:[#allocation8 + $0x40] sm:$0xf0] }
  0x6d   : > { %725 = vmatpush.bf16.msra.mxu1 %v2089_v42  ;;  %v2024_v19 = vld [vmem:[#allocation8] sm:$0xf]  ;;  %v2294_v20 = vld [vmem:[#allocation8 + $0x8] sm:$0xf0]  ;;  %v2293_v21 = vld [vmem:[#allocation8 + $0x4] sm:$0xf] }
  0x6e   : > { %v495_v7 = vadd.f32 %v2501_v3, %v494_v6  ;;  %739 = vmatpush.bf16.msra.mxu2 %v2093_v43  ;;  %v2025_v23 = vor.u32 %v2294_v20, %v2024_v19  ;;  %v2026_v24 = vld [vmem:[#allocation8 + $0xc] sm:$0xf0]  ;;  %v2032_v25 = vld [vmem:[#allocation8 + $0x8] sm:$0xf]  ;;  %v2295_v26 = vld [vmem:[#allocation8 + $0x10] sm:$0xf0] }
  0x6f   : > { %v2029_v28 = vor.u32 %v2293_v21, %v2026_v24  ;;  %v2033_v29 = vor.u32 %v2295_v26, %v2032_v25  ;;  %v537_v53 = vperm.slane %v3119_v45, 1  ;;  %s2852_s23 = smov 96   ;;  %s2853_s14 = smov 32   ;;  %vm882_vm7 = vcmask 261120  }
  0x70   : > { %v3105_v8 = vsel %vm496_vm0, %v2501_v3, %v495_v7  ;;  %712 = vmatpush.bf16.msra.mxu0 %v2073_v47  ;;  %v2056_v3 = vld [vmem:[#allocation8 + $0x38] sm:$0xf]  ;;  %vm960_vm9 = vcmask 130048   ;;  %vm1162_vm11 = vcmask 1047556   ;;  %vm1408_vm12 = vcmask 523264   ;;  %s2357_s5 = sshll.u32 %s2933_s16, 4 }
  0x71   : > { %726 = vmatpush.bf16.msra.mxu1 %v2077_v51  ;;  %v2057_v6 = vor.u32 %v2301_v4, %v2056_v3  ;;  %v2036_v7 = vld [vmem:[#allocation8 + $0x18] sm:$0xf]  ;;  %vm1411_vm13 = vcmask 785408   ;;  %s474_s11 = scalar_lea.vmem [#allocation14], %s2014_s21  ;;  %s1852_s20 = scalar_lea.hbm %s3355_s9, %s2357_s5 }
  0x72   : > { %740 = vmatpush.bf16.msra.mxu2 %v2081_v52  ;;  %s1853_s24 = sshll.u32 %s474_s11, 4  ;;  %s1841_s16 = scalar_lea.sflag [#allocation4], %s3071_s28  ;;  %s1854_s24 = int_to_ptr.vmem [resolvable:$true] %s1853_s24 }
  0x74   : > { %713 = vmatpush.bf16.msra.mxu0 %v2061_v56 }
  0x75   : > { %727 = vmatpush.bf16.msra.mxu1 %v2065_v60 }
  0x76   : > { %741 = vmatpush.bf16.msra.mxu2 %v2069_v61 }
  0x7a   : > { %742 = vmatpush.bf16.msra.mxu2 %v2057_v6 }
  0xd4   : > { %v488_v9 = vpop.xlane.xlu0 %487 }
  0xd5   : > { %v498_v10 = vmul.f32 %v3105_v8, %v488_v9  ;;  %v2297_v9 = vld [vmem:[#allocation8 + $0x20] sm:$0xf0] }
  0xd7   : > { %v3108_v11 = vsub.f32 %v476_v0, %v498_v10  ;;  %v2299_v0 = vld [vmem:[#allocation8 + $0x34] sm:$0xf]  ;;  %v2296_v10 = vld [vmem:[#allocation8 + $0x1c] sm:$0xf] }
  0xd8   : > { %v2053_v5 = vor.u32 %v2299_v0, %v2050_v2 }
  0xd9   : > { %v502_v12 = vmul.f32 %v3108_v11, %v3108_v11 }
  0xda   : > { %728 = vmatpush.bf16.msra.mxu1 %v2053_v5 }
  0xdb   : > { %504 = vadd.xlane.f32.xlu1 %v502_v12  ;;  %v2037_v12 = vor.u32 %v2297_v9, %v2036_v7 }
  0xdc   : > { %v490_v13 = vpop.xlane.xlu0 %489 }
  0xdd   : > { %v499_v14 = vmul.f32 %v3105_v8, %v490_v13  ;;  %v2038_v13 = vld [vmem:[#allocation8 + $0x24] sm:$0xf0] }
  0xde   : > { %v2041_v17 = vor.u32 %v2296_v10, %v2038_v13 }
  0xdf   : > { %v3113_v15 = vsub.f32 %v477_v1, %v499_v14  ;;  %v2049_v1 = vor.u32 %v2300_v63, %v2048_v62  ;;  %v2044_v14 = vld [vmem:[#allocation8 + $0x20] sm:$0xf] }
  0xe0   : > { %729 = vmatpush.bf16.msra.mxu1 %v2041_v17 }
  0xe1   : > { %v503_v16 = vmul.f32 %v3113_v15, %v3113_v15  ;;  %714 = vmatpush.bf16.msra.mxu0 %v2049_v1 }
  0xe3   : > { %506 = vadd.xlane.f32.xlu1 %v503_v16  ;;  %v2298_v16 = vld [vmem:[#allocation8 + $0x28] sm:$0xf0] }
  0xe4   : > { %v2045_v18 = vor.u32 %v2298_v16, %v2044_v14  ;;  %730 = vmatpush.bf16.msra.mxu1 %v2029_v28 }
  0xe5   : > { %715 = vmatpush.bf16.msra.mxu0 %v2037_v12 }
  0xe6   : > { %743 = vmatpush.bf16.msra.mxu2 %v2045_v18 }
  0xe9   : > { %716 = vmatpush.bf16.msra.mxu0 %v2025_v23 }
  0xea   : > { %744 = vmatpush.bf16.msra.mxu2 %v2033_v29 }
 0x14e   : > { %v505_v22 = vpop.xlane.xlu1 %504 }
 0x14f   : > { %v508_v27 = vmul.f32 %v505_v22, %v3105_v8 }
 0x151   : > { %v510_v30 = vadd.f32 1e-05, %v508_v27 }
 0x153   : > { %2502 = vrsqrt.f32 %v510_v30  ;;  %vm518_vm2 = vweird.f32 %v510_v30 }
 0x156   : > { %v507_v31 = vpop.xlane.xlu1 %506 }
 0x157   : > { %v509_v32 = vmul.f32 %v507_v31, %v3105_v8 }
 0x159   : > { %v2503_v33 = vpop.eup %2502  ;;  %v511_v34 = vadd.f32 1e-05, %v509_v32 }
 0x15a   : > { %v513_v35 = vmul.f32 %v2503_v33, %v510_v30  ;;  %vm519_vm1 = vweird.f32 %v2503_v33 }
 0x15b   : > { %2504 = vrsqrt.f32 %v511_v34  ;;  %vm520_vm3 = vmor %vm518_vm2, %vm519_vm1  ;;  %vm528_vm5 = vweird.f32 %v511_v34 }
 0x15c   : > { %v514_v36 = vmul.f32 %v2503_v33, %v513_v35 }
 0x15e   : > { %v515_v37 = vmul.f32 0.5, %v514_v36 }
 0x160   : > { %v516_v38 = vsub.f32 1.5, %v515_v37 }
 0x161   : > { %v2505_v39 = vpop.eup %2504 }
 0x162   : > { %v517_v40 = vmul.f32 %v2503_v33, %v516_v38  ;;  %v523_v41 = vmul.f32 %v2505_v39, %v511_v34  ;;  %vm529_vm4 = vweird.f32 %v2505_v39 }
 0x163   : > { %vm530_vm6 = vmor %vm528_vm5, %vm529_vm4 }
 0x164   : > { %v524_v42 = vmul.f32 %v2505_v39, %v523_v41  ;;  %v521_v43 = vsel %vm520_vm3, %v2503_v33, %v517_v40 }
 0x165   : > { %v532_v47 = vmul.f32 %v521_v43, %v3108_v11  ;;  %v573_v11 = vld [vmem:[%s3350_s4] sm:$0x7] }
 0x166   : > { %v525_v44 = vmul.f32 0.5, %v524_v42  ;;  %v576_v58 = vperm.slane %v573_v11, 1  ;;  %v577_v62 = vperm.slane %v573_v11, 2  ;;  %v575_v2 = vperm.slane %v573_v11, 0 }
 0x167   : > { %v535_v52 = vmul.f32 %v534_v48, %v532_v47 }
 0x168   : > { %v526_v46 = vsub.f32 1.5, %v525_v44 }
 0x169   : > { %v538_v55 = vadd.f32 %v537_v53, %v535_v52 }
 0x16a   : > { %v527_v49 = vmul.f32 %v2505_v39, %v526_v46 }
 0x16c   : > { %v531_v50 = vsel %vm530_vm6, %v2505_v39, %v527_v49 }
 0x16d   : > { %v533_v51 = vmul.f32 %v531_v50, %v3113_v15 }
 0x16f   : > { %v536_v54 = vmul.f32 %v534_v48, %v533_v51 }
 0x171   : > { %v539_v56 = vadd.f32 %v537_v53, %v536_v54 }
 0x173   : > { %v540_v57 = vpack.c.bf16 %v539_v56, %v538_v55 }
 0x175   : > { %717 = vmatmul.bf16.vlgmr.msra.gmra.mxu0 %v540_v57  ;;  %731 = vmatmul.bf16.vlgmr.msra.gmra.mxu1 %v540_v57 }
 0x176   : > { %745 = vmatmul.bf16.vlgmr.msra.gmra.mxu2 %v540_v57 }
 0x1f2   : > { %v732_v59 = vpop.f32.mrf.mxu1  ;;  %v718_v1 = vpop.f32.mrf.mxu0 }
 0x1f3   : > { %v733_v60 = vadd.f32 %v732_v59, %v576_v58  ;;  %v719_v7 = vadd.f32 %v718_v1, %v575_v2 }
 0x1f5   : > { %v767_v61 = vpack.c.bf16 %v733_v60, %v733_v60  ;;  %v751_v16 = vpack.c.bf16 %v719_v7, %v719_v7 }
 0x1f7   : > { %775 = vrot.lane.b32.xlu0 %v767_v61, %s2851_s19  ;;  %771 = vrot.lane.b32.xlu2 %v767_v61, %s2852_s23  ;;  %v799_v5 = vunpack.c.l.b16 %v767_v61  ;;  %v879_v44 = vunpack.c.l.b16 %v751_v16 }
 0x1f9   : > { %v746_v15 = vpop.f32.mrf.mxu2 }
 0x1fa   : > { %v734_v63 = vpop.f32.mrf.mxu1  ;;  %v747_v4 = vadd.f32 %v746_v15, %v577_v62  ;;  %v720_v17 = vpop.f32.mrf.mxu0 }
 0x1fb   : > { %v735_v0 = vadd.f32 %v734_v63, %v576_v58  ;;  %v721_v21 = vadd.f32 %v720_v17, %v575_v2 }
 0x1fc   : > { %v3133_v12 = vpack.c.bf16 %v747_v4, %v747_v4  ;;  %v2359_v4 = vld [vmem:[%s3085_s13] sm:$0xff]   ;;  %s2775_s13 = scalar_lea.hbm %s3355_s9, 32 }
 0x1fd   : > { %v768_v3 = vpack.c.bf16 %v735_v0, %v735_v0  ;;  %v752_v22 = vpack.c.bf16 %v721_v21, %v721_v21 }
 0x1fe   : > { %v1054_v18 = vunpack.c.l.b16 %v3133_v12 }
 0x1ff   : > { %777 = vrot.lane.b32.xlu1 %v768_v3, %s2851_s19  ;;  %779 = vrot.lane.b32.xlu0 %v767_v61, %s2853_s14  ;;  %v800_v6 = vunpack.c.l.b16 %v768_v3  ;;  %v880_v42 = vunpack.c.l.b16 %v752_v22 }
 0x200   : > { %773 = vrot.lane.b32.xlu2 %v768_v3, %s2852_s23 }
 0x201   : > { %v748_v9 = vpop.f32.mrf.mxu2  ;;  %v807_v10 = vpack.c.b16 %v800_v6, %v799_v5  ;;  %v881_v46 = vpack.c.b16 %v880_v42, %v879_v44  ;;  %v2360_v5 = vunpack.c.l.bf16 %v2359_v4  ;;  %v2854_v6 = vmov -1e+09  }
 0x202   : > { %v749_v13 = vadd.f32 %v748_v9, %v577_v62  ;;  %v2361_v9 = vunpack.c.h.bf16 %v2359_v4 }
 0x203   : > { %vm483_vm8 = vcmp.gt.f32.partialorder %v2360_v5, 0.0 }
 0x204   : > { %v3135_v14 = vpack.c.bf16 %v749_v13, %v749_v13  ;;  %v485_v7 = vsel %vm483_vm8, 0.0, %v2854_v6  ;;  %vm484_vm10 = vcmp.gt.f32.partialorder %v2361_v9, 0.0 }
 0x205   : > { %v486_v17 = vsel %vm484_vm10, 0.0, %v2854_v6 }
 0x206   : > { %v1055_v19 = vunpack.c.l.b16 %v3135_v14 }
 0x207   : > { %781 = vrot.lane.b32.xlu1 %v768_v3, %s2853_s14  ;;  %755 = vrot.lane.b32.xlu0 %v751_v16, %s2852_s23 }
 0x208   : > { %v1056_v20 = vpack.c.b16 %v1055_v19, %v1054_v18 }
 0x20a   : > { %1068 = vmatpush.bf16.msrb.mxu2 %v1056_v20 }
 0x20f   : > { %757 = vrot.lane.b32.xlu1 %v752_v22, %s2852_s23  ;;  %759 = vrot.lane.b32.xlu0 %v751_v16, %s2851_s19 }
 0x217   : > { %763 = vrot.lane.b32.xlu0 %v751_v16, %s2853_s14 }
 0x21f   : > { %765 = vrot.lane.b32.xlu0 %v752_v22, %s2853_s14 }
 0x251   : > { %v772_v23 = vpop.permute.xlu2 %771 }
 0x252   : > { %v801_v25 = vunpack.c.l.b16 %v772_v23 }
 0x25a   : > { %v774_v24 = vpop.permute.xlu2 %773 }
 0x25b   : > { %v802_v26 = vunpack.c.l.b16 %v774_v24 }
 0x25d   : > { %v808_v27 = vpack.c.b16 %v802_v26, %v801_v25 }
 0x25f   : > { %2480 = vxpose.binary.xlu2.c.b16.start.end [1/2] (short) (narrow) %v808_v27, %v807_v10, 32 }
 0x269   : > { %v776_v28 = vpop.permute.xlu0 %775 }
 0x26a   : > { %v803_v30 = vunpack.c.l.b16 %v776_v28 }
 0x271   : > { %v778_v29 = vpop.permute.xlu1 %777  ;;  %v780_v33 = vpop.permute.xlu0 %779 }
 0x272   : > { %v804_v31 = vunpack.c.l.b16 %v778_v29  ;;  %v805_v35 = vunpack.c.l.b16 %v780_v33 }
 0x274   : > { %v809_v32 = vpack.c.b16 %v804_v31, %v803_v30 }
 0x276   : > { %847 = vxpose.xlu1.c.b16.start.end [1/1] (short) (narrow) %v809_v32, 32 }
 0x279   : > { %v782_v34 = vpop.permute.xlu1 %781  ;;  %v756_v40 = vpop.permute.xlu0 %755 }
 0x27a   : > { %v806_v36 = vunpack.c.l.b16 %v782_v34  ;;  %v900_v51 = vunpack.c.l.b16 %v756_v40 }
 0x27c   : > { %v810_v37 = vpack.c.b16 %v806_v36, %v805_v35 }
 0x27e   : > { %863 = vxpose.xlu0.c.b16.start.end [1/1] (short) (narrow) %v810_v37, 32 }
 0x281   : > { %v760_v43 = vpop.permute.xlu0 %759  ;;  %v758_v49 = vpop.permute.xlu1 %757 }
 0x282   : > { %v901_v50 = vunpack.c.l.b16 %v758_v49  ;;  %v920_v58 = vunpack.c.l.b16 %v760_v43 }
 0x284   : > { %v902_v52 = vpack.c.b16 %v901_v50, %v900_v51 }
 0x289   : > { %v764_v48 = vpop.permute.xlu0 %763 }
 0x28a   : > { %v940_v15 = vunpack.c.l.b16 %v764_v48 }
 0x291   : > { %v766_v53 = vpop.permute.xlu0 %765 }
 0x292   : > { %v941_v61 = vunpack.c.l.b16 %v766_v53 }
 0x294   : > { %v942_v62 = vpack.c.b16 %v941_v61, %v940_v15 }
 0x2d8   : > { %761 = vrot.lane.b32.xlu2 %v752_v22, %s2851_s19 }
 0x2e0   : > { %787 = vrot.lane.b32.xlu2 %v3133_v12, %s2852_s23  ;;  %791 = vrot.lane.b32.xlu1 %v3133_v12, %s2851_s19 }
 0x2fc   : > { %793 = vrot.lane.b32.xlu0 %v3135_v14, %s2851_s19 }
 0x300   : > { %v2481_v38 = vpop.trf.xlu2 }
 0x308   : > { %v2482_v39 = vpop.trf.xlu2 }
 0x310   : > { %v2483_v41 = vpop.trf.xlu2 }
 0x311   : > { %892 = vmatpush.bf16.msra.mxu3 %v2483_v41 }
 0x315   : > { %893 = vmatpush.bf16.msra.mxu3 %v2481_v38 }
 0x318   : > { %2118 = vmatmul.msk.bf16.vlgmr.msra.gmra.mxu3 %vm882_vm7, %v881_v46  ;;  %v2484_v47 = vpop.trf.xlu2 }
 0x319   : > { %912 = vmatpush.bf16.msrb.mxu3 %v2484_v47 }
 0x31d   : > { %913 = vmatpush.bf16.msrb.mxu3 %v2482_v39 }
 0x322   : > { %v855_v54 = vpop.trf.xlu1 }
 0x328   : > { %2119 = vmatmul.msk.bf16.vlgmr.msrb.gmra.mxu3 %vm882_vm7, %v902_v52 }
 0x32a   : > { %v871_v55 = vpop.trf.xlu0 }
 0x332   : > { %v762_v56 = vpop.permute.xlu2 %761  ;;  %v856_v57 = vpop.trf.xlu1 }
 0x333   : > { %932 = vmatpush.bf16.msra.mxu3 %v856_v57  ;;  %v921_v11 = vunpack.c.l.b16 %v762_v56 }
 0x335   : > { %v922_v59 = vpack.c.b16 %v921_v11, %v920_v58 }
 0x337   : > { %933 = vmatpush.bf16.msra.mxu3 %v855_v54 }
 0x33a   : > { %v872_v60 = vpop.trf.xlu0  ;;  %2120 = vmatmul.msk.bf16.vlgmr.msra.gmra.mxu3 %vm882_vm7, %v922_v59  ;;  %v788_v47 = vpop.permute.xlu2 %787 }
 0x33b   : > { %952 = vmatpush.bf16.msrb.mxu0 %v872_v60 }
 0x33f   : > { %953 = vmatpush.bf16.msrb.mxu0 %v871_v55 }
 0x342   : > { %2121 = vmatmul.msk.bf16.vlgmr.msrb.gmra.mxu0 %vm882_vm7, %v942_v62 }
 0x352   : > { %v792_v63 = vpop.permute.xlu1 %791 }
 0x353   : > { %v1106_v1 = vunpack.c.l.b16 %v792_v63 }
 0x36e   : > { %v794_v0 = vpop.permute.xlu0 %793 }
 0x36f   : > { %v1107_v2 = vunpack.c.l.b16 %v794_v0 }
 0x371   : > { %v1108_v3 = vpack.c.b16 %v1107_v2, %v1106_v1 }
 0x373   : > { %1120 = vmatpush.bf16.msrb.mxu3 %v1108_v3 }
 0x39b   : > { %v895_v10 = vpop.f32.mrf.mxu3 }
 0x39c   : > { %v896_v13 = vadd.f32 %v895_v10, %v485_v7 }
 0x39e   : > { %v961_v16 = vsel %vm960_vm9, %v896_v13, -inf }
 0x39f   : > { %962 = vmax.xlane.f32.xlu0 %v961_v16 }
 0x3a3   : > { %v897_v18 = vpop.f32.mrf.mxu3 }
 0x3a4   : > { %v898_v19 = vadd.f32 %v897_v18, %v486_v17 }
 0x3a6   : > { %v964_v20 = vsel %vm960_vm9, %v898_v19, -inf }
 0x3a7   : > { %965 = vmax.xlane.f32.xlu1 %v964_v20 }
 0x3ab   : > { %v915_v21 = vpop.f32.mrf.mxu3 }
 0x3ac   : > { %v916_v25 = vadd.f32 %v915_v21, %v485_v7 }
 0x3ae   : > { %v967_v30 = vsel %vm960_vm9, %v916_v25, -inf }
 0x3b3   : > { %789 = vrot.lane.b32.xlu0 %v3135_v14, %s2852_s23  ;;  %v917_v28 = vpop.f32.mrf.mxu3 }
 0x3b4   : > { %v918_v31 = vadd.f32 %v917_v28, %v486_v17 }
 0x3b6   : > { %v970_v33 = vsel %vm960_vm9, %v918_v31, -inf }
 0x3bd   : > { %v935_v32 = vpop.f32.mrf.mxu3 }
 0x3be   : > { %v936_v34 = vadd.f32 %v935_v32, %v485_v7 }
 0x3bf   : > { %v955_v22 = vpop.f32.mrf.mxu0 }
 0x3c0   : > { %v956_v23 = vadd.f32 %v955_v22, %v485_v7  ;;  %v973_v35 = vsel %vm960_vm9, %v936_v34, -inf }
 0x3c2   : > { %v979_v24 = vsel %vm960_vm9, %v956_v23, -inf }
 0x3c3   : > { %980 = vmax.xlane.f32.xlu1 %v979_v24 }
 0x3c5   : > { %v937_v36 = vpop.f32.mrf.mxu3 }
 0x3c6   : > { %v3166_v37 = vadd.f32 %v937_v36, %v486_v17 }
 0x3c7   : > { %v957_v26 = vpop.f32.mrf.mxu0 }
 0x3c8   : > { %v958_v27 = vadd.f32 %v957_v26, %v486_v17  ;;  %v976_v38 = vsel %vm960_vm9, %v3166_v37, -inf }
 0x3ca   : > { %v982_v29 = vsel %vm960_vm9, %v958_v27, -inf }
 0x3cb   : > { %983 = vmax.xlane.f32.xlu2 %v982_v29  ;;  %968 = vmax.xlane.f32.xlu1 %v967_v30 }
 0x3d3   : > { %971 = vmax.xlane.f32.xlu2 %v970_v33 }
 0x3db   : > { %974 = vmax.xlane.f32.xlu2 %v973_v35 }
 0x3e3   : > { %977 = vmax.xlane.f32.xlu2 %v976_v38 }
 0x3e4   : > { %795 = vrot.lane.b32.xlu1 %v3133_v12, %s2853_s14  ;;  %v1080_v12 = vunpack.c.l.b16 %v788_v47 }
 0x3fb   : > { %797 = vrot.lane.b32.xlu2 %v3135_v14, %s2853_s14 }
 0x412   : > { %v963_v39 = vpop.xlane.xlu0 %962 }
 0x413   : > { %v985_v40 = vsub.f32 %v896_v13, %v963_v39 }
 0x415   : > { %v993_v41 = vmul.f32 1.442695, %v985_v40 }
 0x417   : > { %2506 = vpow2.f32 %v993_v41 }
 0x41a   : > { %v966_v42 = vpop.xlane.xlu1 %965 }
 0x41b   : > { %v986_v43 = vsub.f32 %v898_v19, %v966_v42 }
 0x41d   : > { %v995_v44 = vmul.f32 1.442695, %v986_v43  ;;  %v2507_v46 = vpop.eup %2506 }
 0x41e   : > { %v1009_v48 = vsel %vm960_vm9, %v2507_v46, 0.0  ;;  %v1041_v49 = vpack.c.bf16 %v2507_v46, %v2507_v46 }
 0x41f   : > { %2508 = vpow2.f32 %v995_v44 }
 0x420   : > { %v1051_v54 = vunpack.c.l.b16 %v1041_v49 }
 0x424   : > { %1010 = vadd.xlane.f32.xlu2 %v1009_v48 }
 0x425   : > { %v2509_v50 = vpop.eup %2508  ;;  %v790_v51 = vpop.permute.xlu0 %789 }
 0x426   : > { %v1042_v52 = vpack.c.bf16 %v2509_v50, %v2509_v50  ;;  %v1081_v53 = vunpack.c.l.b16 %v790_v51  ;;  %v1012_v14 = vsel %vm960_vm9, %v2509_v50, 0.0 }
 0x427   : > { %1013 = vadd.xlane.f32.xlu0 %v1012_v14 }
 0x428   : > { %v1052_v55 = vunpack.c.l.b16 %v1042_v52  ;;  %v1082_v56 = vpack.c.b16 %v1081_v53, %v1080_v12 }
 0x42a   : > { %1094 = vmatpush.bf16.msra.mxu2 %v1082_v56  ;;  %v1053_v57 = vpack.c.b16 %v1052_v55, %v1051_v54 }
 0x42c   : > { %2122 = vmatmul.msk.bf16.vlgmr.msrb.gmra.mxu2 %vm960_vm9, %v1053_v57 }
 0x436   : > { %v981_v11 = vpop.xlane.xlu1 %980 }
 0x437   : > { %v991_v58 = vsub.f32 %v956_v23, %v981_v11 }
 0x439   : > { %v1005_v59 = vmul.f32 1.442695, %v991_v58 }
 0x43b   : > { %2510 = vpow2.f32 %v1005_v59 }
 0x43e   : > { %v984_v60 = vpop.xlane.xlu2 %983  ;;  %v969_v61 = vpop.xlane.xlu1 %968 }
 0x43f   : > { %v992_v15 = vsub.f32 %v958_v27, %v984_v60  ;;  %v987_v62 = vsub.f32 %v916_v25, %v969_v61  ;;  %v2855_v60 = vmov 1983009808  }
 0x440   : > { %v1167_v61 = vunpack.c.l.s4 %v2855_v60 }
 0x441   : > { %v2511_v63 = vpop.eup %2510  ;;  %v1007_v0 = vmul.f32 1.442695, %v992_v15  ;;  %v997_v2 = vmul.f32 1.442695, %v987_v62 }
 0x442   : > { %v1027_v1 = vsel %vm960_vm9, %v2511_v63, 0.0  ;;  %v1047_v30 = vpack.c.bf16 %v2511_v63, %v2511_v63 }
 0x443   : > { %2512 = vpow2.f32 %v1007_v0  ;;  %1028 = vadd.xlane.f32.xlu1 %v1027_v1 }
 0x444   : > { %2514 = vpow2.f32 %v997_v2  ;;  %v1129_v39 = vunpack.c.l.b16 %v1047_v30  ;;  %v3187_v2 = vunpack.c.0.s8 %v1167_v61 }
 0x446   : > { %v972_v3 = vpop.xlane.xlu2 %971 }
 0x447   : > { %v988_v4 = vsub.f32 %v918_v31, %v972_v3 }
 0x449   : > { %v2513_v5 = vpop.eup %2512  ;;  %v999_v6 = vmul.f32 1.442695, %v988_v4 }
 0x44a   : > { %v1030_v7 = vsel %vm960_vm9, %v2513_v5, 0.0  ;;  %v2515_v9 = vpop.eup %2514  ;;  %v1048_v28 = vpack.c.bf16 %v2513_v5, %v2513_v5 }
 0x44b   : > { %2516 = vpow2.f32 %v999_v6  ;;  %1031 = vadd.xlane.f32.xlu2 %v1030_v7  ;;  %v1043_v16 = vpack.c.bf16 %v2515_v9, %v2515_v9  ;;  %v1015_v41 = vsel %vm960_vm9, %v2515_v9, 0.0 }
 0x44d   : > { %v1077_v20 = vunpack.c.l.b16 %v1043_v16 }
 0x44e   : > { %v975_v10 = vpop.xlane.xlu2 %974 }
 0x44f   : > { %v989_v13 = vsub.f32 %v936_v34, %v975_v10  ;;  %v1130_v34 = vunpack.c.l.b16 %v1048_v28  ;;  %v2856_v10 = vmov 1934713408  }
 0x451   : > { %v2517_v17 = vpop.eup %2516  ;;  %v1001_v18 = vmul.f32 1.442695, %v989_v13  ;;  %v1131_v42 = vpack.c.b16 %v1130_v34, %v1129_v39  ;;  %v1191_v13 = vunpack.c.l.s4 %v2856_v10 }
 0x452   : > { %v1044_v19 = vpack.c.bf16 %v2517_v17, %v2517_v17  ;;  %v1018_v47 = vsel %vm960_vm9, %v2517_v17, 0.0 }
 0x453   : > { %2518 = vpow2.f32 %v1001_v18 }
 0x454   : > { %v1078_v21 = vunpack.c.l.b16 %v1044_v19 }
 0x456   : > { %v1079_v22 = vpack.c.b16 %v1078_v21, %v1077_v20  ;;  %v978_v23 = vpop.xlane.xlu2 %977  ;;  %v796_v29 = vpop.permute.xlu1 %795 }
 0x457   : > { %v990_v24 = vsub.f32 %v3166_v37, %v978_v23  ;;  %v1132_v32 = vunpack.c.l.b16 %v796_v29 }
 0x458   : > { %2123 = vmatmul.msk.bf16.vlgmr.msra.gmra.mxu2 %vm960_vm9, %v1079_v22 }
 0x459   : > { %v2519_v25 = vpop.eup %2518  ;;  %v1003_v26 = vmul.f32 1.442695, %v990_v24 }
 0x45a   : > { %v1021_v27 = vsel %vm960_vm9, %v2519_v25, 0.0  ;;  %v1045_v35 = vpack.c.bf16 %v2519_v25, %v2519_v25 }
 0x45b   : > { %2520 = vpow2.f32 %v1003_v26  ;;  %1022 = vadd.xlane.f32.xlu0 %v1021_v27  ;;  %v3194_v27 = vunpack.c.0.s8 %v1191_v13 }
 0x45c   : > { %v1103_v43 = vunpack.c.l.b16 %v1045_v35 }
 0x45e   : > { %v798_v31 = vpop.permute.xlu2 %797 }
 0x45f   : > { %v1133_v33 = vunpack.c.l.b16 %v798_v31 }
 0x461   : > { %v2521_v36 = vpop.eup %2520  ;;  %v1134_v38 = vpack.c.b16 %v1133_v33, %v1132_v32 }
 0x462   : > { %v1046_v37 = vpack.c.bf16 %v2521_v36, %v2521_v36  ;;  %v1024_v40 = vsel %vm960_vm9, %v2521_v36, 0.0 }
 0x463   : > { %1025 = vadd.xlane.f32.xlu1 %v1024_v40  ;;  %1146 = vmatpush.bf16.msra.mxu0 %v1134_v38 }
 0x464   : > { %v1104_v44 = vunpack.c.l.b16 %v1046_v37  ;;  %1016 = vadd.xlane.f32.xlu0 %v1015_v41 }
 0x466   : > { %v1105_v46 = vpack.c.b16 %v1104_v44, %v1103_v43  ;;  %2125 = vmatmul.msk.bf16.vlgmr.msra.gmra.mxu0 %vm960_vm9, %v1131_v42 }
 0x468   : > { %2124 = vmatmul.msk.bf16.vlgmr.msrb.gmra.mxu3 %vm960_vm9, %v1105_v46 }
 0x46b   : > { %1019 = vadd.xlane.f32.xlu1 %v1018_v47 }
 0x497   : > { %v1011_v14 = vpop.xlane.xlu2 %1010 }
 0x49a   : > { %v1014_v48 = vpop.xlane.xlu0 %1013 }
 0x4af   : > { %v1070_v49 = vpop.f32.mrf.mxu2 }
 0x4b6   : > { %v1029_v50 = vpop.xlane.xlu1 %1028 }
 0x4b7   : > { %v1072_v12 = vpop.f32.mrf.mxu2 }
 0x4be   : > { %v1032_v57 = vpop.xlane.xlu2 %1031 }
 0x4ce   : > { %v1023_v51 = vpop.xlane.xlu0 %1022 }
 0x4d6   : > { %v1026_v52 = vpop.xlane.xlu1 %1025 }
 0x4d7   : > { %v1017_v53 = vpop.xlane.xlu0 %1016 }
 0x4d8   : > { %2522 = vrcp.f32 %v1017_v53 }
 0x4d9   : > { %2524 = vrcp.f32 %v1029_v50 }
 0x4db   : > { %v1096_v54 = vpop.f32.mrf.mxu2 }
 0x4de   : > { %v1020_v55 = vpop.xlane.xlu1 %1019  ;;  %v2523_v56 = vpop.eup %2522 }
 0x4df   : > { %2526 = vrcp.f32 %v1020_v55  ;;  %v1155_v11 = vmul.f32 %v2523_v56, %v1096_v54  ;;  %v2525_v58 = vpop.eup %2524 }
 0x4e0   : > { %2528 = vrcp.f32 %v1011_v14 }
 0x4e1   : > { %2530 = vrcp.f32 %v1032_v57  ;;  %v1176_v63 = vrot.slane %v1155_v11, 4 }
 0x4e2   : > { %2532 = vrcp.f32 %v1023_v51 }
 0x4e3   : > { %v1148_v59 = vpop.f32.mrf.mxu0  ;;  %v1098_v4 = vpop.f32.mrf.mxu2  ;;  %2534 = vrcp.f32 %v1014_v48 }
 0x4e4   : > { %v1159_v15 = vmul.f32 %v2525_v58, %v1148_v59  ;;  %2536 = vrcp.f32 %v1026_v52  ;;  %v2324_v52 = vld [vmem:[#allocation10 + $0x38] sm:$0xff] }
 0x4e5   : > { %v2527_v62 = vpop.eup %2526  ;;  %1480 = vmatpush.bf16.msrb.mxu1 %v2324_v52 }
 0x4e6   : > { %v1174_v0 = vrot.slane %v1159_v15, 4  ;;  %v2529_v1 = vpop.eup %2528  ;;  %v1177_v5 = vsel %vm1162_vm11, %v1159_v15, %v1176_v63  ;;  %v1156_v6 = vmul.f32 %v2527_v62, %v1098_v4 }
 0x4e7   : > { %v1153_v3 = vmul.f32 %v2529_v1, %v1070_v49  ;;  %v2531_v7 = vpop.eup %2530  ;;  %v1185_v17 = vperm.slane %v1177_v5, %v3187_v2 }
 0x4e8   : > { %v1175_v9 = vsel %vm1162_vm11, %v1174_v0, %v1155_v11  ;;  %v2533_v16 = vpop.eup %2532  ;;  %v1232_v23 = vrot.slane %v1156_v6, 4 }
 0x4e9   : > { %v1164_v20 = vrot.slane %v1153_v3, 4  ;;  %v1181_v24 = vperm.slane %v1175_v9, %v3187_v2  ;;  %v2535_v29 = vpop.eup %2534  ;;  %v1198_v30 = vrot.slane %v1185_v17, 4 }
 0x4ea   : > { %v1154_v33 = vmul.f32 %v2535_v29, %v1072_v12  ;;  %v2537_v42 = vpop.eup %2536 }
 0x4eb   : > { %v1122_v18 = vpop.f32.mrf.mxu3  ;;  %v1150_v19 = vpop.f32.mrf.mxu0  ;;  %v1186_v36 = vrot.slane %v1181_v24, 4 }
 0x4ec   : > { %v1157_v21 = vmul.f32 %v2533_v16, %v1122_v18  ;;  %v1160_v22 = vmul.f32 %v2531_v7, %v1150_v19  ;;  %v1220_v53 = vrot.slane %v1154_v33, 4 }
 0x4ee   : > { %v1161_v25 = vrot.slane %v1157_v21, 4  ;;  %v1165_v26 = vsel %vm1162_vm11, %v1157_v21, %v1164_v20  ;;  %v1230_v28 = vrot.slane %v1160_v22, 4  ;;  %v1233_v32 = vsel %vm1162_vm11, %v1160_v22, %v1232_v23 }
 0x4ef   : > { %v1173_v31 = vperm.slane %v1165_v26, %v3187_v2  ;;  %v1241_v41 = vperm.slane %v1233_v32, %v3187_v2 }
 0x4f0   : > { %v1163_v34 = vsel %vm1162_vm11, %v1161_v25, %v1153_v3  ;;  %v1231_v35 = vsel %vm1162_vm11, %v1230_v28, %v1156_v6 }
 0x4f1   : > { %v1169_v38 = vperm.slane %v1163_v34, %v3187_v2  ;;  %v1199_v39 = vsel %vm1162_vm11, %v1198_v30, %v1173_v31  ;;  %v1200_v37 = vrot.slane %v1173_v31, 4  ;;  %v1237_v47 = vperm.slane %v1231_v35, %v3187_v2 }
 0x4f2   : > { %v1205_v40 = vperm.slane %v1199_v39, %v3194_v27  ;;  %v1254_v11 = vrot.slane %v1241_v41, 4 }
 0x4f3   : > { %v1187_v43 = vsel %vm1162_vm11, %v1186_v36, %v1169_v38  ;;  %v1188_v44 = vrot.slane %v1169_v38, 4  ;;  %v1201_v46 = vsel %vm1162_vm11, %v1185_v17, %v1200_v37  ;;  %v1124_v48 = vpop.f32.mrf.mxu3  ;;  %v1242_v57 = vrot.slane %v1237_v47, 4 }
 0x4f4   : > { %v1193_v49 = vperm.slane %v1187_v43, %v3194_v27  ;;  %v1209_v50 = vperm.slane %v1201_v46, %v3194_v27  ;;  %v1214_v51 = vrot.slane %v1205_v40, 4  ;;  %v1158_v12 = vmul.f32 %v2537_v42, %v1124_v48 }
 0x4f5   : > { %v1189_v14 = vsel %vm1162_vm11, %v1181_v24, %v1188_v44 }
 0x4f6   : > { %v1197_v54 = vperm.slane %v1189_v14, %v3194_v27  ;;  %v1210_v55 = vrot.slane %v1193_v49, 4  ;;  %v1216_v56 = vrot.slane %v1209_v50, 4  ;;  %v1218_v58 = vrot.slane %v1158_v12, 4 }
 0x4f7   : > { %v1221_v59 = vsel %vm1162_vm11, %v1158_v12, %v1220_v53  ;;  %v1215_v61 = vsel %vm1162_vm11, 0.0, %v1214_v51 }
 0x4f8   : > { %v1212_v60 = vrot.slane %v1197_v54, 4  ;;  %v1217_v15 = vsel %vm1162_vm11, 0.0, %v1216_v56  ;;  %v1285_v62 = vsel %vm1162_vm11, %v1216_v56, %v1205_v40  ;;  %v1211_v63 = vsel %vm1162_vm11, 0.0, %v1210_v55 }
 0x4f9   : > { %v1290_v0 = vrot.slane %v1217_v15, 4  ;;  %v1219_v1 = vsel %vm1162_vm11, %v1218_v58, %v1154_v33  ;;  %v1229_v3 = vperm.slane %v1221_v59, %v3187_v2  ;;  %v1289_v5 = vperm.slane %v1285_v62, %v3187_v2 }
 0x4fa   : > { %v1213_v4 = vsel %vm1162_vm11, 0.0, %v1212_v60  ;;  %v1225_v6 = vperm.slane %v1219_v1, %v3187_v2  ;;  %v1274_v7 = vsel %vm1162_vm11, %v1212_v60, %v1193_v49 }
 0x4fb   : > { %v1279_v9 = vrot.slane %v1213_v4, 4  ;;  %v1291_v10 = vsel %vm1162_vm11, %v1290_v0, %v1215_v61  ;;  %v1255_v13 = vsel %vm1162_vm11, %v1254_v11, %v1229_v3  ;;  %v1256_v16 = vrot.slane %v1229_v3, 4 }
 0x4fc   : > { %v1243_v17 = vsel %vm1162_vm11, %v1242_v57, %v1225_v6  ;;  %v1244_v18 = vrot.slane %v1225_v6, 4  ;;  %v1261_v19 = vperm.slane %v1255_v13, %v3194_v27  ;;  %v1278_v20 = vperm.slane %v1274_v7, %v3187_v2 }
 0x4fd   : > { %v1249_v21 = vperm.slane %v1243_v17, %v3194_v27  ;;  %v1257_v22 = vsel %vm1162_vm11, %v1241_v41, %v1256_v16  ;;  %v1280_v23 = vsel %vm1162_vm11, %v1279_v9, %v1211_v63  ;;  %v1295_v24 = vperm.slane %v1291_v10, %v3187_v2 }
 0x4fe   : > { %v1245_v25 = vsel %vm1162_vm11, %v1237_v47, %v1244_v18  ;;  %v1265_v26 = vperm.slane %v1257_v22, %v3194_v27  ;;  %v1270_v28 = vrot.slane %v1261_v19, 4  ;;  %v1284_v29 = vperm.slane %v1280_v23, %v3187_v2 }
 0x4ff   : > { %v1253_v30 = vperm.slane %v1245_v25, %v3194_v27  ;;  %v1298_v31 = vrot.slane %v1278_v20, 4  ;;  %v1310_v32 = vrot.slane %v1289_v5, 4  ;;  %v1266_v33 = vrot.slane %v1249_v21, 4 }
 0x500   : > { %v1272_v34 = vrot.slane %v1265_v26, 4  ;;  %v1296_v38 = vrot.slane %v1284_v29, 4  ;;  %v1308_v39 = vrot.slane %v1295_v24, 4  ;;  %v1271_v37 = vsel %vm1162_vm11, 0.0, %v1270_v28 }
 0x501   : > { %v1268_v35 = vrot.slane %v1253_v30, 4  ;;  %v1311_v36 = vsel %vm1162_vm11, %v1295_v24, %v1310_v32  ;;  %v1299_v42 = vsel %vm1162_vm11, %v1284_v29, %v1298_v31  ;;  %v1267_v48 = vsel %vm1162_vm11, 0.0, %v1266_v33  ;;  %v2322_v30 = vld [vmem:[#allocation10 + $0x28] sm:$0xff]  ;;  %v2321_v31 = vld [vmem:[#allocation10 + $0x20] sm:$0xff]  ;;  %v2320_v32 = vld [vmem:[#allocation10 + $0x18] sm:$0xff] }
 0x502   : > { %v1273_v40 = vsel %vm1162_vm11, 0.0, %v1272_v34  ;;  %v1339_v41 = vsel %vm1162_vm11, %v1272_v34, %v1261_v19  ;;  %v1319_v50 = vperm.slane %v1311_v36, %v3194_v27  ;;  %v1297_v53 = vsel %vm1162_vm11, %v1296_v38, %v1278_v20  ;;  %v2319_v33 = vld [vmem:[#allocation10 + $0x10] sm:$0xff]  ;;  %v2318_v34 = vld [vmem:[#allocation10 + $0x8] sm:$0xff] }
 0x503   : > { %v1269_v43 = vsel %vm1162_vm11, 0.0, %v1268_v35  ;;  %v1343_v44 = vperm.slane %v1339_v41, %v3187_v2  ;;  %v1344_v46 = vrot.slane %v1273_v40, 4  ;;  %v1328_v47 = vsel %vm1162_vm11, %v1268_v35, %v1249_v21  ;;  %v2317_v35 = vld [vmem:[#allocation10] sm:$0xff] }
 0x504   : > { %v1333_v49 = vrot.slane %v1269_v43, 4  ;;  %v1332_v51 = vperm.slane %v1328_v47, %v3187_v2  ;;  %v1309_v14 = vsel %vm1162_vm11, %v1308_v39, %v1289_v5  ;;  %v1307_v54 = vperm.slane %v1299_v42, %v3194_v27 }
 0x505   : > { %v1345_v12 = vsel %vm1162_vm11, %v1344_v46, %v1271_v37  ;;  %v1364_v52 = vrot.slane %v1343_v44, 4  ;;  %v1303_v58 = vperm.slane %v1297_v53, %v3194_v27  ;;  %v1315_v59 = vperm.slane %v1309_v14, %v3194_v27 }
 0x506   : > { %v1334_v55 = vsel %vm1162_vm11, %v1333_v49, %v1267_v48  ;;  %v1349_v56 = vperm.slane %v1345_v12, %v3187_v2  ;;  %v1352_v57 = vrot.slane %v1332_v51, 4  ;;  %v1324_v60 = vrot.slane %v1319_v50, 4 }
 0x507   : > { %v1338_v11 = vperm.slane %v1334_v55, %v3187_v2  ;;  %v1320_v0 = vrot.slane %v1315_v59, 4  ;;  %v1326_v3 = vrot.slane %v1307_v54, 4  ;;  %v1322_v17 = vrot.slane %v1303_v58, 4 }
 0x508   : > { %v1365_v61 = vsel %vm1162_vm11, %v1349_v56, %v1364_v52  ;;  %v1362_v15 = vrot.slane %v1349_v56, 4  ;;  %v1325_v9 = vsel %vm1162_vm11, %v1324_v60, %v1307_v54  ;;  %v1431_v52 = vperm.slane %v3119_v45, 4  ;;  %v2542_v54 = vld [vmem:[%s3077_s25] sm:$0xff] }
 0x509   : > { %v1353_v62 = vsel %vm1162_vm11, %v1338_v11, %v1352_v57  ;;  %v1373_v63 = vperm.slane %v1365_v61, %v3194_v27  ;;  %v1350_v4 = vrot.slane %v1338_v11, 4  ;;  %v1321_v7 = vsel %vm1162_vm11, %v1320_v0, %v1303_v58  ;;  %v2543_v11 = vld [vmem:[%s3077_s25 + $0x8] sm:$0xff]  ;;  %s1855_s25 = sshll.u32 %s1852_s20, 4  ;;  %s1856_s25 = int_to_ptr.hbm [resolvable:$true] %s1855_s25 }
 0x50a   : > { %v1361_v1 = vperm.slane %v1353_v62, %v3194_v27  ;;  %v1363_v5 = vsel %vm1162_vm11, %v1362_v15, %v1343_v44  ;;  %v1327_v21 = vsel %vm1162_vm11, %v1319_v50, %v1326_v3  ;;  %v1323_v26 = vsel %vm1162_vm11, %v1315_v59, %v1322_v17  ;;  %v2340_v3 = vld [vmem:[#allocation11 + $0x74] sm:$0xf0]  ;;  %s2769_s17 = sshra.s32 %s1856_s25, 4  ;;  %s2770_s17 = int_to_ptr.hbm [resolvable:$true] %s2769_s17 }
 0x50b   : > { %v1378_v2 = vrot.slane %v1373_v63, 4  ;;  %v1369_v6 = vperm.slane %v1363_v5, %v3194_v27  ;;  %v1351_v13 = vsel %vm1162_vm11, %v1350_v4, %v1332_v51  ;;  %v2339_v4 = vld [vmem:[#allocation11 + $0x74] sm:$0xf]  ;;  %s2771_s21 = scalar_lea.hbm %s2770_s17, 16  ;;  %p2776_p7 = scmp.lt.s32.totalorder %s2770_s17, %s3355_s9 }
 0x50c   : > { %v1380_v10 = vrot.slane %v1361_v1, 4  ;;  %v1357_v18 = vperm.slane %v1351_v13, %v3194_v27  ;;  %v2323_v27 = vld [vmem:[#allocation10 + $0x30] sm:$0xff]  ;;  %p2772_p1 = scmp.ne.s32.totalorder %s2770_s17, %s2771_s21  ;;  %p2777_p9 = scmp.lt.s32.totalorder %s2775_s13, %s2771_s21 }
 0x50d   : > { %v1379_v16 = vsel %vm1162_vm11, %v1378_v2, %v1361_v1  ;;  %v1374_v19 = vrot.slane %v1369_v6, 4  ;;  %1481 = vmatpush.bf16.msrb.mxu1 %v2323_v27  ;;  %v2216_v1 = vld [vmem:[#allocation11 + $0x70] sm:$0xf]  ;;  %v2218_v2 = vld [vmem:[#allocation11 + $0x78] sm:$0xf0] }
 0x50e   : > { %v2490_v20 = vpack.i.bf16 %v1379_v16, %v1325_v9  ;;  %v1381_v22 = vsel %vm1162_vm11, %v1373_v63, %v1380_v10  ;;  %v1376_v24 = vrot.slane %v1357_v18, 4  ;;  %v2217_v5 = vor.u32 %v2340_v3, %v2216_v1  ;;  %v2338_v9 = vld [vmem:[#allocation11 + $0x64] sm:$0xf0]  ;;  %v2337_v10 = vld [vmem:[#allocation11 + $0x64] sm:$0xf]  ;;  %p2773_p3 = pnand %p2772_p1, %p3008_p0  ;;  %p2778_p4 = por %p2777_p9, %p2776_p7 }
 0x50f   : > { %v2495_v23 = vpack.i.bf16 %v1381_v22, %v1327_v21  ;;  %v1375_v25 = vsel %vm1162_vm11, %v1374_v19, %v1357_v18  ;;  %v2210_v16 = vld [vmem:[#allocation11 + $0x68] sm:$0xf0]  ;;  %v2200_v18 = vld [vmem:[#allocation11 + $0x50] sm:$0xf]  ;;  %v2336_v19 = vld [vmem:[#allocation11 + $0x54] sm:$0xf0] }
 0x510   : > { %2491 = vrot.lane.b32.xlu0 %v2490_v20, %s2851_s19  ;;  %v1377_v28 = vsel %vm1162_vm11, %v1369_v6, %v1376_v24  ;;  %v2221_v6 = vor.u32 %v2339_v4, %v2218_v2  ;;  %1645 = vmatpush.bf16.msrb.mxu2 %v2217_v5  ;;  %v2213_v17 = vor.u32 %v2337_v10, %v2210_v16  ;;  %v2335_v20 = vld [vmem:[#allocation11 + $0x54] sm:$0xf]  ;;  %v2202_v22 = vld [vmem:[#allocation11 + $0x58] sm:$0xf0]  ;;  %v2192_v24 = vld [vmem:[#allocation11 + $0x40] sm:$0xf]  ;;  %p2774_p13 = pneg %p2773_p3 }
 0x511   : > { %2496 = vrot.lane.b32.xlu1 %v2495_v23, %s2852_s23  ;;  %v2485_v29 = vpack.i.bf16 %v1377_v28, %v1323_v26  ;;  %1482 = vmatpush.bf16.msrb.mxu1 %v2322_v30  ;;  %v2201_v21 = vor.u32 %v2336_v19, %v2200_v18  ;;  %v2205_v23 = vor.u32 %v2335_v20, %v2202_v22  ;;  %v2333_v26 = vld [vmem:[#allocation11 + $0x44] sm:$0xf]  ;;  %v2184_v30 = vld [vmem:[#allocation11 + $0x30] sm:$0xf]  ;;  %v2346_v3 = vld [vmem:[#allocation13 + $0x28] sm:$0xff] }
 0x512   : > { %1659 = vmatpush.bf16.msra.mxu3 %v2221_v6  ;;  %v2354_v5 = vld [vmem:[#allocation13 + $0x68] sm:$0xff]  ;;  %v2345_v6 = vld [vmem:[#allocation13 + $0x20] sm:$0xff]  ;;  %p2779_p8 = pnand %p2778_p4, %p2774_p13 }
 0x513   : > { %2486 = vrot.lane.b32.xlu2 %v2485_v29, %s2853_s14  ;;  %v2194_v29 = vld [vmem:[#allocation11 + $0x48] sm:$0xf0] }
 0x514   : > { %v2197_v27 = vor.u32 %v2333_v26, %v2194_v29 }
 0x515   : > { %1483 = vmatpush.bf16.msrb.mxu1 %v2321_v31  ;;  %v2332_v31 = vld [vmem:[#allocation11 + $0x34] sm:$0xf0] }
 0x516   : > { %1660 = vmatpush.bf16.msra.mxu3 %v2213_v17 }
 0x519   : > { %1484 = vmatpush.bf16.msrb.mxu1 %v2320_v32  ;;  %v2331_v32 = vld [vmem:[#allocation11 + $0x34] sm:$0xf] }
 0x51a   : > { %1661 = vmatpush.bf16.msra.mxu3 %v2205_v23 }
 0x51d   : > { %1485 = vmatpush.bf16.msrb.mxu1 %v2319_v33  ;;  %v2185_v33 = vor.u32 %v2332_v31, %v2184_v30 }
 0x51e   : > { %1662 = vmatpush.bf16.msra.mxu3 %v2197_v27 }
 0x521   : > { %1486 = vmatpush.bf16.msrb.mxu1 %v2318_v34  ;;  %v2186_v34 = vld [vmem:[#allocation11 + $0x38] sm:$0xf0] }
 0x525   : > { %1487 = vmatpush.bf16.msrb.mxu1 %v2317_v35  ;;  %v2189_v35 = vor.u32 %v2331_v32, %v2186_v34  ;;  %v2352_v32 = vld [vmem:[#allocation13 + $0x58] sm:$0xff]  ;;  %v2351_v34 = vld [vmem:[#allocation13 + $0x50] sm:$0xff] }
 0x527   : > { %1663 = vmatpush.bf16.msra.mxu3 %v2189_v35  ;;  %v2342_v35 = vld [vmem:[#allocation13 + $0x8] sm:$0xff] }
 0x56d   : > { %v2487_v36 = vpop.permute.xlu2 %2486 }
 0x56e   : > { %v2489_v38 = vunpack.i.h.bf16 %v2487_v36  ;;  %v2488_v39 = vunpack.i.l.bf16 %v2487_v36  ;;  %v2176_v36 = vld [vmem:[#allocation11 + $0x20] sm:$0xf] }
 0x570   : > { %v1407_v43 = vsel %vm882_vm7, %v1375_v25, %v2489_v38  ;;  %v1406_v44 = vsel %vm882_vm7, %v1321_v7, %v2488_v39  ;;  %v2208_v7 = vld [vmem:[#allocation11 + $0x60] sm:$0xf]  ;;  %v2334_v25 = vld [vmem:[#allocation11 + $0x44] sm:$0xf0]  ;;  %v2329_v39 = vld [vmem:[#allocation11 + $0x24] sm:$0xf] }
 0x571   : > { %v2209_v13 = vor.u32 %v2338_v9, %v2208_v7  ;;  %v2193_v28 = vor.u32 %v2334_v25, %v2192_v24  ;;  %v2330_v38 = vld [vmem:[#allocation11 + $0x24] sm:$0xf0] }
 0x573   : > { %1646 = vmatpush.bf16.msrb.mxu2 %v2209_v13 }
 0x577   : > { %1647 = vmatpush.bf16.msrb.mxu2 %v2201_v21  ;;  %v3300_v21 = vld [vmem:[#allocation7] sm:$0xff] }
 0x578   : > { %v1536_v22 = vperm.slane %v3300_v21, 2 }
 0x57b   : > { %1648 = vmatpush.bf16.msrb.mxu2 %v2193_v28  ;;  %v1539_v28 = vperm.slane %v3300_v21, 3 }
 0x57f   : > { %1649 = vmatpush.bf16.msrb.mxu2 %v2185_v33  ;;  %v2343_v33 = vld [vmem:[#allocation13 + $0x10] sm:$0xff] }
 0x582   : > { %v2492_v37 = vpop.permute.xlu0 %2491 }
 0x583   : > { %v2494_v40 = vunpack.i.h.bf16 %v2492_v37  ;;  %v2493_v41 = vunpack.i.l.bf16 %v2492_v37  ;;  %v2497_v42 = vpop.permute.xlu1 %2496  ;;  %v2177_v37 = vor.u32 %v2330_v38, %v2176_v36  ;;  %v2350_v36 = vld [vmem:[#allocation13 + $0x48] sm:$0xff]  ;;  %v2349_v38 = vld [vmem:[#allocation13 + $0x40] sm:$0xff] }
 0x584   : > { %v2499_v46 = vunpack.i.h.bf16 %v2497_v42  ;;  %v2498_v47 = vunpack.i.l.bf16 %v2497_v42  ;;  %v2328_v42 = vld [vmem:[#allocation11 + $0x14] sm:$0xf0] }
 0x585   : > { %v1409_v48 = vsel %vm1408_vm12, %v1406_v44, %v2493_v41  ;;  %v1410_v49 = vsel %vm1408_vm12, %v1407_v43, %v2494_v40  ;;  %v2178_v40 = vld [vmem:[#allocation11 + $0x28] sm:$0xf0]  ;;  %v2168_v41 = vld [vmem:[#allocation11 + $0x10] sm:$0xf]  ;;  %1650 = vmatpush.bf16.msrb.mxu2 %v2177_v37 }
 0x586   : > { %v1412_v50 = vsel %vm1411_vm13, %v1409_v48, %v2498_v47  ;;  %v1413_v51 = vsel %vm1411_vm13, %v1410_v49, %v2499_v46  ;;  %v2181_v44 = vor.u32 %v2329_v39, %v2178_v40  ;;  %v2327_v46 = vld [vmem:[#allocation11 + $0x14] sm:$0xf]  ;;  %v2170_v47 = vld [vmem:[#allocation11 + $0x18] sm:$0xf0]  ;;  %v2169_v49 = vor.u32 %v2328_v42, %v2168_v41  ;;  %v1559_v39 = vld [vmem:[%s3353_s7] sm:$0x3] }
 0x587   : > { %v1414_v12 = vpack.c.bf16 %v1413_v51, %v1412_v50  ;;  %v2173_v50 = vor.u32 %v2327_v46, %v2170_v47  ;;  %v2160_v51 = vld [vmem:[#allocation11] sm:$0xf]  ;;  %v1561_v41 = vperm.slane %v1559_v39, 0  ;;  %v1562_v42 = vperm.slane %v1559_v39, 1 }
 0x588   : > { %1664 = vmatpush.bf16.msra.mxu3 %v2181_v44 }
 0x589   : > { %1488 = vmatmul.bf16.vlgmr.msrb.gmra.mxu1 %v1414_v12  ;;  %v2326_v12 = vld [vmem:[#allocation11 + $0x4] sm:$0xf0]  ;;  %1651 = vmatpush.bf16.msrb.mxu2 %v2169_v49 }
 0x58c   : > { %1665 = vmatpush.bf16.msra.mxu3 %v2173_v50 }
 0x606   : > { %v1489_v53 = vpop.f32.mrf.mxu1 }
 0x607   : > { %v1490_v14 = vadd.f32 %v1489_v53, %v1431_v52  ;;  %v2325_v53 = vld [vmem:[#allocation11 + $0x4] sm:$0xf] }
 0x609   : > { %v3278_v55 = vadd.f32 %v2542_v54, %v1490_v14  ;;  %v2162_v14 = vld [vmem:[#allocation11 + $0x8] sm:$0xf0]  ;;  %v2161_v54 = vor.u32 %v2326_v12, %v2160_v51 }
 0x60b   : > { %1496 = vadd.xlane.f32.xlu0 %v3278_v55  ;;  %1652 = vmatpush.bf16.msrb.mxu2 %v2161_v54  ;;  %v1711_v54 = vperm.slane %v3300_v21, 5 }
 0x60e   : > { %v1491_v56 = vpop.f32.mrf.mxu1 }
 0x60f   : > { %v1492_v57 = vadd.f32 %v1491_v56, %v1431_v52  ;;  %v2165_v56 = vor.u32 %v2325_v53, %v2162_v14 }
 0x611   : > { %v3282_v58 = vadd.f32 %v2543_v11, %v1492_v57  ;;  %v2348_v57 = vld [vmem:[#allocation13 + $0x38] sm:$0xff]  ;;  %1666 = vmatpush.bf16.msra.mxu3 %v2165_v56 }
 0x612   : > { %v2356_v11 = vld [vmem:[#allocation13 + $0x78] sm:$0xff]  ;;  %1808 = vmatpush.bf16.msrb.mxu0 %v2348_v57 }
 0x613   : > { %1498 = vadd.xlane.f32.xlu2 %v3282_v58  ;;  %1822 = vmatpush.bf16.msra.mxu1 %v2356_v11 }
 0x67e   : > { %v1497_v59 = vpop.xlane.xlu0 %1496 }
 0x67f   : > { %v1500_v60 = vmul.f32 %v1497_v59, %v3105_v8 }
 0x681   : > { %v3287_v61 = vsub.f32 %v3278_v55, %v1500_v60 }
 0x683   : > { %v1504_v45 = vmul.f32 %v3287_v61, %v3287_v61 }
 0x685   : > { %1506 = vadd.xlane.f32.xlu1 %v1504_v45  ;;  %v2347_v45 = vld [vmem:[#allocation13 + $0x30] sm:$0xff] }
 0x686   : > { %v1499_v15 = vpop.xlane.xlu2 %1498  ;;  %1809 = vmatpush.bf16.msrb.mxu0 %v2347_v45 }
 0x687   : > { %v1501_v62 = vmul.f32 %v1499_v15, %v3105_v8  ;;  %v2355_v15 = vld [vmem:[#allocation13 + $0x70] sm:$0xff] }
 0x688   : > { %1823 = vmatpush.bf16.msra.mxu1 %v2355_v15 }
 0x689   : > { %v3293_v63 = vsub.f32 %v3282_v58, %v1501_v62 }
 0x68a   : > { %1810 = vmatpush.bf16.msrb.mxu0 %v2346_v3 }
 0x68b   : > { %v1505_v0 = vmul.f32 %v3293_v63, %v3293_v63 }
 0x68c   : > { %1824 = vmatpush.bf16.msra.mxu1 %v2354_v5 }
 0x68d   : > { %1508 = vadd.xlane.f32.xlu2 %v1505_v0 }
 0x68e   : > { %1811 = vmatpush.bf16.msrb.mxu0 %v2345_v6 }
 0x6f8   : > { %v1507_v43 = vpop.xlane.xlu1 %1506 }
 0x6f9   : > { %v1510_v48 = vmul.f32 %v1507_v43, %v3105_v8 }
 0x6fb   : > { %v1512_v52 = vadd.f32 1e-05, %v1510_v48 }
 0x6fd   : > { %2538 = vrsqrt.f32 %v1512_v52  ;;  %vm1520_vm15 = vweird.f32 %v1512_v52 }
 0x700   : > { %v1509_v59 = vpop.xlane.xlu2 %1508 }
 0x701   : > { %v1511_v60 = vmul.f32 %v1509_v59, %v3105_v8  ;;  %v2353_v8 = vld [vmem:[#allocation13 + $0x60] sm:$0xff] }
 0x702   : > { %1825 = vmatpush.bf16.msra.mxu1 %v2353_v8 }
 0x703   : > { %v2539_v62 = vpop.eup %2538  ;;  %v1513_v0 = vadd.f32 1e-05, %v1511_v60 }
 0x704   : > { %v1515_v1 = vmul.f32 %v2539_v62, %v1512_v52  ;;  %vm1521_vm14 = vweird.f32 %v2539_v62 }
 0x705   : > { %2540 = vrsqrt.f32 %v1513_v0  ;;  %vm1522_vm0 = vmor %vm1520_vm15, %vm1521_vm14  ;;  %vm1530_vm2 = vweird.f32 %v1513_v0 }
 0x706   : > { %v1516_v4 = vmul.f32 %v2539_v62, %v1515_v1  ;;  %1826 = vmatpush.bf16.msra.mxu1 %v2352_v32 }
 0x708   : > { %v1517_v2 = vmul.f32 0.5, %v1516_v4 }
 0x70a   : > { %v1518_v7 = vsub.f32 1.5, %v1517_v2  ;;  %1827 = vmatpush.bf16.msra.mxu1 %v2351_v34 }
 0x70b   : > { %v2541_v9 = vpop.eup %2540 }
 0x70c   : > { %v1519_v10 = vmul.f32 %v2539_v62, %v1518_v7  ;;  %v1525_v13 = vmul.f32 %v2541_v9, %v1513_v0  ;;  %vm1531_vm1 = vweird.f32 %v2541_v9 }
 0x70d   : > { %vm1532_vm3 = vmor %vm1530_vm2, %vm1531_vm1 }
 0x70e   : > { %v1526_v16 = vmul.f32 %v2541_v9, %v1525_v13  ;;  %v1523_v17 = vsel %vm1522_vm0, %v2539_v62, %v1519_v10  ;;  %1828 = vmatpush.bf16.msra.mxu1 %v2350_v36 }
 0x70f   : > { %v1534_v20 = vmul.f32 %v1523_v17, %v3287_v61  ;;  %v2344_v61 = vld [vmem:[#allocation13 + $0x18] sm:$0xff] }
 0x710   : > { %v1527_v18 = vmul.f32 0.5, %v1526_v16  ;;  %1812 = vmatpush.bf16.msrb.mxu0 %v2344_v61 }
 0x711   : > { %v1537_v26 = vmul.f32 %v1536_v22, %v1534_v20 }
 0x712   : > { %v1528_v19 = vsub.f32 1.5, %v1527_v18  ;;  %1829 = vmatpush.bf16.msra.mxu1 %v2349_v38 }
 0x713   : > { %v1540_v27 = vadd.f32 %v1539_v28, %v1537_v26 }
 0x714   : > { %v1529_v23 = vmul.f32 %v2541_v9, %v1528_v19  ;;  %1813 = vmatpush.bf16.msrb.mxu0 %v2343_v33 }
 0x716   : > { %v1533_v24 = vsel %vm1532_vm3, %v2541_v9, %v1529_v23 }
 0x717   : > { %v1535_v25 = vmul.f32 %v1533_v24, %v3293_v63  ;;  %v2341_v63 = vld [vmem:[#allocation13] sm:$0xff] }
 0x718   : > { %1814 = vmatpush.bf16.msrb.mxu0 %v2342_v35 }
 0x719   : > { %v1538_v29 = vmul.f32 %v1536_v22, %v1535_v25 }
 0x71b   : > { %v1541_v30 = vadd.f32 %v1539_v28, %v1538_v29 }
 0x71c   : > { %1815 = vmatpush.bf16.msrb.mxu0 %v2341_v63 }
 0x71d   : > { %v1542_v31 = vpack.c.bf16 %v1541_v30, %v1540_v27 }
 0x71f   : > { %1653 = vmatmul.bf16.vlgmr.msrb.gmra.mxu2 %v1542_v31  ;;  %1667 = vmatmul.bf16.vlgmr.msra.gmra.mxu3 %v1542_v31 }
 0x7a2   : > { %v1654_v37 = vpop.f32.mrf.mxu2  ;;  %v1668_v40 = vpop.f32.mrf.mxu3 }
 0x7a3   : > { %v1655_v43 = vadd.f32 %v1654_v37, %v1561_v41  ;;  %v1669_v44 = vadd.f32 %v1668_v40, %v1562_v42 }
 0x7a5   : > { %v1673_v50 = vmax.f32 %v1655_v43, 0.0  ;;  %v1674_v51 = vmax.f32 %v1669_v44, 0.0 }
 0x7aa   : > { %v1656_v46 = vpop.f32.mrf.mxu2  ;;  %v1670_v47 = vpop.f32.mrf.mxu3 }
 0x7ab   : > { %v1657_v48 = vadd.f32 %v1656_v46, %v1561_v41  ;;  %v1671_v49 = vadd.f32 %v1670_v47, %v1562_v42 }
 0x7ad   : > { %v1675_v12 = vmax.f32 %v1657_v48, 0.0  ;;  %v1676_v52 = vmax.f32 %v1671_v49, 0.0 }
 0x7af   : > { %v1677_v53 = vpack.c.bf16 %v1675_v12, %v1673_v50  ;;  %v1678_v14 = vpack.c.bf16 %v1676_v52, %v1674_v51 }
 0x7b1   : > { %1816 = vmatmul.bf16.vlgmr.msrb.gmra.mxu0 %v1677_v53  ;;  %1830 = vmatmul.bf16.vlgmr.msra.gmra.mxu1 %v1678_v14 }
 0x82e   : > { %v1817_v56 = vpop.f32.mrf.mxu0  ;;  %v1831_v57 = vpop.f32.mrf.mxu1 }
 0x82f   : > { %v1818_v11 = vadd.f32 %v1817_v56, %v1711_v54 }
 0x831   : > { %v1832_v59 = vadd.f32 %v1831_v57, %v1818_v11 }
 0x833   : > { %v1836_v60 = vadd.f32 %v1832_v59, %v3278_v55 }
 0x835   : > { %1838 = vst [vmem:[%s474_s11] sm:$0xff] %v1836_v60 }
 0x836   : > { %v1819_v45 = vpop.f32.mrf.mxu0  ;;  %v1833_v62 = vpop.f32.mrf.mxu1 }
 0x837   : > { %v1820_v15 = vadd.f32 %v1819_v45, %v1711_v54 }
 0x839   : > { %v1834_v0 = vadd.f32 %v1833_v62, %v1820_v15 }
 0x83b   : > { %v1837_v1 = vadd.f32 %v1834_v0, %v3282_v58 }
 0x83d   : > { %1839 = vst [vmem:[%s474_s11 + $0x8] sm:$0xff] %v1837_v1 }
 0x83e   : > { %2782 = shalt.err (!%p2779_p8)
}
 0x83f   : > { %s2857_s28 = smov 128   ;;  %s2858_s19 = smov 8  }
 0x840   : > { %2386 = dma.vmem_to_hbm [thread:$0]  (%p3008_p0), %s1854_s24, 256, %s1856_s25, %s1841_s16, %s2857_s28, %s2857_s28, %s2858_s19  }
 0x841 PF: > { %s1870_s23 = sand.u32 1, %s2825_s30   ;;  %p3387_p10 = scmp.ge.s32.totalorder %s2837_s12, 2 }
 0x842   : > { %s1871_s14 = scalar_lea.sflag [#allocation4], %s1870_s23 }
 0x843   : > { %p2412_p11 = pnand %p3387_p10, %p3016_p6 }
 0x845   : > { %p2413_p12 = pneg %p2412_p11 }
 0x847   : > { %2820 = dma.done.wait (%p2413_p12), %s1871_s14, 256  }
 0x848   : > { %2822 = vsyncadd (%p2413_p12), %s1871_s14, 4294967040  ;;  %s3388_s12 = sld [smem:[#allocation22_spill]]  ;;  %s3391_s30 = smov %s2829_s10 }
 0x849   : > { %s3389_s6 = sld [smem:[#allocation21_spill]] }
 0x84a   : > { %s3390_s11 = sld [smem:[#allocation23_spill]] }
 0x84e   : > { %p27_p2 = scmp.ge.s32.totalorder %s3388_s12, 4  }
 0x84f   : > { %s3392_s10 = smov %s3389_s6 }
 0x850   :  { %29 = sbr.rel (!%p27_p2) target bundleno = 15 (0xf), region = 134 }
 0x855   :  { %1877 = vsyncpa [#allocation3], 1 }
 0x856   :  { %1879 = vsyncpa [#allocation3 + $0x1], 1 }
 0x857   :  { %1880 = vsyncpa [#allocation6], 1 }
 0x858   :  { %1882 = vsyncpa [#allocation6 + $0x1], 1 }
 0x859   :  { %1883 = vsyncpa [#allocation9], 1 }
 0x85a   :  { %1884 = vsyncpa [#allocation12], 1 }
 0x85b   :  { %1885 = vsyncpa [#allocation4], 1 }
 0x85c   :  { %1887 = vsyncpa [#allocation4 + $0x1], 1 }

// kernel: tpu_custom_call.1
= control target key start
LH: loop header
LB: loop body
LE: loop exit
PB: predicated region body
PF: predicated region fallthrough
CT: control target
= control target key end

     0   :  { %s3346_s0 = inlined_call_operand.hbm [shape: f32[2,16,128], index: 0, kind: input, shape index: {}]   ;;  %s3347_s1 = inlined_call_operand.hbm [shape: bf16[2,16,16], index: 1, kind: input, shape index: {}]   ;;  %s3348_s2 = inlined_call_operand.hbm [shape: f32[8,128], index: 2, kind: input, shape index: {}]   ;;  %s3349_s3 = inlined_call_operand.hbm [shape: bf16[128,384], index: 3, kind: input, shape index: {}]   ;;  %s3350_s4 = inlined_call_operand.vmem [shape: f32[1,384], index: 4, kind: input, shape index: {}]   ;;  %s3351_s5 = inlined_call_operand.hbm [shape: bf16[128,128], index: 5, kind: input, shape index: {}]   ;;  %s3352_s6 = inlined_call_operand.hbm [shape: bf16[128,256], index: 6, kind: input, shape index: {}]   ;;  %s3353_s7 = inlined_call_operand.vmem [shape: f32[1,256], index: 7, kind: input, shape index: {}]   ;;  %s3354_s8 = inlined_call_operand.hbm [shape: bf16[256,128], index: 8, kind: input, shape index: {}]   ;;  %s3355_s9 = inlined_call_operand.hbm [shape: f32[2,16,128], index: 9, kind: output, shape index: {}]  }
   0x1   :  { %3363 = sst [smem:[#allocation24_spill]] %s3348_s2 }
   0x2   :  { %3364 = sst [smem:[#allocation25_spill]] %s3349_s3 }
   0x3   :  { %3365 = sst [smem:[#allocation26_spill]] %s3351_s5 }
   0x4   :  { %3366 = sst [smem:[#allocation27_spill]] %s3352_s6 }
   0x5   :  { %3367 = sst [smem:[#allocation28_spill]] %s3354_s8 }
   0x6   :  { %14 = vsyncpa [#allocation3], 0 }
   0x7   :  { %16 = vsyncpa [#allocation3 + $0x1], 0 }
   0x8   :  { %17 = vsyncpa [#allocation6], 0 }
   0x9   :  { %19 = vsyncpa [#allocation6 + $0x1], 0 }
   0xa   :  { %20 = vsyncpa [#allocation9], 0 }
   0xb   :  { %21 = vsyncpa [#allocation12], 0 }
   0xc   :  { %22 = vsyncpa [#allocation4], 0 }
   0xd   :  { %24 = vsyncpa [#allocation4 + $0x1], 0  ;;  %s2909_s30 = smov 0   ;;  %s2911_s10 = smov 0  }
   0xe   :  { %s2913_s11 = smov 0   ;;  %s2915_s12 = smov 0  }
   0xf LB: > { %3368 = sst [smem:[#allocation21_spill]] %s2833_s11  ;;  %s2933_s16 = sadd.s32 4294967295, %s2837_s12   ;;  %s2837_s12 = sphi %s2915_s12, %s3388_s12   ;;  %s2833_s11 = sphi %s2913_s11, %s3390_s11   ;;  %s2829_s10 = sphi %s2911_s10, %s3392_s10   ;;  %s2825_s30 = sphi %s2909_s30, %s3391_s30  }
  0x10   : > { %s3369_s2 = sld [smem:[#allocation24_spill]]  ;;  %p2000_p0 = scmp.ge.s32.totalorder %s2837_s12, 1 }
  0x11   : > { %p51_p1 = scmp.eq.s32.totalorder %s2933_s16, 0  ;;  %p260_p2 = scmp.lt.s32.totalorder %s2837_s12, 3 }
  0x12   : > { %s2839_s18 = smov [#allocation7]   ;;  %s3371_s3 = sld [smem:[#allocation25_spill]] }
  0x13   : > { %p2938_p3 = pnand %p2000_p0, %p260_p2  ;;  %s274_s19 = sshll.u32 %s2839_s18, 4  ;;  %s275_s19 = int_to_ptr.vmem [resolvable:$true] %s274_s19 }
  0x14   : > { %s2840_s24 = smov [#allocation8]   ;;  %s2841_s26 = smov 192  }
  0x15   : > { %p2388_p5 = pneg %p2938_p3  ;;  %s285_s25 = sshll.u32 %s2840_s24, 4  ;;  %s286_s25 = int_to_ptr.vmem [resolvable:$true] %s285_s25 }
  0x16   : > { %s272_s15 = sshll.u32 %s3369_s2, 4  ;;  %s2842_s27 = smov 12   ;;  %s273_s15 = int_to_ptr.hbm [resolvable:$true] %s272_s15 }
  0x17   : > { %p2950_p6 = pnand %p2388_p5, %p51_p1  ;;  %s3373_s6 = sld [smem:[#allocation27_spill]] }
  0x18   : > { %s283_s22 = sshll.u32 %s3371_s3, 4  ;;  %s2843_s14 = smov [#allocation11]   ;;  %s284_s22 = int_to_ptr.hbm [resolvable:$true] %s283_s22 }
  0x19   : > { %2391 = dma.hbm_to_vmem [thread:$0]  (!%p2950_p6), %s273_s15, 128, %s275_s19, [#allocation6]  }
  0x1a   : > { %2394 = dma.hbm_to_vmem [thread:$0]  (!%p2950_p6), %s284_s22, 3072, %s286_s25, [#allocation9], %s2841_s26, %s2841_s26, %s2842_s27  }
  0x1b   : > { %s316_s18 = sshll.u32 %s2843_s14, 4  ;;  %s3374_s5 = sld [smem:[#allocation26_spill]]  ;;  %s317_s18 = int_to_ptr.vmem [resolvable:$true] %s316_s18 }
  0x1c   : > { %s3358_s2 = smov 128   ;;  %s3359_s15 = smov 8  }
  0x1d   : > { %s314_s13 = sshll.u32 %s3373_s6, 4  ;;  %s2846_s19 = smov [#allocation10]   ;;  %s315_s13 = int_to_ptr.hbm [resolvable:$true] %s314_s13 }
  0x1e   : > { %2400 = dma.hbm_to_vmem [thread:$0]  (!%p2950_p6), %s315_s13, 2048, %s317_s18, [#allocation12], %s3358_s2, %s3358_s2, %s3359_s15  }
  0x1f   : > { %s302_s22 = sshll.u32 %s2846_s19, 4  ;;  %s3356_s25 = smov 64   ;;  %s303_s22 = int_to_ptr.vmem [resolvable:$true] %s302_s22 }
  0x20   : > { %s3357_s26 = smov 4   ;;  %s3375_s8 = sld [smem:[#allocation28_spill]] }
  0x21   : > { %s300_s24 = sshll.u32 %s3374_s5, 4  ;;  %s2849_s13 = smov [#allocation13]   ;;  %s301_s24 = int_to_ptr.hbm [resolvable:$true] %s300_s24 }
  0x22   : > { %2397 = dma.hbm_to_vmem [thread:$0]  (!%p2950_p6), %s301_s24, 1024, %s303_s22, [#allocation9], %s3356_s25, %s3356_s25, %s3357_s26  }
  0x23   : > { %s333_s14 = sshll.u32 %s2849_s13, 4  ;;  %s1999_s18 = sadd.s32 4294967294, %s2837_s12   ;;  %s334_s14 = int_to_ptr.vmem [resolvable:$true] %s333_s14 }
  0x24   : > { %s2984_s20 = sadd.s32 1, %s2837_s12   ;;  %s37_s21 = sadd.s32 1, %s2833_s11 }
  0x25   : > { %3376 = sst [smem:[#allocation22_spill]] %s2984_s20  ;;  %s34_s24 = ssub.s32 %s2837_s12, %s2984_s20 }
  0x26   : > { %s331_s29 = sshll.u32 %s3375_s8, 4  ;;  %p44_p7 = scmp.ne.s32.totalorder %s2833_s11, %s2829_s10  ;;  %s332_s29 = int_to_ptr.hbm [resolvable:$true] %s331_s29 }
  0x27   : > { %2403 = dma.hbm_to_vmem [thread:$0]  (!%p2950_p6), %s332_s29, 2048, %s334_s14, [#allocation12], %s3356_s25, %s3356_s25, %s3357_s26  }
  0x28   : > { %p35_p8 = scmp.eq.s32.totalorder %s34_s24, 0  ;;  %p45_p9 = scmp.eq.s32.totalorder %s2837_s12, 0 }
  0x29   : > { %p50_p10 = scmp.ne.s32.totalorder %s2829_s10, %s2825_s30  ;;  %p247_p11 = scmp.eq.s32.totalorder %s2933_s16, 1 }
  0x2a   : > { %s2996_s19 = scalar_select %p35_p8, %s2833_s11, %s37_s21  }
  0x2b   : > { %p2998_p12 = por %p45_p9, %p44_p7  ;;  %p3004_p13 = por %p51_p1, %p50_p10 }
  0x2c   : > { %3377 = sst [smem:[#allocation23_spill]] %s2996_s19  ;;  %p3008_p0 = por %p247_p11, %p44_p7 }
  0x2d   : > { %p253_p2 = scmp.eq.s32.totalorder %s1999_s18, 1  ;;  %p2420_p5 = scmp.lt.s32.totalorder %s2837_s12, 2 }
  0x2e   : > { %s3014_s28 = sand.u32 1, %s2833_s11   ;;  %s2291_s14 = sshll.u32 %s2837_s12, 4 }
  0x2f   : > { %p3016_p6 = por %p253_p2, %p50_p10  ;;  %s2007_s13 = sshll.u32 %s3014_s28, 4 }
  0x30   : > { %s356_s25 = scalar_lea.hbm %s3346_s0, %s2291_s14  ;;  %s351_s2 = scalar_lea.vmem [#allocation2], %s2007_s13 }
  0x31   : > { %s357_s26 = sshll.u32 %s356_s25, 4  ;;  %s359_s15 = sshll.u32 %s351_s2, 4  ;;  %s358_s26 = int_to_ptr.hbm [resolvable:$true] %s357_s26  ;;  %s360_s15 = int_to_ptr.vmem [resolvable:$true] %s359_s15 }
  0x32   : > { %p3027_p7 = pnand %p2420_p5, %p2998_p12  ;;  %s369_s3 = sand.u32 1, %s2837_s12  }
  0x33   : > { %s2010_s5 = sshll.u32 %s3014_s28, 3  ;;  %s348_s6 = scalar_lea.sflag [#allocation3], %s3014_s28 }
  0x34   : > { %s2695_s8 = sshra.s32 %s358_s26, 4  ;;  %p2699_p9 = pneg %p3027_p7  ;;  %s2696_s8 = int_to_ptr.hbm [resolvable:$true] %s2695_s8 }
  0x35   : > { %s2697_s19 = scalar_lea.hbm %s2696_s8, 16  ;;  %s2702_s23 = scalar_lea.hbm %s3346_s0, 32 }
  0x36   : > { %p2698_p8 = scmp.ne.s32.totalorder %s2696_s8, %s2697_s19  ;;  %p2703_p12 = scmp.lt.s32.totalorder %s2696_s8, %s3346_s0 }
  0x37   : > { %p2704_p2 = scmp.lt.s32.totalorder %s2702_s23, %s2697_s19 }
  0x38   : > { %p2700_p10 = pnand %p2699_p9, %p2698_p8 }
  0x39   : > { %p2705_p5 = por %p2704_p2, %p2703_p12 }
  0x3a   : > { %p2701_p11 = pneg %p2700_p10 }
  0x3c   : > { %p2706_p4 = pnand %p2705_p5, %p2701_p11 }
  0x3e   : > { %2709 = shalt.err (!%p2706_p4)
}
  0x3f   : > { %s3383_s28 = smov 8   ;;  %s3384_s21 = smov 128  }
  0x40   : > { %2407 = dma.hbm_to_vmem [thread:$0]  (!%p3027_p7), %s358_s26, 256, %s360_s15, %s348_s6, %s3384_s21, %s3384_s21, %s3383_s28  }
  0x41   : > { %s2292_s24 = sshll.u32 %s2837_s12, 3  ;;  %s373_s11 = scalar_lea.vmem [#allocation5], %s2010_s5 }
  0x42   : > { %s381_s2 = sshll.u32 %s373_s11, 4  ;;  %s378_s13 = scalar_lea.hbm %s3347_s1, %s2292_s24  ;;  %s382_s2 = int_to_ptr.vmem [resolvable:$true] %s381_s2 }
  0x43   : > { %s379_s8 = sshll.u32 %s378_s13, 4  ;;  %s370_s19 = scalar_lea.sflag [#allocation6], %s369_s3  ;;  %s380_s8 = int_to_ptr.hbm [resolvable:$true] %s379_s8 }
  0x44   : > { %s2725_s23 = sshra.s32 %s380_s8, 4  ;;  %s2732_s5 = scalar_lea.hbm %s3347_s1, 16  ;;  %s2726_s23 = int_to_ptr.hbm [resolvable:$true] %s2725_s23 }
  0x45   : > { %s2727_s14 = scalar_lea.hbm %s2726_s23, 8  ;;  %p2733_p11 = scmp.lt.s32.totalorder %s2726_s23, %s3347_s1 }
  0x46   : > { %p2728_p4 = scmp.ne.s32.totalorder %s2726_s23, %s2727_s14  ;;  %p2734_p12 = scmp.lt.s32.totalorder %s2732_s5, %s2727_s14 }
  0x48   : > { %p2730_p8 = pnand %p2728_p4, %p2699_p9  ;;  %p2735_p2 = por %p2734_p12, %p2733_p11 }
  0x4a   : > { %p2731_p10 = pneg %p2730_p8 }
  0x4c   : > { %p2736_p5 = pnand %p2735_p2, %p2731_p10 }
  0x4e   : > { %2739 = shalt.err (!%p2736_p5)
}
  0x4f   : > { %s3385_s3 = smov 4   ;;  %s3386_s20 = smov 64  }
  0x50   : > { %2410 = dma.hbm_to_vmem [thread:$0]  (!%p3027_p7), %s380_s8, 128, %s382_s2, %s370_s19, %s3386_s20, %s3386_s20, %s3385_s3  }
  0x51   : > { %393 = sbr.rel (%p2938_p3) target bundleno = 2113 (0x841), region = 56  ;;  %s3071_s28 = sand.u32 (!%p2938_p3), 1, %s2829_s10  }
  0x52   : > { %s2014_s21 = sshll.u32 (!%p2938_p3), %s3071_s28, 4  ;;  %s396_s24 = scalar_lea.sflag (!%p2938_p3), [#allocation3], %s3071_s28 }
  0x53   : > { %s3077_s25 = scalar_lea.vmem (!%p2938_p3), [#allocation2], %s2014_s21 }
  0x56   : > { %2800 = dma.done.wait (%p3004_p13), %s396_s24, 256  }
  0x57   : > { %2802 = vsyncadd (%p3004_p13), %s396_s24, 4294967040  ;;  %s405_s17 = sand.u32 1, %s2933_s16   ;;  %s2015_s18 = sshll.u32 %s3071_s28, 3 }
  0x58   : > { %s406_s2 = scalar_lea.sflag [#allocation6], %s405_s17  ;;  %s3085_s13 = scalar_lea.vmem [#allocation5], %s2015_s18 }
  0x59   : > { %2804 = dma.done.wait (%p3004_p13), %s406_s2, 128  }
  0x5a   : > { %2806 = vsyncadd (%p3004_p13), %s406_s2, 4294967168 }
  0x5b   : > { %2808 = dma.done.wait (%p51_p1), [#allocation6], 128  }
  0x5c   : > { %2810 = vsyncadd (%p51_p1), [#allocation6], 4294967168 }
  0x5d   : > { %2812 = dma.done.wait (%p51_p1), [#allocation9], 4096  }
  0x5e   : > { %2814 = vsyncadd (%p51_p1), [#allocation9], 4294963200 }
  0x5f   : > { %2816 = dma.done.wait (%p51_p1), [#allocation12], 4096  }
  0x60   : > { %2818 = vsyncadd (%p51_p1), [#allocation12], 4294963200  ;;  %v476_v0 = vld [vmem:[%s3077_s25] sm:$0xff]  ;;  %v477_v1 = vld [vmem:[%s3077_s25 + $0x8] sm:$0xff]  ;;  %v2850_v2 = vmov 128.0   ;;  %s2851_s19 = smov 64  }
  0x61   : > { %487 = vadd.xlane.f32.xlu0 %v476_v0  ;;  %2500 = vrcp.f32 %v2850_v2  ;;  %v2108_v17 = vld [vmem:[#allocation8 + $0xa8] sm:$0xf]  ;;  %v2315_v18 = vld [vmem:[#allocation8 + $0xb0] sm:$0xf0]  ;;  %v2314_v19 = vld [vmem:[#allocation8 + $0xac] sm:$0xf] }
  0x62   : > { %v2109_v20 = vor.u32 %v2315_v18, %v2108_v17  ;;  %v2110_v21 = vld [vmem:[#allocation8 + $0xb4] sm:$0xf0]  ;;  %v2116_v22 = vld [vmem:[#allocation8 + $0xb0] sm:$0xf]  ;;  %v2316_v23 = vld [vmem:[#allocation8 + $0xb8] sm:$0xf0] }
  0x63   : > { %v2113_v24 = vor.u32 %v2314_v19, %v2110_v21  ;;  %v2117_v25 = vor.u32 %v2316_v23, %v2116_v22  ;;  %v2096_v26 = vld [vmem:[#allocation8 + $0x90] sm:$0xf]  ;;  %v2312_v27 = vld [vmem:[#allocation8 + $0x98] sm:$0xf0]  ;;  %v2311_v28 = vld [vmem:[#allocation8 + $0x94] sm:$0xf] }
  0x64   : > { %709 = vmatpush.bf16.msra.mxu0 %v2109_v20  ;;  %v2097_v29 = vor.u32 %v2312_v27, %v2096_v26  ;;  %v2098_v30 = vld [vmem:[#allocation8 + $0x9c] sm:$0xf0]  ;;  %v2104_v31 = vld [vmem:[#allocation8 + $0x98] sm:$0xf]  ;;  %v2313_v32 = vld [vmem:[#allocation8 + $0xa0] sm:$0xf0] }
  0x65   : > { %723 = vmatpush.bf16.msra.mxu1 %v2113_v24  ;;  %737 = vmatpush.bf16.msra.mxu2 %v2117_v25  ;;  %v2101_v33 = vor.u32 %v2311_v28, %v2098_v30  ;;  %v2105_v34 = vor.u32 %v2313_v32, %v2104_v31  ;;  %v2084_v35 = vld [vmem:[#allocation8 + $0x78] sm:$0xf]  ;;  %v2309_v36 = vld [vmem:[#allocation8 + $0x80] sm:$0xf0]  ;;  %v2308_v37 = vld [vmem:[#allocation8 + $0x7c] sm:$0xf] }
  0x66   : > { %v2085_v38 = vor.u32 %v2309_v36, %v2084_v35  ;;  %v2086_v39 = vld [vmem:[#allocation8 + $0x84] sm:$0xf0]  ;;  %v2092_v40 = vld [vmem:[#allocation8 + $0x80] sm:$0xf]  ;;  %v2310_v41 = vld [vmem:[#allocation8 + $0x88] sm:$0xf0] }
  0x67   : > { %v2501_v3 = vpop.eup %2500  ;;  %v2089_v42 = vor.u32 %v2308_v37, %v2086_v39  ;;  %v2093_v43 = vor.u32 %v2310_v41, %v2092_v40  ;;  %v2072_v44 = vld [vmem:[#allocation8 + $0x60] sm:$0xf]  ;;  %v2306_v45 = vld [vmem:[#allocation8 + $0x68] sm:$0xf0]  ;;  %v2305_v46 = vld [vmem:[#allocation8 + $0x64] sm:$0xf] }
  0x68   : > { %v492_v4 = vmul.f32 128.0, %v2501_v3  ;;  %vm496_vm0 = vweird.f32 %v2501_v3  ;;  %710 = vmatpush.bf16.msra.mxu0 %v2097_v29  ;;  %v2073_v47 = vor.u32 %v2306_v45, %v2072_v44  ;;  %v2074_v48 = vld [vmem:[#allocation8 + $0x6c] sm:$0xf0]  ;;  %v2080_v49 = vld [vmem:[#allocation8 + $0x68] sm:$0xf]  ;;  %v3119_v45 = vld [vmem:[#allocation7] sm:$0xff] }
  0x69   : > { %489 = vadd.xlane.f32.xlu0 %v477_v1  ;;  %724 = vmatpush.bf16.msra.mxu1 %v2101_v33  ;;  %v2307_v50 = vld [vmem:[#allocation8 + $0x70] sm:$0xf0]  ;;  %v2077_v51 = vor.u32 %v2305_v46, %v2074_v48  ;;  %v2060_v53 = vld [vmem:[#allocation8 + $0x48] sm:$0xf]  ;;  %v2302_v55 = vld [vmem:[#allocation8 + $0x4c] sm:$0xf] }
  0x6a   : > { %v493_v5 = vsub.f32 1.0, %v492_v4  ;;  %738 = vmatpush.bf16.msra.mxu2 %v2105_v34  ;;  %v2081_v52 = vor.u32 %v2307_v50, %v2080_v49  ;;  %v2303_v54 = vld [vmem:[#allocation8 + $0x50] sm:$0xf0]  ;;  %v2062_v57 = vld [vmem:[#allocation8 + $0x54] sm:$0xf0]  ;;  %v534_v48 = vperm.slane %v3119_v45, 0 }
  0x6b   : > { %v2061_v56 = vor.u32 %v2303_v54, %v2060_v53  ;;  %v2068_v58 = vld [vmem:[#allocation8 + $0x50] sm:$0xf]  ;;  %v2304_v59 = vld [vmem:[#allocation8 + $0x58] sm:$0xf0]  ;;  %v2065_v60 = vor.u32 %v2302_v55, %v2062_v57  ;;  %v2050_v2 = vld [vmem:[#allocation8 + $0x3c] sm:$0xf0] }
  0x6c   : > { %v494_v6 = vmul.f32 %v2501_v3, %v493_v5  ;;  %711 = vmatpush.bf16.msra.mxu0 %v2085_v38  ;;  %v2069_v61 = vor.u32 %v2304_v59, %v2068_v58  ;;  %v2048_v62 = vld [vmem:[#allocation8 + $0x30] sm:$0xf]  ;;  %v2300_v63 = vld [vmem:[#allocation8 + $0x38] sm:$0xf0]  ;;  %v2301_v4 = vld [vmem:[#allocation8 + $0x40] sm:$0xf0] }
  0x6d   : > { %725 = vmatpush.bf16.msra.mxu1 %v2089_v42  ;;  %v2024_v19 = vld [vmem:[#allocation8] sm:$0xf]  ;;  %v2294_v20 = vld [vmem:[#allocation8 + $0x8] sm:$0xf0]  ;;  %v2293_v21 = vld [vmem:[#allocation8 + $0x4] sm:$0xf] }
  0x6e   : > { %v495_v7 = vadd.f32 %v2501_v3, %v494_v6  ;;  %739 = vmatpush.bf16.msra.mxu2 %v2093_v43  ;;  %v2025_v23 = vor.u32 %v2294_v20, %v2024_v19  ;;  %v2026_v24 = vld [vmem:[#allocation8 + $0xc] sm:$0xf0]  ;;  %v2032_v25 = vld [vmem:[#allocation8 + $0x8] sm:$0xf]  ;;  %v2295_v26 = vld [vmem:[#allocation8 + $0x10] sm:$0xf0] }
  0x6f   : > { %v2029_v28 = vor.u32 %v2293_v21, %v2026_v24  ;;  %v2033_v29 = vor.u32 %v2295_v26, %v2032_v25  ;;  %v537_v53 = vperm.slane %v3119_v45, 1  ;;  %s2852_s23 = smov 96   ;;  %s2853_s14 = smov 32   ;;  %vm882_vm7 = vcmask 261120  }
  0x70   : > { %v3105_v8 = vsel %vm496_vm0, %v2501_v3, %v495_v7  ;;  %712 = vmatpush.bf16.msra.mxu0 %v2073_v47  ;;  %v2056_v3 = vld [vmem:[#allocation8 + $0x38] sm:$0xf]  ;;  %vm960_vm9 = vcmask 130048   ;;  %vm1162_vm11 = vcmask 1047556   ;;  %vm1408_vm12 = vcmask 523264   ;;  %s2357_s5 = sshll.u32 %s2933_s16, 4 }
  0x71   : > { %726 = vmatpush.bf16.msra.mxu1 %v2077_v51  ;;  %v2057_v6 = vor.u32 %v2301_v4, %v2056_v3  ;;  %v2036_v7 = vld [vmem:[#allocation8 + $0x18] sm:$0xf]  ;;  %vm1411_vm13 = vcmask 785408   ;;  %s474_s11 = scalar_lea.vmem [#allocation14], %s2014_s21  ;;  %s1852_s20 = scalar_lea.hbm %s3355_s9, %s2357_s5 }
  0x72   : > { %740 = vmatpush.bf16.msra.mxu2 %v2081_v52  ;;  %s1853_s24 = sshll.u32 %s474_s11, 4  ;;  %s1841_s16 = scalar_lea.sflag [#allocation4], %s3071_s28  ;;  %s1854_s24 = int_to_ptr.vmem [resolvable:$true] %s1853_s24 }
  0x74   : > { %713 = vmatpush.bf16.msra.mxu0 %v2061_v56 }
  0x75   : > { %727 = vmatpush.bf16.msra.mxu1 %v2065_v60 }
  0x76   : > { %741 = vmatpush.bf16.msra.mxu2 %v2069_v61 }
  0x7a   : > { %742 = vmatpush.bf16.msra.mxu2 %v2057_v6 }
  0xd4   : > { %v488_v9 = vpop.xlane.xlu0 %487 }
  0xd5   : > { %v498_v10 = vmul.f32 %v3105_v8, %v488_v9  ;;  %v2297_v9 = vld [vmem:[#allocation8 + $0x20] sm:$0xf0] }
  0xd7   : > { %v3108_v11 = vsub.f32 %v476_v0, %v498_v10  ;;  %v2299_v0 = vld [vmem:[#allocation8 + $0x34] sm:$0xf]  ;;  %v2296_v10 = vld [vmem:[#allocation8 + $0x1c] sm:$0xf] }
  0xd8   : > { %v2053_v5 = vor.u32 %v2299_v0, %v2050_v2 }
  0xd9   : > { %v502_v12 = vmul.f32 %v3108_v11, %v3108_v11 }
  0xda   : > { %728 = vmatpush.bf16.msra.mxu1 %v2053_v5 }
  0xdb   : > { %504 = vadd.xlane.f32.xlu1 %v502_v12  ;;  %v2037_v12 = vor.u32 %v2297_v9, %v2036_v7 }
  0xdc   : > { %v490_v13 = vpop.xlane.xlu0 %489 }
  0xdd   : > { %v499_v14 = vmul.f32 %v3105_v8, %v490_v13  ;;  %v2038_v13 = vld [vmem:[#allocation8 + $0x24] sm:$0xf0] }
  0xde   : > { %v2041_v17 = vor.u32 %v2296_v10, %v2038_v13 }
  0xdf   : > { %v3113_v15 = vsub.f32 %v477_v1, %v499_v14  ;;  %v2049_v1 = vor.u32 %v2300_v63, %v2048_v62  ;;  %v2044_v14 = vld [vmem:[#allocation8 + $0x20] sm:$0xf] }
  0xe0   : > { %729 = vmatpush.bf16.msra.mxu1 %v2041_v17 }
  0xe1   : > { %v503_v16 = vmul.f32 %v3113_v15, %v3113_v15  ;;  %714 = vmatpush.bf16.msra.mxu0 %v2049_v1 }
  0xe3   : > { %506 = vadd.xlane.f32.xlu1 %v503_v16  ;;  %v2298_v16 = vld [vmem:[#allocation8 + $0x28] sm:$0xf0] }
  0xe4   : > { %v2045_v18 = vor.u32 %v2298_v16, %v2044_v14  ;;  %730 = vmatpush.bf16.msra.mxu1 %v2029_v28 }
  0xe5   : > { %715 = vmatpush.bf16.msra.mxu0 %v2037_v12 }
  0xe6   : > { %743 = vmatpush.bf16.msra.mxu2 %v2045_v18 }
  0xe9   : > { %716 = vmatpush.bf16.msra.mxu0 %v2025_v23 }
  0xea   : > { %744 = vmatpush.bf16.msra.mxu2 %v2033_v29 }
 0x14e   : > { %v505_v22 = vpop.xlane.xlu1 %504 }
 0x14f   : > { %v508_v27 = vmul.f32 %v505_v22, %v3105_v8 }
 0x151   : > { %v510_v30 = vadd.f32 1e-05, %v508_v27 }
 0x153   : > { %2502 = vrsqrt.f32 %v510_v30  ;;  %vm518_vm2 = vweird.f32 %v510_v30 }
 0x156   : > { %v507_v31 = vpop.xlane.xlu1 %506 }
 0x157   : > { %v509_v32 = vmul.f32 %v507_v31, %v3105_v8 }
 0x159   : > { %v2503_v33 = vpop.eup %2502  ;;  %v511_v34 = vadd.f32 1e-05, %v509_v32 }
 0x15a   : > { %v513_v35 = vmul.f32 %v2503_v33, %v510_v30  ;;  %vm519_vm1 = vweird.f32 %v2503_v33 }
 0x15b   : > { %2504 = vrsqrt.f32 %v511_v34  ;;  %vm520_vm3 = vmor %vm518_vm2, %vm519_vm1  ;;  %vm528_vm5 = vweird.f32 %v511_v34 }
 0x15c   : > { %v514_v36 = vmul.f32 %v2503_v33, %v513_v35 }
 0x15e   : > { %v515_v37 = vmul.f32 0.5, %v514_v36 }
 0x160   : > { %v516_v38 = vsub.f32 1.5, %v515_v37 }
 0x161   : > { %v2505_v39 = vpop.eup %2504 }
 0x162   : > { %v517_v40 = vmul.f32 %v2503_v33, %v516_v38  ;;  %v523_v41 = vmul.f32 %v2505_v39, %v511_v34  ;;  %vm529_vm4 = vweird.f32 %v2505_v39 }
 0x163   : > { %vm530_vm6 = vmor %vm528_vm5, %vm529_vm4 }
 0x164   : > { %v524_v42 = vmul.f32 %v2505_v39, %v523_v41  ;;  %v521_v43 = vsel %vm520_vm3, %v2503_v33, %v517_v40 }
 0x165   : > { %v532_v47 = vmul.f32 %v521_v43, %v3108_v11  ;;  %v573_v11 = vld [vmem:[%s3350_s4] sm:$0x7] }
 0x166   : > { %v525_v44 = vmul.f32 0.5, %v524_v42  ;;  %v576_v58 = vperm.slane %v573_v11, 1  ;;  %v577_v62 = vperm.slane %v573_v11, 2  ;;  %v575_v2 = vperm.slane %v573_v11, 0 }
 0x167   : > { %v535_v52 = vmul.f32 %v534_v48, %v532_v47 }
 0x168   : > { %v526_v46 = vsub.f32 1.5, %v525_v44 }
 0x169   : > { %v538_v55 = vadd.f32 %v537_v53, %v535_v52 }
 0x16a   : > { %v527_v49 = vmul.f32 %v2505_v39, %v526_v46 }
 0x16c   : > { %v531_v50 = vsel %vm530_vm6, %v2505_v39, %v527_v49 }
 0x16d   : > { %v533_v51 = vmul.f32 %v531_v50, %v3113_v15 }
 0x16f   : > { %v536_v54 = vmul.f32 %v534_v48, %v533_v51 }
 0x171   : > { %v539_v56 = vadd.f32 %v537_v53, %v536_v54 }
 0x173   : > { %v540_v57 = vpack.c.bf16 %v539_v56, %v538_v55 }
 0x175   : > { %717 = vmatmul.bf16.vlgmr.msra.gmra.mxu0 %v540_v57  ;;  %731 = vmatmul.bf16.vlgmr.msra.gmra.mxu1 %v540_v57 }
 0x176   : > { %745 = vmatmul.bf16.vlgmr.msra.gmra.mxu2 %v540_v57 }
 0x1f2   : > { %v732_v59 = vpop.f32.mrf.mxu1  ;;  %v718_v1 = vpop.f32.mrf.mxu0 }
 0x1f3   : > { %v733_v60 = vadd.f32 %v732_v59, %v576_v58  ;;  %v719_v7 = vadd.f32 %v718_v1, %v575_v2 }
 0x1f5   : > { %v767_v61 = vpack.c.bf16 %v733_v60, %v733_v60  ;;  %v751_v16 = vpack.c.bf16 %v719_v7, %v719_v7 }
 0x1f7   : > { %775 = vrot.lane.b32.xlu0 %v767_v61, %s2851_s19  ;;  %771 = vrot.lane.b32.xlu2 %v767_v61, %s2852_s23  ;;  %v799_v5 = vunpack.c.l.b16 %v767_v61  ;;  %v879_v44 = vunpack.c.l.b16 %v751_v16 }
 0x1f9   : > { %v746_v15 = vpop.f32.mrf.mxu2 }
 0x1fa   : > { %v734_v63 = vpop.f32.mrf.mxu1  ;;  %v747_v4 = vadd.f32 %v746_v15, %v577_v62  ;;  %v720_v17 = vpop.f32.mrf.mxu0 }
 0x1fb   : > { %v735_v0 = vadd.f32 %v734_v63, %v576_v58  ;;  %v721_v21 = vadd.f32 %v720_v17, %v575_v2 }
 0x1fc   : > { %v3133_v12 = vpack.c.bf16 %v747_v4, %v747_v4  ;;  %v2359_v4 = vld [vmem:[%s3085_s13] sm:$0xff]   ;;  %s2775_s13 = scalar_lea.hbm %s3355_s9, 32 }
 0x1fd   : > { %v768_v3 = vpack.c.bf16 %v735_v0, %v735_v0  ;;  %v752_v22 = vpack.c.bf16 %v721_v21, %v721_v21 }
 0x1fe   : > { %v1054_v18 = vunpack.c.l.b16 %v3133_v12 }
 0x1ff   : > { %777 = vrot.lane.b32.xlu1 %v768_v3, %s2851_s19  ;;  %779 = vrot.lane.b32.xlu0 %v767_v61, %s2853_s14  ;;  %v800_v6 = vunpack.c.l.b16 %v768_v3  ;;  %v880_v42 = vunpack.c.l.b16 %v752_v22 }
 0x200   : > { %773 = vrot.lane.b32.xlu2 %v768_v3, %s2852_s23 }
 0x201   : > { %v748_v9 = vpop.f32.mrf.mxu2  ;;  %v807_v10 = vpack.c.b16 %v800_v6, %v799_v5  ;;  %v881_v46 = vpack.c.b16 %v880_v42, %v879_v44  ;;  %v2360_v5 = vunpack.c.l.bf16 %v2359_v4  ;;  %v2854_v6 = vmov -1e+09  }
 0x202   : > { %v749_v13 = vadd.f32 %v748_v9, %v577_v62  ;;  %v2361_v9 = vunpack.c.h.bf16 %v2359_v4 }
 0x203   : > { %vm483_vm8 = vcmp.gt.f32.partialorder %v2360_v5, 0.0 }
 0x204   : > { %v3135_v14 = vpack.c.bf16 %v749_v13, %v749_v13  ;;  %v485_v7 = vsel %vm483_vm8, 0.0, %v2854_v6  ;;  %vm484_vm10 = vcmp.gt.f32.partialorder %v2361_v9, 0.0 }
 0x205   : > { %v486_v17 = vsel %vm484_vm10, 0.0, %v2854_v6 }
 0x206   : > { %v1055_v19 = vunpack.c.l.b16 %v3135_v14 }
 0x207   : > { %781 = vrot.lane.b32.xlu1 %v768_v3, %s2853_s14  ;;  %755 = vrot.lane.b32.xlu0 %v751_v16, %s2852_s23 }
 0x208   : > { %v1056_v20 = vpack.c.b16 %v1055_v19, %v1054_v18 }
 0x20a   : > { %1068 = vmatpush.bf16.msrb.mxu2 %v1056_v20 }
 0x20f   : > { %757 = vrot.lane.b32.xlu1 %v752_v22, %s2852_s23  ;;  %759 = vrot.lane.b32.xlu0 %v751_v16, %s2851_s19 }
 0x217   : > { %763 = vrot.lane.b32.xlu0 %v751_v16, %s2853_s14 }
 0x21f   : > { %765 = vrot.lane.b32.xlu0 %v752_v22, %s2853_s14 }
 0x251   : > { %v772_v23 = vpop.permute.xlu2 %771 }
 0x252   : > { %v801_v25 = vunpack.c.l.b16 %v772_v23 }
 0x25a   : > { %v774_v24 = vpop.permute.xlu2 %773 }
 0x25b   : > { %v802_v26 = vunpack.c.l.b16 %v774_v24 }
 0x25d   : > { %v808_v27 = vpack.c.b16 %v802_v26, %v801_v25 }
 0x25f   : > { %2480 = vxpose.binary.xlu2.c.b16.start.end [1/2] (short) (narrow) %v808_v27, %v807_v10, 32 }
 0x269   : > { %v776_v28 = vpop.permute.xlu0 %775 }
 0x26a   : > { %v803_v30 = vunpack.c.l.b16 %v776_v28 }
 0x271   : > { %v778_v29 = vpop.permute.xlu1 %777  ;;  %v780_v33 = vpop.permute.xlu0 %779 }
 0x272   : > { %v804_v31 = vunpack.c.l.b16 %v778_v29  ;;  %v805_v35 = vunpack.c.l.b16 %v780_v33 }
 0x274   : > { %v809_v32 = vpack.c.b16 %v804_v31, %v803_v30 }
 0x276   : > { %847 = vxpose.xlu1.c.b16.start.end [1/1] (short) (narrow) %v809_v32, 32 }
 0x279   : > { %v782_v34 = vpop.permute.xlu1 %781  ;;  %v756_v40 = vpop.permute.xlu0 %755 }
 0x27a   : > { %v806_v36 = vunpack.c.l.b16 %v782_v34  ;;  %v900_v51 = vunpack.c.l.b16 %v756_v40 }
 0x27c   : > { %v810_v37 = vpack.c.b16 %v806_v36, %v805_v35 }
 0x27e   : > { %863 = vxpose.xlu0.c.b16.start.end [1/1] (short) (narrow) %v810_v37, 32 }
 0x281   : > { %v760_v43 = vpop.permute.xlu0 %759  ;;  %v758_v49 = vpop.permute.xlu1 %757 }
 0x282   : > { %v901_v50 = vunpack.c.l.b16 %v758_v49  ;;  %v920_v58 = vunpack.c.l.b16 %v760_v43 }
 0x284   : > { %v902_v52 = vpack.c.b16 %v901_v50, %v900_v51 }
 0x289   : > { %v764_v48 = vpop.permute.xlu0 %763 }
 0x28a   : > { %v940_v15 = vunpack.c.l.b16 %v764_v48 }
 0x291   : > { %v766_v53 = vpop.permute.xlu0 %765 }
 0x292   : > { %v941_v61 = vunpack.c.l.b16 %v766_v53 }
 0x294   : > { %v942_v62 = vpack.c.b16 %v941_v61, %v940_v15 }
 0x2d8   : > { %761 = vrot.lane.b32.xlu2 %v752_v22, %s2851_s19 }
 0x2e0   : > { %787 = vrot.lane.b32.xlu2 %v3133_v12, %s2852_s23  ;;  %791 = vrot.lane.b32.xlu1 %v3133_v12, %s2851_s19 }
 0x2fc   : > { %793 = vrot.lane.b32.xlu0 %v3135_v14, %s2851_s19 }
 0x300   : > { %v2481_v38 = vpop.trf.xlu2 }
 0x308   : > { %v2482_v39 = vpop.trf.xlu2 }
 0x310   : > { %v2483_v41 = vpop.trf.xlu2 }
 0x311   : > { %892 = vmatpush.bf16.msra.mxu3 %v2483_v41 }
 0x315   : > { %893 = vmatpush.bf16.msra.mxu3 %v2481_v38 }
 0x318   : > { %2118 = vmatmul.msk.bf16.vlgmr.msra.gmra.mxu3 %vm882_vm7, %v881_v46  ;;  %v2484_v47 = vpop.trf.xlu2 }
 0x319   : > { %912 = vmatpush.bf16.msrb.mxu3 %v2484_v47 }
 0x31d   : > { %913 = vmatpush.bf16.msrb.mxu3 %v2482_v39 }
 0x322   : > { %v855_v54 = vpop.trf.xlu1 }
 0x328   : > { %2119 = vmatmul.msk.bf16.vlgmr.msrb.gmra.mxu3 %vm882_vm7, %v902_v52 }
 0x32a   : > { %v871_v55 = vpop.trf.xlu0 }
 0x332   : > { %v762_v56 = vpop.permute.xlu2 %761  ;;  %v856_v57 = vpop.trf.xlu1 }
 0x333   : > { %932 = vmatpush.bf16.msra.mxu3 %v856_v57  ;;  %v921_v11 = vunpack.c.l.b16 %v762_v56 }
 0x335   : > { %v922_v59 = vpack.c.b16 %v921_v11, %v920_v58 }
 0x337   : > { %933 = vmatpush.bf16.msra.mxu3 %v855_v54 }
 0x33a   : > { %v872_v60 = vpop.trf.xlu0  ;;  %2120 = vmatmul.msk.bf16.vlgmr.msra.gmra.mxu3 %vm882_vm7, %v922_v59  ;;  %v788_v47 = vpop.permute.xlu2 %787 }
 0x33b   : > { %952 = vmatpush.bf16.msrb.mxu0 %v872_v60 }
 0x33f   : > { %953 = vmatpush.bf16.msrb.mxu0 %v871_v55 }
 0x342   : > { %2121 = vmatmul.msk.bf16.vlgmr.msrb.gmra.mxu0 %vm882_vm7, %v942_v62 }
 0x352   : > { %v792_v63 = vpop.permute.xlu1 %791 }
 0x353   : > { %v1106_v1 = vunpack.c.l.b16 %v792_v63 }
 0x36e   : > { %v794_v0 = vpop.permute.xlu0 %793 }
 0x36f   : > { %v1107_v2 = vunpack.c.l.b16 %v794_v0 }
 0x371   : > { %v1108_v3 = vpack.c.b16 %v1107_v2, %v1106_v1 }
 0x373   : > { %1120 = vmatpush.bf16.msrb.mxu3 %v1108_v3 }
 0x39b   : > { %v895_v10 = vpop.f32.mrf.mxu3 }
 0x39c   : > { %v896_v13 = vadd.f32 %v895_v10, %v485_v7 }
 0x39e   : > { %v961_v16 = vsel %vm960_vm9, %v896_v13, -inf }
 0x39f   : > { %962 = vmax.xlane.f32.xlu0 %v961_v16 }
 0x3a3   : > { %v897_v18 = vpop.f32.mrf.mxu3 }
 0x3a4   : > { %v898_v19 = vadd.f32 %v897_v18, %v486_v17 }
 0x3a6   : > { %v964_v20 = vsel %vm960_vm9, %v898_v19, -inf }
 0x3a7   : > { %965 = vmax.xlane.f32.xlu1 %v964_v20 }
 0x3ab   : > { %v915_v21 = vpop.f32.mrf.mxu3 }
 0x3ac   : > { %v916_v25 = vadd.f32 %v915_v21, %v485_v7 }
 0x3ae   : > { %v967_v30 = vsel %vm960_vm9, %v916_v25, -inf }
 0x3b3   : > { %789 = vrot.lane.b32.xlu0 %v3135_v14, %s2852_s23  ;;  %v917_v28 = vpop.f32.mrf.mxu3 }
 0x3b4   : > { %v918_v31 = vadd.f32 %v917_v28, %v486_v17 }
 0x3b6   : > { %v970_v33 = vsel %vm960_vm9, %v918_v31, -inf }
 0x3bd   : > { %v935_v32 = vpop.f32.mrf.mxu3 }
 0x3be   : > { %v936_v34 = vadd.f32 %v935_v32, %v485_v7 }
 0x3bf   : > { %v955_v22 = vpop.f32.mrf.mxu0 }
 0x3c0   : > { %v956_v23 = vadd.f32 %v955_v22, %v485_v7  ;;  %v973_v35 = vsel %vm960_vm9, %v936_v34, -inf }
 0x3c2   : > { %v979_v24 = vsel %vm960_vm9, %v956_v23, -inf }
 0x3c3   : > { %980 = vmax.xlane.f32.xlu1 %v979_v24 }
 0x3c5   : > { %v937_v36 = vpop.f32.mrf.mxu3 }
 0x3c6   : > { %v3166_v37 = vadd.f32 %v937_v36, %v486_v17 }
 0x3c7   : > { %v957_v26 = vpop.f32.mrf.mxu0 }
 0x3c8   : > { %v958_v27 = vadd.f32 %v957_v26, %v486_v17  ;;  %v976_v38 = vsel %vm960_vm9, %v3166_v37, -inf }
 0x3ca   : > { %v982_v29 = vsel %vm960_vm9, %v958_v27, -inf }
 0x3cb   : > { %983 = vmax.xlane.f32.xlu2 %v982_v29  ;;  %968 = vmax.xlane.f32.xlu1 %v967_v30 }
 0x3d3   : > { %971 = vmax.xlane.f32.xlu2 %v970_v33 }
 0x3db   : > { %974 = vmax.xlane.f32.xlu2 %v973_v35 }
 0x3e3   : > { %977 = vmax.xlane.f32.xlu2 %v976_v38 }
 0x3e4   : > { %795 = vrot.lane.b32.xlu1 %v3133_v12, %s2853_s14  ;;  %v1080_v12 = vunpack.c.l.b16 %v788_v47 }
 0x3fb   : > { %797 = vrot.lane.b32.xlu2 %v3135_v14, %s2853_s14 }
 0x412   : > { %v963_v39 = vpop.xlane.xlu0 %962 }
 0x413   : > { %v985_v40 = vsub.f32 %v896_v13, %v963_v39 }
 0x415   : > { %v993_v41 = vmul.f32 1.442695, %v985_v40 }
 0x417   : > { %2506 = vpow2.f32 %v993_v41 }
 0x41a   : > { %v966_v42 = vpop.xlane.xlu1 %965 }
 0x41b   : > { %v986_v43 = vsub.f32 %v898_v19, %v966_v42 }
 0x41d   : > { %v995_v44 = vmul.f32 1.442695, %v986_v43  ;;  %v2507_v46 = vpop.eup %2506 }
 0x41e   : > { %v1009_v48 = vsel %vm960_vm9, %v2507_v46, 0.0  ;;  %v1041_v49 = vpack.c.bf16 %v2507_v46, %v2507_v46 }
 0x41f   : > { %2508 = vpow2.f32 %v995_v44 }
 0x420   : > { %v1051_v54 = vunpack.c.l.b16 %v1041_v49 }
 0x424   : > { %1010 = vadd.xlane.f32.xlu2 %v1009_v48 }
 0x425   : > { %v2509_v50 = vpop.eup %2508  ;;  %v790_v51 = vpop.permute.xlu0 %789 }
 0x426   : > { %v1042_v52 = vpack.c.bf16 %v2509_v50, %v2509_v50  ;;  %v1081_v53 = vunpack.c.l.b16 %v790_v51  ;;  %v1012_v14 = vsel %vm960_vm9, %v2509_v50, 0.0 }
 0x427   : > { %1013 = vadd.xlane.f32.xlu0 %v1012_v14 }
 0x428   : > { %v1052_v55 = vunpack.c.l.b16 %v1042_v52  ;;  %v1082_v56 = vpack.c.b16 %v1081_v53, %v1080_v12 }
 0x42a   : > { %1094 = vmatpush.bf16.msra.mxu2 %v1082_v56  ;;  %v1053_v57 = vpack.c.b16 %v1052_v55, %v1051_v54 }
 0x42c   : > { %2122 = vmatmul.msk.bf16.vlgmr.msrb.gmra.mxu2 %vm960_vm9, %v1053_v57 }
 0x436   : > { %v981_v11 = vpop.xlane.xlu1 %980 }
 0x437   : > { %v991_v58 = vsub.f32 %v956_v23, %v981_v11 }
 0x439   : > { %v1005_v59 = vmul.f32 1.442695, %v991_v58 }
 0x43b   : > { %2510 = vpow2.f32 %v1005_v59 }
 0x43e   : > { %v984_v60 = vpop.xlane.xlu2 %983  ;;  %v969_v61 = vpop.xlane.xlu1 %968 }
 0x43f   : > { %v992_v15 = vsub.f32 %v958_v27, %v984_v60  ;;  %v987_v62 = vsub.f32 %v916_v25, %v969_v61  ;;  %v2855_v60 = vmov 1983009808  }
 0x440   : > { %v1167_v61 = vunpack.c.l.s4 %v2855_v60 }
 0x441   : > { %v2511_v63 = vpop.eup %2510  ;;  %v1007_v0 = vmul.f32 1.442695, %v992_v15  ;;  %v997_v2 = vmul.f32 1.442695, %v987_v62 }
 0x442   : > { %v1027_v1 = vsel %vm960_vm9, %v2511_v63, 0.0  ;;  %v1047_v30 = vpack.c.bf16 %v2511_v63, %v2511_v63 }
 0x443   : > { %2512 = vpow2.f32 %v1007_v0  ;;  %1028 = vadd.xlane.f32.xlu1 %v1027_v1 }
 0x444   : > { %2514 = vpow2.f32 %v997_v2  ;;  %v1129_v39 = vunpack.c.l.b16 %v1047_v30  ;;  %v3187_v2 = vunpack.c.0.s8 %v1167_v61 }
 0x446   : > { %v972_v3 = vpop.xlane.xlu2 %971 }
 0x447   : > { %v988_v4 = vsub.f32 %v918_v31, %v972_v3 }
 0x449   : > { %v2513_v5 = vpop.eup %2512  ;;  %v999_v6 = vmul.f32 1.442695, %v988_v4 }
 0x44a   : > { %v1030_v7 = vsel %vm960_vm9, %v2513_v5, 0.0  ;;  %v2515_v9 = vpop.eup %2514  ;;  %v1048_v28 = vpack.c.bf16 %v2513_v5, %v2513_v5 }
 0x44b   : > { %2516 = vpow2.f32 %v999_v6  ;;  %1031 = vadd.xlane.f32.xlu2 %v1030_v7  ;;  %v1043_v16 = vpack.c.bf16 %v2515_v9, %v2515_v9  ;;  %v1015_v41 = vsel %vm960_vm9, %v2515_v9, 0.0 }
 0x44d   : > { %v1077_v20 = vunpack.c.l.b16 %v1043_v16 }
 0x44e   : > { %v975_v10 = vpop.xlane.xlu2 %974 }
 0x44f   : > { %v989_v13 = vsub.f32 %v936_v34, %v975_v10  ;;  %v1130_v34 = vunpack.c.l.b16 %v1048_v28  ;;  %v2856_v10 = vmov 1934713408  }
 0x451   : > { %v2517_v17 = vpop.eup %2516  ;;  %v1001_v18 = vmul.f32 1.442695, %v989_v13  ;;  %v1131_v42 = vpack.c.b16 %v1130_v34, %v1129_v39  ;;  %v1191_v13 = vunpack.c.l.s4 %v2856_v10 }
 0x452   : > { %v1044_v19 = vpack.c.bf16 %v2517_v17, %v2517_v17  ;;  %v1018_v47 = vsel %vm960_vm9, %v2517_v17, 0.0 }
 0x453   : > { %2518 = vpow2.f32 %v1001_v18 }
 0x454   : > { %v1078_v21 = vunpack.c.l.b16 %v1044_v19 }
 0x456   : > { %v1079_v22 = vpack.c.b16 %v1078_v21, %v1077_v20  ;;  %v978_v23 = vpop.xlane.xlu2 %977  ;;  %v796_v29 = vpop.permute.xlu1 %795 }
 0x457   : > { %v990_v24 = vsub.f32 %v3166_v37, %v978_v23  ;;  %v1132_v32 = vunpack.c.l.b16 %v796_v29 }
 0x458   : > { %2123 = vmatmul.msk.bf16.vlgmr.msra.gmra.mxu2 %vm960_vm9, %v1079_v22 }
 0x459   : > { %v2519_v25 = vpop.eup %2518  ;;  %v1003_v26 = vmul.f32 1.442695, %v990_v24 }
 0x45a   : > { %v1021_v27 = vsel %vm960_vm9, %v2519_v25, 0.0  ;;  %v1045_v35 = vpack.c.bf16 %v2519_v25, %v2519_v25 }
 0x45b   : > { %2520 = vpow2.f32 %v1003_v26  ;;  %1022 = vadd.xlane.f32.xlu0 %v1021_v27  ;;  %v3194_v27 = vunpack.c.0.s8 %v1191_v13 }
 0x45c   : > { %v1103_v43 = vunpack.c.l.b16 %v1045_v35 }
 0x45e   : > { %v798_v31 = vpop.permute.xlu2 %797 }
 0x45f   : > { %v1133_v33 = vunpack.c.l.b16 %v798_v31 }
 0x461   : > { %v2521_v36 = vpop.eup %2520  ;;  %v1134_v38 = vpack.c.b16 %v1133_v33, %v1132_v32 }
 0x462   : > { %v1046_v37 = vpack.c.bf16 %v2521_v36, %v2521_v36  ;;  %v1024_v40 = vsel %vm960_vm9, %v2521_v36, 0.0 }
 0x463   : > { %1025 = vadd.xlane.f32.xlu1 %v1024_v40  ;;  %1146 = vmatpush.bf16.msra.mxu0 %v1134_v38 }
 0x464   : > { %v1104_v44 = vunpack.c.l.b16 %v1046_v37  ;;  %1016 = vadd.xlane.f32.xlu0 %v1015_v41 }
 0x466   : > { %v1105_v46 = vpack.c.b16 %v1104_v44, %v1103_v43  ;;  %2125 = vmatmul.msk.bf16.vlgmr.msra.gmra.mxu0 %vm960_vm9, %v1131_v42 }
 0x468   : > { %2124 = vmatmul.msk.bf16.vlgmr.msrb.gmra.mxu3 %vm960_vm9, %v1105_v46 }
 0x46b   : > { %1019 = vadd.xlane.f32.xlu1 %v1018_v47 }
 0x497   : > { %v1011_v14 = vpop.xlane.xlu2 %1010 }
 0x49a   : > { %v1014_v48 = vpop.xlane.xlu0 %1013 }
 0x4af   : > { %v1070_v49 = vpop.f32.mrf.mxu2 }
 0x4b6   : > { %v1029_v50 = vpop.xlane.xlu1 %1028 }
 0x4b7   : > { %v1072_v12 = vpop.f32.mrf.mxu2 }
 0x4be   : > { %v1032_v57 = vpop.xlane.xlu2 %1031 }
 0x4ce   : > { %v1023_v51 = vpop.xlane.xlu0 %1022 }
 0x4d6   : > { %v1026_v52 = vpop.xlane.xlu1 %1025 }
 0x4d7   : > { %v1017_v53 = vpop.xlane.xlu0 %1016 }
 0x4d8   : > { %2522 = vrcp.f32 %v1017_v53 }
 0x4d9   : > { %2524 = vrcp.f32 %v1029_v50 }
 0x4db   : > { %v1096_v54 = vpop.f32.mrf.mxu2 }
 0x4de   : > { %v1020_v55 = vpop.xlane.xlu1 %1019  ;;  %v2523_v56 = vpop.eup %2522 }
 0x4df   : > { %2526 = vrcp.f32 %v1020_v55  ;;  %v1155_v11 = vmul.f32 %v2523_v56, %v1096_v54  ;;  %v2525_v58 = vpop.eup %2524 }
 0x4e0   : > { %2528 = vrcp.f32 %v1011_v14 }
 0x4e1   : > { %2530 = vrcp.f32 %v1032_v57  ;;  %v1176_v63 = vrot.slane %v1155_v11, 4 }
 0x4e2   : > { %2532 = vrcp.f32 %v1023_v51 }
 0x4e3   : > { %v1148_v59 = vpop.f32.mrf.mxu0  ;;  %v1098_v4 = vpop.f32.mrf.mxu2  ;;  %2534 = vrcp.f32 %v1014_v48 }
 0x4e4   : > { %v1159_v15 = vmul.f32 %v2525_v58, %v1148_v59  ;;  %2536 = vrcp.f32 %v1026_v52  ;;  %v2324_v52 = vld [vmem:[#allocation10 + $0x38] sm:$0xff] }
 0x4e5   : > { %v2527_v62 = vpop.eup %2526  ;;  %1480 = vmatpush.bf16.msrb.mxu1 %v2324_v52 }
 0x4e6   : > { %v1174_v0 = vrot.slane %v1159_v15, 4  ;;  %v2529_v1 = vpop.eup %2528  ;;  %v1177_v5 = vsel %vm1162_vm11, %v1159_v15, %v1176_v63  ;;  %v1156_v6 = vmul.f32 %v2527_v62, %v1098_v4 }
 0x4e7   : > { %v1153_v3 = vmul.f32 %v2529_v1, %v1070_v49  ;;  %v2531_v7 = vpop.eup %2530  ;;  %v1185_v17 = vperm.slane %v1177_v5, %v3187_v2 }
 0x4e8   : > { %v1175_v9 = vsel %vm1162_vm11, %v1174_v0, %v1155_v11  ;;  %v2533_v16 = vpop.eup %2532  ;;  %v1232_v23 = vrot.slane %v1156_v6, 4 }
 0x4e9   : > { %v1164_v20 = vrot.slane %v1153_v3, 4  ;;  %v1181_v24 = vperm.slane %v1175_v9, %v3187_v2  ;;  %v2535_v29 = vpop.eup %2534  ;;  %v1198_v30 = vrot.slane %v1185_v17, 4 }
 0x4ea   : > { %v1154_v33 = vmul.f32 %v2535_v29, %v1072_v12  ;;  %v2537_v42 = vpop.eup %2536 }
 0x4eb   : > { %v1122_v18 = vpop.f32.mrf.mxu3  ;;  %v1150_v19 = vpop.f32.mrf.mxu0  ;;  %v1186_v36 = vrot.slane %v1181_v24, 4 }
 0x4ec   : > { %v1157_v21 = vmul.f32 %v2533_v16, %v1122_v18  ;;  %v1160_v22 = vmul.f32 %v2531_v7, %v1150_v19  ;;  %v1220_v53 = vrot.slane %v1154_v33, 4 }
 0x4ee   : > { %v1161_v25 = vrot.slane %v1157_v21, 4  ;;  %v1165_v26 = vsel %vm1162_vm11, %v1157_v21, %v1164_v20  ;;  %v1230_v28 = vrot.slane %v1160_v22, 4  ;;  %v1233_v32 = vsel %vm1162_vm11, %v1160_v22, %v1232_v23 }
 0x4ef   : > { %v1173_v31 = vperm.slane %v1165_v26, %v3187_v2  ;;  %v1241_v41 = vperm.slane %v1233_v32, %v3187_v2 }
 0x4f0   : > { %v1163_v34 = vsel %vm1162_vm11, %v1161_v25, %v1153_v3  ;;  %v1231_v35 = vsel %vm1162_vm11, %v1230_v28, %v1156_v6 }
 0x4f1   : > { %v1169_v38 = vperm.slane %v1163_v34, %v3187_v2  ;;  %v1199_v39 = vsel %vm1162_vm11, %v1198_v30, %v1173_v31  ;;  %v1200_v37 = vrot.slane %v1173_v31, 4  ;;  %v1237_v47 = vperm.slane %v1231_v35, %v3187_v2 }
 0x4f2   : > { %v1205_v40 = vperm.slane %v1199_v39, %v3194_v27  ;;  %v1254_v11 = vrot.slane %v1241_v41, 4 }
 0x4f3   : > { %v1187_v43 = vsel %vm1162_vm11, %v1186_v36, %v1169_v38  ;;  %v1188_v44 = vrot.slane %v1169_v38, 4  ;;  %v1201_v46 = vsel %vm1162_vm11, %v1185_v17, %v1200_v37  ;;  %v1124_v48 = vpop.f32.mrf.mxu3  ;;  %v1242_v57 = vrot.slane %v1237_v47, 4 }
 0x4f4   : > { %v1193_v49 = vperm.slane %v1187_v43, %v3194_v27  ;;  %v1209_v50 = vperm.slane %v1201_v46, %v3194_v27  ;;  %v1214_v51 = vrot.slane %v1205_v40, 4  ;;  %v1158_v12 = vmul.f32 %v2537_v42, %v1124_v48 }
 0x4f5   : > { %v1189_v14 = vsel %vm1162_vm11, %v1181_v24, %v1188_v44 }
 0x4f6   : > { %v1197_v54 = vperm.slane %v1189_v14, %v3194_v27  ;;  %v1210_v55 = vrot.slane %v1193_v49, 4  ;;  %v1216_v56 = vrot.slane %v1209_v50, 4  ;;  %v1218_v58 = vrot.slane %v1158_v12, 4 }
 0x4f7   : > { %v1221_v59 = vsel %vm1162_vm11, %v1158_v12, %v1220_v53  ;;  %v1215_v61 = vsel %vm1162_vm11, 0.0, %v1214_v51 }
 0x4f8   : > { %v1212_v60 = vrot.slane %v1197_v54, 4  ;;  %v1217_v15 = vsel %vm1162_vm11, 0.0, %v1216_v56  ;;  %v1285_v62 = vsel %vm1162_vm11, %v1216_v56, %v1205_v40  ;;  %v1211_v63 = vsel %vm1162_vm11, 0.0, %v1210_v55 }
 0x4f9   : > { %v1290_v0 = vrot.slane %v1217_v15, 4  ;;  %v1219_v1 = vsel %vm1162_vm11, %v1218_v58, %v1154_v33  ;;  %v1229_v3 = vperm.slane %v1221_v59, %v3187_v2  ;;  %v1289_v5 = vperm.slane %v1285_v62, %v3187_v2 }
 0x4fa   : > { %v1213_v4 = vsel %vm1162_vm11, 0.0, %v1212_v60  ;;  %v1225_v6 = vperm.slane %v1219_v1, %v3187_v2  ;;  %v1274_v7 = vsel %vm1162_vm11, %v1212_v60, %v1193_v49 }
 0x4fb   : > { %v1279_v9 = vrot.slane %v1213_v4, 4  ;;  %v1291_v10 = vsel %vm1162_vm11, %v1290_v0, %v1215_v61  ;;  %v1255_v13 = vsel %vm1162_vm11, %v1254_v11, %v1229_v3  ;;  %v1256_v16 = vrot.slane %v1229_v3, 4 }
 0x4fc   : > { %v1243_v17 = vsel %vm1162_vm11, %v1242_v57, %v1225_v6  ;;  %v1244_v18 = vrot.slane %v1225_v6, 4  ;;  %v1261_v19 = vperm.slane %v1255_v13, %v3194_v27  ;;  %v1278_v20 = vperm.slane %v1274_v7, %v3187_v2 }
 0x4fd   : > { %v1249_v21 = vperm.slane %v1243_v17, %v3194_v27  ;;  %v1257_v22 = vsel %vm1162_vm11, %v1241_v41, %v1256_v16  ;;  %v1280_v23 = vsel %vm1162_vm11, %v1279_v9, %v1211_v63  ;;  %v1295_v24 = vperm.slane %v1291_v10, %v3187_v2 }
 0x4fe   : > { %v1245_v25 = vsel %vm1162_vm11, %v1237_v47, %v1244_v18  ;;  %v1265_v26 = vperm.slane %v1257_v22, %v3194_v27  ;;  %v1270_v28 = vrot.slane %v1261_v19, 4  ;;  %v1284_v29 = vperm.slane %v1280_v23, %v3187_v2 }
 0x4ff   : > { %v1253_v30 = vperm.slane %v1245_v25, %v3194_v27  ;;  %v1298_v31 = vrot.slane %v1278_v20, 4  ;;  %v1310_v32 = vrot.slane %v1289_v5, 4  ;;  %v1266_v33 = vrot.slane %v1249_v21, 4 }
 0x500   : > { %v1272_v34 = vrot.slane %v1265_v26, 4  ;;  %v1296_v38 = vrot.slane %v1284_v29, 4  ;;  %v1308_v39 = vrot.slane %v1295_v24, 4  ;;  %v1271_v37 = vsel %vm1162_vm11, 0.0, %v1270_v28 }
 0x501   : > { %v1268_v35 = vrot.slane %v1253_v30, 4  ;;  %v1311_v36 = vsel %vm1162_vm11, %v1295_v24, %v1310_v32  ;;  %v1299_v42 = vsel %vm1162_vm11, %v1284_v29, %v1298_v31  ;;  %v1267_v48 = vsel %vm1162_vm11, 0.0, %v1266_v33  ;;  %v2322_v30 = vld [vmem:[#allocation10 + $0x28] sm:$0xff]  ;;  %v2321_v31 = vld [vmem:[#allocation10 + $0x20] sm:$0xff]  ;;  %v2320_v32 = vld [vmem:[#allocation10 + $0x18] sm:$0xff] }
 0x502   : > { %v1273_v40 = vsel %vm1162_vm11, 0.0, %v1272_v34  ;;  %v1339_v41 = vsel %vm1162_vm11, %v1272_v34, %v1261_v19  ;;  %v1319_v50 = vperm.slane %v1311_v36, %v3194_v27  ;;  %v1297_v53 = vsel %vm1162_vm11, %v1296_v38, %v1278_v20  ;;  %v2319_v33 = vld [vmem:[#allocation10 + $0x10] sm:$0xff]  ;;  %v2318_v34 = vld [vmem:[#allocation10 + $0x8] sm:$0xff] }
 0x503   : > { %v1269_v43 = vsel %vm1162_vm11, 0.0, %v1268_v35  ;;  %v1343_v44 = vperm.slane %v1339_v41, %v3187_v2  ;;  %v1344_v46 = vrot.slane %v1273_v40, 4  ;;  %v1328_v47 = vsel %vm1162_vm11, %v1268_v35, %v1249_v21  ;;  %v2317_v35 = vld [vmem:[#allocation10] sm:$0xff] }
 0x504   : > { %v1333_v49 = vrot.slane %v1269_v43, 4  ;;  %v1332_v51 = vperm.slane %v1328_v47, %v3187_v2  ;;  %v1309_v14 = vsel %vm1162_vm11, %v1308_v39, %v1289_v5  ;;  %v1307_v54 = vperm.slane %v1299_v42, %v3194_v27 }
 0x505   : > { %v1345_v12 = vsel %vm1162_vm11, %v1344_v46, %v1271_v37  ;;  %v1364_v52 = vrot.slane %v1343_v44, 4  ;;  %v1303_v58 = vperm.slane %v1297_v53, %v3194_v27  ;;  %v1315_v59 = vperm.slane %v1309_v14, %v3194_v27 }
 0x506   : > { %v1334_v55 = vsel %vm1162_vm11, %v1333_v49, %v1267_v48  ;;  %v1349_v56 = vperm.slane %v1345_v12, %v3187_v2  ;;  %v1352_v57 = vrot.slane %v1332_v51, 4  ;;  %v1324_v60 = vrot.slane %v1319_v50, 4 }
 0x507   : > { %v1338_v11 = vperm.slane %v1334_v55, %v3187_v2  ;;  %v1320_v0 = vrot.slane %v1315_v59, 4  ;;  %v1326_v3 = vrot.slane %v1307_v54, 4  ;;  %v1322_v17 = vrot.slane %v1303_v58, 4 }
 0x508   : > { %v1365_v61 = vsel %vm1162_vm11, %v1349_v56, %v1364_v52  ;;  %v1362_v15 = vrot.slane %v1349_v56, 4  ;;  %v1325_v9 = vsel %vm1162_vm11, %v1324_v60, %v1307_v54  ;;  %v1431_v52 = vperm.slane %v3119_v45, 4  ;;  %v2542_v54 = vld [vmem:[%s3077_s25] sm:$0xff] }
 0x509   : > { %v1353_v62 = vsel %vm1162_vm11, %v1338_v11, %v1352_v57  ;;  %v1373_v63 = vperm.slane %v1365_v61, %v3194_v27  ;;  %v1350_v4 = vrot.slane %v1338_v11, 4  ;;  %v1321_v7 = vsel %vm1162_vm11, %v1320_v0, %v1303_v58  ;;  %v2543_v11 = vld [vmem:[%s3077_s25 + $0x8] sm:$0xff]  ;;  %s1855_s25 = sshll.u32 %s1852_s20, 4  ;;  %s1856_s25 = int_to_ptr.hbm [resolvable:$true] %s1855_s25 }
 0x50a   : > { %v1361_v1 = vperm.slane %v1353_v62, %v3194_v27  ;;  %v1363_v5 = vsel %vm1162_vm11, %v1362_v15, %v1343_v44  ;;  %v1327_v21 = vsel %vm1162_vm11, %v1319_v50, %v1326_v3  ;;  %v1323_v26 = vsel %vm1162_vm11, %v1315_v59, %v1322_v17  ;;  %v2340_v3 = vld [vmem:[#allocation11 + $0x74] sm:$0xf0]  ;;  %s2769_s17 = sshra.s32 %s1856_s25, 4  ;;  %s2770_s17 = int_to_ptr.hbm [resolvable:$true] %s2769_s17 }
 0x50b   : > { %v1378_v2 = vrot.slane %v1373_v63, 4  ;;  %v1369_v6 = vperm.slane %v1363_v5, %v3194_v27  ;;  %v1351_v13 = vsel %vm1162_vm11, %v1350_v4, %v1332_v51  ;;  %v2339_v4 = vld [vmem:[#allocation11 + $0x74] sm:$0xf]  ;;  %s2771_s21 = scalar_lea.hbm %s2770_s17, 16  ;;  %p2776_p7 = scmp.lt.s32.totalorder %s2770_s17, %s3355_s9 }
 0x50c   : > { %v1380_v10 = vrot.slane %v1361_v1, 4  ;;  %v1357_v18 = vperm.slane %v1351_v13, %v3194_v27  ;;  %v2323_v27 = vld [vmem:[#allocation10 + $0x30] sm:$0xff]  ;;  %p2772_p1 = scmp.ne.s32.totalorder %s2770_s17, %s2771_s21  ;;  %p2777_p9 = scmp.lt.s32.totalorder %s2775_s13, %s2771_s21 }
 0x50d   : > { %v1379_v16 = vsel %vm1162_vm11, %v1378_v2, %v1361_v1  ;;  %v1374_v19 = vrot.slane %v1369_v6, 4  ;;  %1481 = vmatpush.bf16.msrb.mxu1 %v2323_v27  ;;  %v2216_v1 = vld [vmem:[#allocation11 + $0x70] sm:$0xf]  ;;  %v2218_v2 = vld [vmem:[#allocation11 + $0x78] sm:$0xf0] }
 0x50e   : > { %v2490_v20 = vpack.i.bf16 %v1379_v16, %v1325_v9  ;;  %v1381_v22 = vsel %vm1162_vm11, %v1373_v63, %v1380_v10  ;;  %v1376_v24 = vrot.slane %v1357_v18, 4  ;;  %v2217_v5 = vor.u32 %v2340_v3, %v2216_v1  ;;  %v2338_v9 = vld [vmem:[#allocation11 + $0x64] sm:$0xf0]  ;;  %v2337_v10 = vld [vmem:[#allocation11 + $0x64] sm:$0xf]  ;;  %p2773_p3 = pnand %p2772_p1, %p3008_p0  ;;  %p2778_p4 = por %p2777_p9, %p2776_p7 }
 0x50f   : > { %v2495_v23 = vpack.i.bf16 %v1381_v22, %v1327_v21  ;;  %v1375_v25 = vsel %vm1162_vm11, %v1374_v19, %v1357_v18  ;;  %v2210_v16 = vld [vmem:[#allocation11 + $0x68] sm:$0xf0]  ;;  %v2200_v18 = vld [vmem:[#allocation11 + $0x50] sm:$0xf]  ;;  %v2336_v19 = vld [vmem:[#allocation11 + $0x54] sm:$0xf0] }
 0x510   : > { %2491 = vrot.lane.b32.xlu0 %v2490_v20, %s2851_s19  ;;  %v1377_v28 = vsel %vm1162_vm11, %v1369_v6, %v1376_v24  ;;  %v2221_v6 = vor.u32 %v2339_v4, %v2218_v2  ;;  %1645 = vmatpush.bf16.msrb.mxu2 %v2217_v5  ;;  %v2213_v17 = vor.u32 %v2337_v10, %v2210_v16  ;;  %v2335_v20 = vld [vmem:[#allocation11 + $0x54] sm:$0xf]  ;;  %v2202_v22 = vld [vmem:[#allocation11 + $0x58] sm:$0xf0]  ;;  %v2192_v24 = vld [vmem:[#allocation11 + $0x40] sm:$0xf]  ;;  %p2774_p13 = pneg %p2773_p3 }
 0x511   : > { %2496 = vrot.lane.b32.xlu1 %v2495_v23, %s2852_s23  ;;  %v2485_v29 = vpack.i.bf16 %v1377_v28, %v1323_v26  ;;  %1482 = vmatpush.bf16.msrb.mxu1 %v2322_v30  ;;  %v2201_v21 = vor.u32 %v2336_v19, %v2200_v18  ;;  %v2205_v23 = vor.u32 %v2335_v20, %v2202_v22  ;;  %v2333_v26 = vld [vmem:[#allocation11 + $0x44] sm:$0xf]  ;;  %v2184_v30 = vld [vmem:[#allocation11 + $0x30] sm:$0xf]  ;;  %v2346_v3 = vld [vmem:[#allocation13 + $0x28] sm:$0xff] }
 0x512   : > { %1659 = vmatpush.bf16.msra.mxu3 %v2221_v6  ;;  %v2354_v5 = vld [vmem:[#allocation13 + $0x68] sm:$0xff]  ;;  %v2345_v6 = vld [vmem:[#allocation13 + $0x20] sm:$0xff]  ;;  %p2779_p8 = pnand %p2778_p4, %p2774_p13 }
 0x513   : > { %2486 = vrot.lane.b32.xlu2 %v2485_v29, %s2853_s14  ;;  %v2194_v29 = vld [vmem:[#allocation11 + $0x48] sm:$0xf0] }
 0x514   : > { %v2197_v27 = vor.u32 %v2333_v26, %v2194_v29 }
 0x515   : > { %1483 = vmatpush.bf16.msrb.mxu1 %v2321_v31  ;;  %v2332_v31 = vld [vmem:[#allocation11 + $0x34] sm:$0xf0] }
 0x516   : > { %1660 = vmatpush.bf16.msra.mxu3 %v2213_v17 }
 0x519   : > { %1484 = vmatpush.bf16.msrb.mxu1 %v2320_v32  ;;  %v2331_v32 = vld [vmem:[#allocation11 + $0x34] sm:$0xf] }
 0x51a   : > { %1661 = vmatpush.bf16.msra.mxu3 %v2205_v23 }
 0x51d   : > { %1485 = vmatpush.bf16.msrb.mxu1 %v2319_v33  ;;  %v2185_v33 = vor.u32 %v2332_v31, %v2184_v30 }
 0x51e   : > { %1662 = vmatpush.bf16.msra.mxu3 %v2197_v27 }
 0x521   : > { %1486 = vmatpush.bf16.msrb.mxu1 %v2318_v34  ;;  %v2186_v34 = vld [vmem:[#allocation11 + $0x38] sm:$0xf0] }
 0x525   : > { %1487 = vmatpush.bf16.msrb.mxu1 %v2317_v35  ;;  %v2189_v35 = vor.u32 %v2331_v32, %v2186_v34  ;;  %v2352_v32 = vld [vmem:[#allocation13 + $0x58] sm:$0xff]  ;;  %v2351_v34 = vld [vmem:[#allocation13 + $0x50] sm:$0xff] }
 0x527   : > { %1663 = vmatpush.bf16.msra.mxu3 %v2189_v35  ;;  %v2342_v35 = vld [vmem:[#allocation13 + $0x8] sm:$0xff] }
 0x56d   : > { %v2487_v36 = vpop.permute.xlu2 %2486 }
 0x56e   : > { %v2489_v38 = vunpack.i.h.bf16 %v2487_v36  ;;  %v2488_v39 = vunpack.i.l.bf16 %v2487_v36  ;;  %v2176_v36 = vld [vmem:[#allocation11 + $0x20] sm:$0xf] }
 0x570   : > { %v1407_v43 = vsel %vm882_vm7, %v1375_v25, %v2489_v38  ;;  %v1406_v44 = vsel %vm882_vm7, %v1321_v7, %v2488_v39  ;;  %v2208_v7 = vld [vmem:[#allocation11 + $0x60] sm:$0xf]  ;;  %v2334_v25 = vld [vmem:[#allocation11 + $0x44] sm:$0xf0]  ;;  %v2329_v39 = vld [vmem:[#allocation11 + $0x24] sm:$0xf] }
 0x571   : > { %v2209_v13 = vor.u32 %v2338_v9, %v2208_v7  ;;  %v2193_v28 = vor.u32 %v2334_v25, %v2192_v24  ;;  %v2330_v38 = vld [vmem:[#allocation11 + $0x24] sm:$0xf0] }
 0x573   : > { %1646 = vmatpush.bf16.msrb.mxu2 %v2209_v13 }
 0x577   : > { %1647 = vmatpush.bf16.msrb.mxu2 %v2201_v21  ;;  %v3300_v21 = vld [vmem:[#allocation7] sm:$0xff] }
 0x578   : > { %v1536_v22 = vperm.slane %v3300_v21, 2 }
 0x57b   : > { %1648 = vmatpush.bf16.msrb.mxu2 %v2193_v28  ;;  %v1539_v28 = vperm.slane %v3300_v21, 3 }
 0x57f   : > { %1649 = vmatpush.bf16.msrb.mxu2 %v2185_v33  ;;  %v2343_v33 = vld [vmem:[#allocation13 + $0x10] sm:$0xff] }
 0x582   : > { %v2492_v37 = vpop.permute.xlu0 %2491 }
 0x583   : > { %v2494_v40 = vunpack.i.h.bf16 %v2492_v37  ;;  %v2493_v41 = vunpack.i.l.bf16 %v2492_v37  ;;  %v2497_v42 = vpop.permute.xlu1 %2496  ;;  %v2177_v37 = vor.u32 %v2330_v38, %v2176_v36  ;;  %v2350_v36 = vld [vmem:[#allocation13 + $0x48] sm:$0xff]  ;;  %v2349_v38 = vld [vmem:[#allocation13 + $0x40] sm:$0xff] }
 0x584   : > { %v2499_v46 = vunpack.i.h.bf16 %v2497_v42  ;;  %v2498_v47 = vunpack.i.l.bf16 %v2497_v42  ;;  %v2328_v42 = vld [vmem:[#allocation11 + $0x14] sm:$0xf0] }
 0x585   : > { %v1409_v48 = vsel %vm1408_vm12, %v1406_v44, %v2493_v41  ;;  %v1410_v49 = vsel %vm1408_vm12, %v1407_v43, %v2494_v40  ;;  %v2178_v40 = vld [vmem:[#allocation11 + $0x28] sm:$0xf0]  ;;  %v2168_v41 = vld [vmem:[#allocation11 + $0x10] sm:$0xf]  ;;  %1650 = vmatpush.bf16.msrb.mxu2 %v2177_v37 }
 0x586   : > { %v1412_v50 = vsel %vm1411_vm13, %v1409_v48, %v2498_v47  ;;  %v1413_v51 = vsel %vm1411_vm13, %v1410_v49, %v2499_v46  ;;  %v2181_v44 = vor.u32 %v2329_v39, %v2178_v40  ;;  %v2327_v46 = vld [vmem:[#allocation11 + $0x14] sm:$0xf]  ;;  %v2170_v47 = vld [vmem:[#allocation11 + $0x18] sm:$0xf0]  ;;  %v2169_v49 = vor.u32 %v2328_v42, %v2168_v41  ;;  %v1559_v39 = vld [vmem:[%s3353_s7] sm:$0x3] }
 0x587   : > { %v1414_v12 = vpack.c.bf16 %v1413_v51, %v1412_v50  ;;  %v2173_v50 = vor.u32 %v2327_v46, %v2170_v47  ;;  %v2160_v51 = vld [vmem:[#allocation11] sm:$0xf]  ;;  %v1561_v41 = vperm.slane %v1559_v39, 0  ;;  %v1562_v42 = vperm.slane %v1559_v39, 1 }
 0x588   : > { %1664 = vmatpush.bf16.msra.mxu3 %v2181_v44 }
 0x589   : > { %1488 = vmatmul.bf16.vlgmr.msrb.gmra.mxu1 %v1414_v12  ;;  %v2326_v12 = vld [vmem:[#allocation11 + $0x4] sm:$0xf0]  ;;  %1651 = vmatpush.bf16.msrb.mxu2 %v2169_v49 }
 0x58c   : > { %1665 = vmatpush.bf16.msra.mxu3 %v2173_v50 }
 0x606   : > { %v1489_v53 = vpop.f32.mrf.mxu1 }
 0x607   : > { %v1490_v14 = vadd.f32 %v1489_v53, %v1431_v52  ;;  %v2325_v53 = vld [vmem:[#allocation11 + $0x4] sm:$0xf] }
 0x609   : > { %v3278_v55 = vadd.f32 %v2542_v54, %v1490_v14  ;;  %v2162_v14 = vld [vmem:[#allocation11 + $0x8] sm:$0xf0]  ;;  %v2161_v54 = vor.u32 %v2326_v12, %v2160_v51 }
 0x60b   : > { %1496 = vadd.xlane.f32.xlu0 %v3278_v55  ;;  %1652 = vmatpush.bf16.msrb.mxu2 %v2161_v54  ;;  %v1711_v54 = vperm.slane %v3300_v21, 5 }
 0x60e   : > { %v1491_v56 = vpop.f32.mrf.mxu1 }
 0x60f   : > { %v1492_v57 = vadd.f32 %v1491_v56, %v1431_v52  ;;  %v2165_v56 = vor.u32 %v2325_v53, %v2162_v14 }
 0x611   : > { %v3282_v58 = vadd.f32 %v2543_v11, %v1492_v57  ;;  %v2348_v57 = vld [vmem:[#allocation13 + $0x38] sm:$0xff]  ;;  %1666 = vmatpush.bf16.msra.mxu3 %v2165_v56 }
 0x612   : > { %v2356_v11 = vld [vmem:[#allocation13 + $0x78] sm:$0xff]  ;;  %1808 = vmatpush.bf16.msrb.mxu0 %v2348_v57 }
 0x613   : > { %1498 = vadd.xlane.f32.xlu2 %v3282_v58  ;;  %1822 = vmatpush.bf16.msra.mxu1 %v2356_v11 }
 0x67e   : > { %v1497_v59 = vpop.xlane.xlu0 %1496 }
 0x67f   : > { %v1500_v60 = vmul.f32 %v1497_v59, %v3105_v8 }
 0x681   : > { %v3287_v61 = vsub.f32 %v3278_v55, %v1500_v60 }
 0x683   : > { %v1504_v45 = vmul.f32 %v3287_v61, %v3287_v61 }
 0x685   : > { %1506 = vadd.xlane.f32.xlu1 %v1504_v45  ;;  %v2347_v45 = vld [vmem:[#allocation13 + $0x30] sm:$0xff] }
 0x686   : > { %v1499_v15 = vpop.xlane.xlu2 %1498  ;;  %1809 = vmatpush.bf16.msrb.mxu0 %v2347_v45 }
 0x687   : > { %v1501_v62 = vmul.f32 %v1499_v15, %v3105_v8  ;;  %v2355_v15 = vld [vmem:[#allocation13 + $0x70] sm:$0xff] }
 0x688   : > { %1823 = vmatpush.bf16.msra.mxu1 %v2355_v15 }
 0x689   : > { %v3293_v63 = vsub.f32 %v3282_v58, %v1501_v62 }
 0x68a   : > { %1810 = vmatpush.bf16.msrb.mxu0 %v2346_v3 }
 0x68b   : > { %v1505_v0 = vmul.f32 %v3293_v63, %v3293_v63 }
 0x68c   : > { %1824 = vmatpush.bf16.msra.mxu1 %v2354_v5 }
 0x68d   : > { %1508 = vadd.xlane.f32.xlu2 %v1505_v0 }
 0x68e   : > { %1811 = vmatpush.bf16.msrb.mxu0 %v2345_v6 }
 0x6f8   : > { %v1507_v43 = vpop.xlane.xlu1 %1506 }
 0x6f9   : > { %v1510_v48 = vmul.f32 %v1507_v43, %v3105_v8 }
 0x6fb   : > { %v1512_v52 = vadd.f32 1e-05, %v1510_v48 }
 0x6fd   : > { %2538 = vrsqrt.f32 %v1512_v52  ;;  %vm1520_vm15 = vweird.f32 %v1512_v52 }
 0x700   : > { %v1509_v59 = vpop.xlane.xlu2 %1508 }
 0x701   : > { %v1511_v60 = vmul.f32 %v1509_v59, %v3105_v8  ;;  %v2353_v8 = vld [vmem:[#allocation13 + $0x60] sm:$0xff] }
 0x702   : > { %1825 = vmatpush.bf16.msra.mxu1 %v2353_v8 }
 0x703   : > { %v2539_v62 = vpop.eup %2538  ;;  %v1513_v0 = vadd.f32 1e-05, %v1511_v60 }
 0x704   : > { %v1515_v1 = vmul.f32 %v2539_v62, %v1512_v52  ;;  %vm1521_vm14 = vweird.f32 %v2539_v62 }
 0x705   : > { %2540 = vrsqrt.f32 %v1513_v0  ;;  %vm1522_vm0 = vmor %vm1520_vm15, %vm1521_vm14  ;;  %vm1530_vm2 = vweird.f32 %v1513_v0 }
 0x706   : > { %v1516_v4 = vmul.f32 %v2539_v62, %v1515_v1  ;;  %1826 = vmatpush.bf16.msra.mxu1 %v2352_v32 }
 0x708   : > { %v1517_v2 = vmul.f32 0.5, %v1516_v4 }
 0x70a   : > { %v1518_v7 = vsub.f32 1.5, %v1517_v2  ;;  %1827 = vmatpush.bf16.msra.mxu1 %v2351_v34 }
 0x70b   : > { %v2541_v9 = vpop.eup %2540 }
 0x70c   : > { %v1519_v10 = vmul.f32 %v2539_v62, %v1518_v7  ;;  %v1525_v13 = vmul.f32 %v2541_v9, %v1513_v0  ;;  %vm1531_vm1 = vweird.f32 %v2541_v9 }
 0x70d   : > { %vm1532_vm3 = vmor %vm1530_vm2, %vm1531_vm1 }
 0x70e   : > { %v1526_v16 = vmul.f32 %v2541_v9, %v1525_v13  ;;  %v1523_v17 = vsel %vm1522_vm0, %v2539_v62, %v1519_v10  ;;  %1828 = vmatpush.bf16.msra.mxu1 %v2350_v36 }
 0x70f   : > { %v1534_v20 = vmul.f32 %v1523_v17, %v3287_v61  ;;  %v2344_v61 = vld [vmem:[#allocation13 + $0x18] sm:$0xff] }
 0x710   : > { %v1527_v18 = vmul.f32 0.5, %v1526_v16  ;;  %1812 = vmatpush.bf16.msrb.mxu0 %v2344_v61 }
 0x711   : > { %v1537_v26 = vmul.f32 %v1536_v22, %v1534_v20 }
 0x712   : > { %v1528_v19 = vsub.f32 1.5, %v1527_v18  ;;  %1829 = vmatpush.bf16.msra.mxu1 %v2349_v38 }
 0x713   : > { %v1540_v27 = vadd.f32 %v1539_v28, %v1537_v26 }
 0x714   : > { %v1529_v23 = vmul.f32 %v2541_v9, %v1528_v19  ;;  %1813 = vmatpush.bf16.msrb.mxu0 %v2343_v33 }
 0x716   : > { %v1533_v24 = vsel %vm1532_vm3, %v2541_v9, %v1529_v23 }
 0x717   : > { %v1535_v25 = vmul.f32 %v1533_v24, %v3293_v63  ;;  %v2341_v63 = vld [vmem:[#allocation13] sm:$0xff] }
 0x718   : > { %1814 = vmatpush.bf16.msrb.mxu0 %v2342_v35 }
 0x719   : > { %v1538_v29 = vmul.f32 %v1536_v22, %v1535_v25 }
 0x71b   : > { %v1541_v30 = vadd.f32 %v1539_v28, %v1538_v29 }
 0x71c   : > { %1815 = vmatpush.bf16.msrb.mxu0 %v2341_v63 }
 0x71d   : > { %v1542_v31 = vpack.c.bf16 %v1541_v30, %v1540_v27 }
 0x71f   : > { %1653 = vmatmul.bf16.vlgmr.msrb.gmra.mxu2 %v1542_v31  ;;  %1667 = vmatmul.bf16.vlgmr.msra.gmra.mxu3 %v1542_v31 }
 0x7a2   : > { %v1654_v37 = vpop.f32.mrf.mxu2  ;;  %v1668_v40 = vpop.f32.mrf.mxu3 }
 0x7a3   : > { %v1655_v43 = vadd.f32 %v1654_v37, %v1561_v41  ;;  %v1669_v44 = vadd.f32 %v1668_v40, %v1562_v42 }
 0x7a5   : > { %v1673_v50 = vmax.f32 %v1655_v43, 0.0  ;;  %v1674_v51 = vmax.f32 %v1669_v44, 0.0 }
 0x7aa   : > { %v1656_v46 = vpop.f32.mrf.mxu2  ;;  %v1670_v47 = vpop.f32.mrf.mxu3 }
 0x7ab   : > { %v1657_v48 = vadd.f32 %v1656_v46, %v1561_v41  ;;  %v1671_v49 = vadd.f32 %v1670_v47, %v1562_v42 }
 0x7ad   : > { %v1675_v12 = vmax.f32 %v1657_v48, 0.0  ;;  %v1676_v52 = vmax.f32 %v1671_v49, 0.0 }
 0x7af   : > { %v1677_v53 = vpack.c.bf16 %v1675_v12, %v1673_v50  ;;  %v1678_v14 = vpack.c.bf16 %v1676_v52, %v1674_v51 }
 0x7b1   : > { %1816 = vmatmul.bf16.vlgmr.msrb.gmra.mxu0 %v1677_v53  ;;  %1830 = vmatmul.bf16.vlgmr.msra.gmra.mxu1 %v1678_v14 }
 0x82e   : > { %v1817_v56 = vpop.f32.mrf.mxu0  ;;  %v1831_v57 = vpop.f32.mrf.mxu1 }
 0x82f   : > { %v1818_v11 = vadd.f32 %v1817_v56, %v1711_v54 }
 0x831   : > { %v1832_v59 = vadd.f32 %v1831_v57, %v1818_v11 }
 0x833   : > { %v1836_v60 = vadd.f32 %v1832_v59, %v3278_v55 }
 0x835   : > { %1838 = vst [vmem:[%s474_s11] sm:$0xff] %v1836_v60 }
 0x836   : > { %v1819_v45 = vpop.f32.mrf.mxu0  ;;  %v1833_v62 = vpop.f32.mrf.mxu1 }
 0x837   : > { %v1820_v15 = vadd.f32 %v1819_v45, %v1711_v54 }
 0x839   : > { %v1834_v0 = vadd.f32 %v1833_v62, %v1820_v15 }
 0x83b   : > { %v1837_v1 = vadd.f32 %v1834_v0, %v3282_v58 }
 0x83d   : > { %1839 = vst [vmem:[%s474_s11 + $0x8] sm:$0xff] %v1837_v1 }
 0x83e   : > { %2782 = shalt.err (!%p2779_p8)
}
 0x83f   : > { %s2857_s28 = smov 128   ;;  %s2858_s19 = smov 8  }
 0x840   : > { %2386 = dma.vmem_to_hbm [thread:$0]  (%p3008_p0), %s1854_s24, 256, %s1856_s25, %s1841_s16, %s2857_s28, %s2857_s28, %s2858_s19  }
 0x841 PF: > { %s1870_s23 = sand.u32 1, %s2825_s30   ;;  %p3387_p10 = scmp.ge.s32.totalorder %s2837_s12, 2 }
 0x842   : > { %s1871_s14 = scalar_lea.sflag [#allocation4], %s1870_s23 }
 0x843   : > { %p2412_p11 = pnand %p3387_p10, %p3016_p6 }
 0x845   : > { %p2413_p12 = pneg %p2412_p11 }
 0x847   : > { %2820 = dma.done.wait (%p2413_p12), %s1871_s14, 256  }
 0x848   : > { %2822 = vsyncadd (%p2413_p12), %s1871_s14, 4294967040  ;;  %s3388_s12 = sld [smem:[#allocation22_spill]]  ;;  %s3391_s30 = smov %s2829_s10 }
 0x849   : > { %s3389_s6 = sld [smem:[#allocation21_spill]] }
 0x84a   : > { %s3390_s11 = sld [smem:[#allocation23_spill]] }
 0x84e   : > { %p27_p2 = scmp.ge.s32.totalorder %s3388_s12, 4  }
 0x84f   : > { %s3392_s10 = smov %s3389_s6 }
 0x850   :  { %29 = sbr.rel (!%p27_p2) target bundleno = 15 (0xf), region = 134 }
 0x855   :  { %1877 = vsyncpa [#allocation3], 1 }
 0x856   :  { %1879 = vsyncpa [#allocation3 + $0x1], 1 }
 0x857   :  { %1880 = vsyncpa [#allocation6], 1 }
 0x858   :  { %1882 = vsyncpa [#allocation6 + $0x1], 1 }
 0x859   :  { %1883 = vsyncpa [#allocation9], 1 }
 0x85a   :  { %1884 = vsyncpa [#allocation12], 1 }
 0x85b   :  { %1885 = vsyncpa [#allocation4], 1 }
 0x85c   :  { %1887 = vsyncpa [#allocation4 + $0x1], 1 }

// kernel: tpu_custom_call.1
= control target key start
LH: loop header
LB: loop body
LE: loop exit
PB: predicated region body
PF: predicated region fallthrough
CT: control target
= control target key end

     0   :  { %s3076_s0 = inlined_call_operand.hbm [shape: f32[2,16,128], index: 0, kind: input, shape index: {}]   ;;  %s3077_s1 = inlined_call_operand.hbm [shape: bf16[2,16,16], index: 1, kind: input, shape index: {}]   ;;  %s3078_s2 = inlined_call_operand.hbm [shape: f32[8,128], index: 2, kind: input, shape index: {}]   ;;  %s3079_s3 = inlined_call_operand.hbm [shape: bf16[128,384], index: 3, kind: input, shape index: {}]   ;;  %s3080_s4 = inlined_call_operand.vmem [shape: f32[1,384], index: 4, kind: input, shape index: {}]   ;;  %s3081_s5 = inlined_call_operand.hbm [shape: bf16[128,128], index: 5, kind: input, shape index: {}]   ;;  %s3082_s6 = inlined_call_operand.hbm [shape: bf16[128,256], index: 6, kind: input, shape index: {}]   ;;  %s3083_s7 = inlined_call_operand.vmem [shape: f32[1,256], index: 7, kind: input, shape index: {}]   ;;  %s3084_s8 = inlined_call_operand.hbm [shape: bf16[256,128], index: 8, kind: input, shape index: {}]   ;;  %s3085_s9 = inlined_call_operand.hbm [shape: f32[2,16,128], index: 9, kind: output, shape index: {}]  }
   0x1   :  { %3093 = sst [smem:[#allocation24_spill]] %s3078_s2 }
   0x2   :  { %3094 = sst [smem:[#allocation25_spill]] %s3079_s3 }
   0x3   :  { %3095 = sst [smem:[#allocation26_spill]] %s3081_s5 }
   0x4   :  { %3096 = sst [smem:[#allocation27_spill]] %s3082_s6 }
   0x5   :  { %3097 = sst [smem:[#allocation28_spill]] %s3084_s8 }
   0x6   :  { %14 = vsyncpa [#allocation3], 0 }
   0x7   :  { %16 = vsyncpa [#allocation3 + $0x1], 0 }
   0x8   :  { %17 = vsyncpa [#allocation6], 0 }
   0x9   :  { %19 = vsyncpa [#allocation6 + $0x1], 0 }
   0xa   :  { %20 = vsyncpa [#allocation9], 0 }
   0xb   :  { %21 = vsyncpa [#allocation12], 0 }
   0xc   :  { %22 = vsyncpa [#allocation4], 0 }
   0xd   :  { %24 = vsyncpa [#allocation4 + $0x1], 0  ;;  %s2725_s30 = smov 0   ;;  %s2727_s10 = smov 0  }
   0xe   :  { %s2729_s11 = smov 0   ;;  %s2731_s12 = smov 0  }
   0xf LB: > { %3098 = sst [smem:[#allocation21_spill]] %s2651_s11  ;;  %s2749_s16 = sadd.s32 4294967295, %s2655_s12   ;;  %s2655_s12 = sphi %s2731_s12, %s3118_s12   ;;  %s2651_s11 = sphi %s2729_s11, %s3120_s11   ;;  %s2647_s10 = sphi %s2727_s10, %s3122_s10   ;;  %s2643_s30 = sphi %s2725_s30, %s3121_s30  }
  0x10   : > { %s3099_s2 = sld [smem:[#allocation24_spill]]  ;;  %p1783_p0 = scmp.ge.s32.totalorder %s2655_s12, 1 }
  0x11   : > { %p51_p1 = scmp.eq.s32.totalorder %s2749_s16, 0  ;;  %p260_p2 = scmp.lt.s32.totalorder %s2655_s12, 3 }
  0x12   : > { %s2657_s18 = smov [#allocation7]   ;;  %s3101_s3 = sld [smem:[#allocation25_spill]] }
  0x13   : > { %p2754_p3 = pnand %p1783_p0, %p260_p2  ;;  %s274_s19 = sshll.u32 %s2657_s18, 4  ;;  %s275_s19 = int_to_ptr.vmem [resolvable:$true] %s274_s19 }
  0x14   : > { %s2658_s24 = smov [#allocation8]   ;;  %s2659_s26 = smov 192  }
  0x15   : > { %p2171_p5 = pneg %p2754_p3  ;;  %s285_s25 = sshll.u32 %s2658_s24, 4  ;;  %s286_s25 = int_to_ptr.vmem [resolvable:$true] %s285_s25 }
  0x16   : > { %s272_s15 = sshll.u32 %s3099_s2, 4  ;;  %s2660_s27 = smov 12   ;;  %s273_s15 = int_to_ptr.hbm [resolvable:$true] %s272_s15 }
  0x17   : > { %p2766_p6 = pnand %p2171_p5, %p51_p1  ;;  %s3103_s6 = sld [smem:[#allocation27_spill]] }
  0x18   : > { %s283_s22 = sshll.u32 %s3101_s3, 4  ;;  %s2661_s14 = smov [#allocation11]   ;;  %s284_s22 = int_to_ptr.hbm [resolvable:$true] %s283_s22 }
  0x19   : > { %2174 = dma.hbm_to_vmem [thread:$0]  (!%p2766_p6), %s273_s15, 128, %s275_s19, [#allocation6]  }
  0x1a   : > { %2177 = dma.hbm_to_vmem [thread:$0]  (!%p2766_p6), %s284_s22, 3072, %s286_s25, [#allocation9], %s2659_s26, %s2659_s26, %s2660_s27  }
  0x1b   : > { %s316_s18 = sshll.u32 %s2661_s14, 4  ;;  %s3104_s5 = sld [smem:[#allocation26_spill]]  ;;  %s317_s18 = int_to_ptr.vmem [resolvable:$true] %s316_s18 }
  0x1c   : > { %s3088_s2 = smov 128   ;;  %s3089_s15 = smov 8  }
  0x1d   : > { %s314_s13 = sshll.u32 %s3103_s6, 4  ;;  %s2664_s19 = smov [#allocation10]   ;;  %s315_s13 = int_to_ptr.hbm [resolvable:$true] %s314_s13 }
  0x1e   : > { %2183 = dma.hbm_to_vmem [thread:$0]  (!%p2766_p6), %s315_s13, 2048, %s317_s18, [#allocation12], %s3088_s2, %s3088_s2, %s3089_s15  }
  0x1f   : > { %s302_s22 = sshll.u32 %s2664_s19, 4  ;;  %s3086_s25 = smov 64   ;;  %s303_s22 = int_to_ptr.vmem [resolvable:$true] %s302_s22 }
  0x20   : > { %s3087_s26 = smov 4   ;;  %s3105_s8 = sld [smem:[#allocation28_spill]] }
  0x21   : > { %s300_s24 = sshll.u32 %s3104_s5, 4  ;;  %s2667_s13 = smov [#allocation13]   ;;  %s301_s24 = int_to_ptr.hbm [resolvable:$true] %s300_s24 }
  0x22   : > { %2180 = dma.hbm_to_vmem [thread:$0]  (!%p2766_p6), %s301_s24, 1024, %s303_s22, [#allocation9], %s3086_s25, %s3086_s25, %s3087_s26  }
  0x23   : > { %s333_s14 = sshll.u32 %s2667_s13, 4  ;;  %s1782_s18 = sadd.s32 4294967294, %s2655_s12   ;;  %s334_s14 = int_to_ptr.vmem [resolvable:$true] %s333_s14 }
  0x24   : > { %s2800_s20 = sadd.s32 1, %s2655_s12   ;;  %s37_s21 = sadd.s32 1, %s2651_s11 }
  0x25   : > { %3106 = sst [smem:[#allocation22_spill]] %s2800_s20  ;;  %s34_s24 = ssub.s32 %s2655_s12, %s2800_s20 }
  0x26   : > { %s331_s29 = sshll.u32 %s3105_s8, 4  ;;  %p44_p7 = scmp.ne.s32.totalorder %s2651_s11, %s2647_s10  ;;  %s332_s29 = int_to_ptr.hbm [resolvable:$true] %s331_s29 }
  0x27   : > { %2186 = dma.hbm_to_vmem [thread:$0]  (!%p2766_p6), %s332_s29, 2048, %s334_s14, [#allocation12], %s3086_s25, %s3086_s25, %s3087_s26  }
  0x28   : > { %p35_p8 = scmp.eq.s32.totalorder %s34_s24, 0  ;;  %p45_p9 = scmp.eq.s32.totalorder %s2655_s12, 0 }
  0x29   : > { %p50_p10 = scmp.ne.s32.totalorder %s2647_s10, %s2643_s30  ;;  %p247_p11 = scmp.eq.s32.totalorder %s2749_s16, 1 }
  0x2a   : > { %s2812_s19 = scalar_select %p35_p8, %s2651_s11, %s37_s21  }
  0x2b   : > { %p2814_p12 = por %p45_p9, %p44_p7  ;;  %p2820_p13 = por %p51_p1, %p50_p10 }
  0x2c   : > { %3107 = sst [smem:[#allocation23_spill]] %s2812_s19  ;;  %p2824_p0 = por %p247_p11, %p44_p7 }
  0x2d   : > { %p253_p2 = scmp.eq.s32.totalorder %s1782_s18, 1  ;;  %p2203_p5 = scmp.lt.s32.totalorder %s2655_s12, 2 }
  0x2e   : > { %s2830_s28 = sand.u32 1, %s2651_s11   ;;  %s2074_s14 = sshll.u32 %s2655_s12, 4 }
  0x2f   : > { %p2832_p6 = por %p253_p2, %p50_p10  ;;  %s1790_s13 = sshll.u32 %s2830_s28, 4 }
  0x30   : > { %s356_s25 = scalar_lea.hbm %s3076_s0, %s2074_s14  ;;  %s351_s2 = scalar_lea.vmem [#allocation2], %s1790_s13 }
  0x31   : > { %s357_s26 = sshll.u32 %s356_s25, 4  ;;  %s359_s15 = sshll.u32 %s351_s2, 4  ;;  %s358_s26 = int_to_ptr.hbm [resolvable:$true] %s357_s26  ;;  %s360_s15 = int_to_ptr.vmem [resolvable:$true] %s359_s15 }
  0x32   : > { %p2843_p7 = pnand %p2203_p5, %p2814_p12  ;;  %s369_s3 = sand.u32 1, %s2655_s12  }
  0x33   : > { %s1793_s5 = sshll.u32 %s2830_s28, 3  ;;  %s348_s6 = scalar_lea.sflag [#allocation3], %s2830_s28 }
  0x34   : > { %s2513_s8 = sshra.s32 %s358_s26, 4  ;;  %p2517_p9 = pneg %p2843_p7  ;;  %s2514_s8 = int_to_ptr.hbm [resolvable:$true] %s2513_s8 }
  0x35   : > { %s2515_s19 = scalar_lea.hbm %s2514_s8, 16  ;;  %s2520_s23 = scalar_lea.hbm %s3076_s0, 32 }
  0x36   : > { %p2516_p8 = scmp.ne.s32.totalorder %s2514_s8, %s2515_s19  ;;  %p2521_p12 = scmp.lt.s32.totalorder %s2514_s8, %s3076_s0 }
  0x37   : > { %p2522_p2 = scmp.lt.s32.totalorder %s2520_s23, %s2515_s19 }
  0x38   : > { %p2518_p10 = pnand %p2517_p9, %p2516_p8 }
  0x39   : > { %p2523_p5 = por %p2522_p2, %p2521_p12 }
  0x3a   : > { %p2519_p11 = pneg %p2518_p10 }
  0x3c   : > { %p2524_p4 = pnand %p2523_p5, %p2519_p11 }
  0x3e   : > { %2527 = shalt.err (!%p2524_p4)
}
  0x3f   : > { %s3113_s28 = smov 8   ;;  %s3114_s21 = smov 128  }
  0x40   : > { %2190 = dma.hbm_to_vmem [thread:$0]  (!%p2843_p7), %s358_s26, 256, %s360_s15, %s348_s6, %s3114_s21, %s3114_s21, %s3113_s28  }
  0x41   : > { %s2075_s24 = sshll.u32 %s2655_s12, 3  ;;  %s373_s11 = scalar_lea.vmem [#allocation5], %s1793_s5 }
  0x42   : > { %s381_s2 = sshll.u32 %s373_s11, 4  ;;  %s378_s13 = scalar_lea.hbm %s3077_s1, %s2075_s24  ;;  %s382_s2 = int_to_ptr.vmem [resolvable:$true] %s381_s2 }
  0x43   : > { %s379_s8 = sshll.u32 %s378_s13, 4  ;;  %s370_s19 = scalar_lea.sflag [#allocation6], %s369_s3  ;;  %s380_s8 = int_to_ptr.hbm [resolvable:$true] %s379_s8 }
  0x44   : > { %s2543_s23 = sshra.s32 %s380_s8, 4  ;;  %s2550_s5 = scalar_lea.hbm %s3077_s1, 16  ;;  %s2544_s23 = int_to_ptr.hbm [resolvable:$true] %s2543_s23 }
  0x45   : > { %s2545_s14 = scalar_lea.hbm %s2544_s23, 8  ;;  %p2551_p11 = scmp.lt.s32.totalorder %s2544_s23, %s3077_s1 }
  0x46   : > { %p2546_p4 = scmp.ne.s32.totalorder %s2544_s23, %s2545_s14  ;;  %p2552_p12 = scmp.lt.s32.totalorder %s2550_s5, %s2545_s14 }
  0x48   : > { %p2548_p8 = pnand %p2546_p4, %p2517_p9  ;;  %p2553_p2 = por %p2552_p12, %p2551_p11 }
  0x4a   : > { %p2549_p10 = pneg %p2548_p8 }
  0x4c   : > { %p2554_p5 = pnand %p2553_p2, %p2549_p10 }
  0x4e   : > { %2557 = shalt.err (!%p2554_p5)
}
  0x4f   : > { %s3115_s3 = smov 4   ;;  %s3116_s20 = smov 64  }
  0x50   : > { %2193 = dma.hbm_to_vmem [thread:$0]  (!%p2843_p7), %s380_s8, 128, %s382_s2, %s370_s19, %s3116_s20, %s3116_s20, %s3115_s3  }
  0x51   : > { %393 = sbr.rel (%p2754_p3) target bundleno = 1882 (0x75a), region = 56  ;;  %s2887_s28 = sand.u32 (!%p2754_p3), 1, %s2647_s10  }
  0x52   : > { %s1797_s21 = sshll.u32 (!%p2754_p3), %s2887_s28, 4  ;;  %s396_s24 = scalar_lea.sflag (!%p2754_p3), [#allocation3], %s2887_s28 }
  0x53   : > { %s399_s25 = scalar_lea.vmem (!%p2754_p3), [#allocation2], %s1797_s21 }
  0x56   : > { %2618 = dma.done.wait (%p2820_p13), %s396_s24, 256  }
  0x57   : > { %2620 = vsyncadd (%p2820_p13), %s396_s24, 4294967040  ;;  %s405_s17 = sand.u32 1, %s2749_s16   ;;  %s1798_s18 = sshll.u32 %s2887_s28, 3 }
  0x58   : > { %s406_s2 = scalar_lea.sflag [#allocation6], %s405_s17  ;;  %s2899_s13 = scalar_lea.vmem [#allocation5], %s1798_s18 }
  0x59   : > { %2622 = dma.done.wait (%p2820_p13), %s406_s2, 128  }
  0x5a   : > { %2624 = vsyncadd (%p2820_p13), %s406_s2, 4294967168 }
  0x5b   : > { %2626 = dma.done.wait (%p51_p1), [#allocation6], 128  }
  0x5c   : > { %2628 = vsyncadd (%p51_p1), [#allocation6], 4294967168 }
  0x5d   : > { %2630 = dma.done.wait (%p51_p1), [#allocation9], 4096  }
  0x5e   : > { %2632 = vsyncadd (%p51_p1), [#allocation9], 4294963200 }
  0x5f   : > { %2634 = dma.done.wait (%p51_p1), [#allocation12], 4096  }
  0x60   : > { %2636 = vsyncadd (%p51_p1), [#allocation12], 4294963200  ;;  %v2917_v0 = vld [vmem:[%s399_s25] sm:$0xff]  ;;  %v2920_v1 = vld [vmem:[%s399_s25 + $0x8] sm:$0xff]  ;;  %v2668_v2 = vmov 128.0   ;;  %s2669_s19 = smov 64  }
  0x61   : > { %487 = vadd.xlane.f32.xlu0 %v2917_v0  ;;  %2320 = vrcp.f32 %v2668_v2  ;;  %v1891_v17 = vld [vmem:[#allocation8 + $0xa8] sm:$0xf]  ;;  %v2098_v18 = vld [vmem:[#allocation8 + $0xb0] sm:$0xf0]  ;;  %v2097_v19 = vld [vmem:[#allocation8 + $0xac] sm:$0xf] }
  0x62   : > { %v1892_v20 = vor.u32 %v2098_v18, %v1891_v17  ;;  %v1893_v21 = vld [vmem:[#allocation8 + $0xb4] sm:$0xf0]  ;;  %v1899_v22 = vld [vmem:[#allocation8 + $0xb0] sm:$0xf]  ;;  %v2099_v23 = vld [vmem:[#allocation8 + $0xb8] sm:$0xf0] }
  0x63   : > { %v1896_v24 = vor.u32 %v2097_v19, %v1893_v21  ;;  %v1900_v25 = vor.u32 %v2099_v23, %v1899_v22  ;;  %v1879_v26 = vld [vmem:[#allocation8 + $0x90] sm:$0xf]  ;;  %v2095_v27 = vld [vmem:[#allocation8 + $0x98] sm:$0xf0]  ;;  %v2094_v28 = vld [vmem:[#allocation8 + $0x94] sm:$0xf] }
  0x64   : > { %709 = vmatpush.bf16.msra.mxu0 %v1892_v20  ;;  %v1880_v29 = vor.u32 %v2095_v27, %v1879_v26  ;;  %v1881_v30 = vld [vmem:[#allocation8 + $0x9c] sm:$0xf0]  ;;  %v1887_v31 = vld [vmem:[#allocation8 + $0x98] sm:$0xf]  ;;  %v2096_v32 = vld [vmem:[#allocation8 + $0xa0] sm:$0xf0] }
  0x65   : > { %723 = vmatpush.bf16.msra.mxu1 %v1896_v24  ;;  %737 = vmatpush.bf16.msra.mxu2 %v1900_v25  ;;  %v1884_v33 = vor.u32 %v2094_v28, %v1881_v30  ;;  %v1888_v34 = vor.u32 %v2096_v32, %v1887_v31  ;;  %v1867_v35 = vld [vmem:[#allocation8 + $0x78] sm:$0xf]  ;;  %v2092_v36 = vld [vmem:[#allocation8 + $0x80] sm:$0xf0]  ;;  %v2091_v37 = vld [vmem:[#allocation8 + $0x7c] sm:$0xf] }
  0x66   : > { %v1868_v38 = vor.u32 %v2092_v36, %v1867_v35  ;;  %v1869_v39 = vld [vmem:[#allocation8 + $0x84] sm:$0xf0]  ;;  %v1875_v40 = vld [vmem:[#allocation8 + $0x80] sm:$0xf]  ;;  %v2093_v41 = vld [vmem:[#allocation8 + $0x88] sm:$0xf0] }
  0x67   : > { %v2321_v3 = vpop.eup %2320  ;;  %v1872_v42 = vor.u32 %v2091_v37, %v1869_v39  ;;  %v1876_v43 = vor.u32 %v2093_v41, %v1875_v40  ;;  %v1855_v44 = vld [vmem:[#allocation8 + $0x60] sm:$0xf]  ;;  %v2089_v45 = vld [vmem:[#allocation8 + $0x68] sm:$0xf0]  ;;  %v2088_v46 = vld [vmem:[#allocation8 + $0x64] sm:$0xf] }
  0x68   : > { %v492_v4 = vmul.f32 128.0, %v2321_v3  ;;  %vm496_vm0 = vweird.f32 %v2321_v3  ;;  %710 = vmatpush.bf16.msra.mxu0 %v1880_v29  ;;  %v1856_v47 = vor.u32 %v2089_v45, %v1855_v44  ;;  %v1857_v48 = vld [vmem:[#allocation8 + $0x6c] sm:$0xf0]  ;;  %v1863_v49 = vld [vmem:[#allocation8 + $0x68] sm:$0xf]  ;;  %s2670_s23 = smov 96  }
  0x69   : > { %489 = vadd.xlane.f32.xlu0 %v2920_v1  ;;  %724 = vmatpush.bf16.msra.mxu1 %v1884_v33  ;;  %v2090_v50 = vld [vmem:[#allocation8 + $0x70] sm:$0xf0]  ;;  %v1860_v51 = vor.u32 %v2088_v46, %v1857_v48  ;;  %v1843_v53 = vld [vmem:[#allocation8 + $0x48] sm:$0xf]  ;;  %v2085_v55 = vld [vmem:[#allocation8 + $0x4c] sm:$0xf] }
  0x6a   : > { %v493_v5 = vsub.f32 1.0, %v492_v4  ;;  %738 = vmatpush.bf16.msra.mxu2 %v1888_v34  ;;  %v1864_v52 = vor.u32 %v2090_v50, %v1863_v49  ;;  %v2086_v54 = vld [vmem:[#allocation8 + $0x50] sm:$0xf0]  ;;  %v1845_v57 = vld [vmem:[#allocation8 + $0x54] sm:$0xf0]  ;;  %vm845_vm7 = vcmask 261120  }
  0x6b   : > { %v1844_v56 = vor.u32 %v2086_v54, %v1843_v53  ;;  %v1851_v58 = vld [vmem:[#allocation8 + $0x50] sm:$0xf]  ;;  %v2087_v59 = vld [vmem:[#allocation8 + $0x58] sm:$0xf0]  ;;  %v1848_v60 = vor.u32 %v2085_v55, %v1845_v57  ;;  %v2082_v2 = vld [vmem:[#allocation8 + $0x34] sm:$0xf] }
  0x6c   : > { %v494_v6 = vmul.f32 %v2321_v3, %v493_v5  ;;  %711 = vmatpush.bf16.msra.mxu0 %v1868_v38  ;;  %v1852_v61 = vor.u32 %v2087_v59, %v1851_v58  ;;  %v1831_v62 = vld [vmem:[#allocation8 + $0x30] sm:$0xf]  ;;  %v2083_v63 = vld [vmem:[#allocation8 + $0x38] sm:$0xf0]  ;;  %v1833_v4 = vld [vmem:[#allocation8 + $0x3c] sm:$0xf0] }
  0x6d   : > { %725 = vmatpush.bf16.msra.mxu1 %v1872_v42  ;;  %v1839_v5 = vld [vmem:[#allocation8 + $0x38] sm:$0xf]  ;;  %v1827_v17 = vld [vmem:[#allocation8 + $0x20] sm:$0xf]  ;;  %v2081_v18 = vld [vmem:[#allocation8 + $0x28] sm:$0xf0] }
  0x6e   : > { %v495_v7 = vadd.f32 %v2321_v3, %v494_v6  ;;  %739 = vmatpush.bf16.msra.mxu2 %v1876_v43  ;;  %v2084_v6 = vld [vmem:[#allocation8 + $0x40] sm:$0xf0]  ;;  %v1828_v20 = vor.u32 %v2081_v18, %v1827_v17  ;;  %v1807_v21 = vld [vmem:[#allocation8] sm:$0xf]  ;;  %v2077_v22 = vld [vmem:[#allocation8 + $0x8] sm:$0xf0] }
  0x6f   : > { %v2076_v23 = vld [vmem:[#allocation8 + $0x4] sm:$0xf]  ;;  %v1808_v25 = vor.u32 %v2077_v22, %v1807_v21  ;;  %v1809_v26 = vld [vmem:[#allocation8 + $0xc] sm:$0xf0]  ;;  %v1815_v27 = vld [vmem:[#allocation8 + $0x8] sm:$0xf] }
  0x70   : > { %v2923_v8 = vsel %vm496_vm0, %v2321_v3, %v495_v7  ;;  %712 = vmatpush.bf16.msra.mxu0 %v1856_v47  ;;  %v1832_v3 = vor.u32 %v2083_v63, %v1831_v62  ;;  %v1836_v7 = vor.u32 %v2082_v2, %v1833_v4  ;;  %v2078_v28 = vld [vmem:[#allocation8 + $0x10] sm:$0xf0]  ;;  %v1812_v30 = vor.u32 %v2076_v23, %v1809_v26  ;;  %v2939_v47 = vld [vmem:[#allocation7] sm:$0xff]  ;;  %s2671_s14 = smov 32   ;;  %s2140_s5 = sshll.u32 %s2749_s16, 4 }
  0x71   : > { %726 = vmatpush.bf16.msra.mxu1 %v1860_v51  ;;  %v1816_v31 = vor.u32 %v2078_v28, %v1815_v27  ;;  %v534_v50 = vperm.slane %v2939_v47, 0  ;;  %v537_v55 = vperm.slane %v2939_v47, 1  ;;  %vm956_vm9 = vcmask 130048   ;;  %s474_s11 = scalar_lea.vmem [#allocation14], %s1797_s21  ;;  %s1635_s20 = scalar_lea.hbm %s3085_s9, %s2140_s5 }
  0x72   : > { %740 = vmatpush.bf16.msra.mxu2 %v1864_v52  ;;  %vm1191_vm11 = vcmask 523264   ;;  %vm1194_vm12 = vcmask 785408   ;;  %s1636_s24 = sshll.u32 %s474_s11, 4  ;;  %s1638_s25 = sshll.u32 %s1635_s20, 4  ;;  %s1637_s24 = int_to_ptr.vmem [resolvable:$true] %s1636_s24  ;;  %s1639_s25 = int_to_ptr.hbm [resolvable:$true] %s1638_s25 }
  0x73   : > { %s1624_s16 = scalar_lea.sflag [#allocation4], %s2887_s28  ;;  %s2587_s17 = sshra.s32 %s1639_s25, 4  ;;  %s2588_s17 = int_to_ptr.hbm [resolvable:$true] %s2587_s17 }
  0x74   : > { %713 = vmatpush.bf16.msra.mxu0 %v1844_v56  ;;  %s2589_s21 = scalar_lea.hbm %s2588_s17, 16  ;;  %p2594_p7 = scmp.lt.s32.totalorder %s2588_s17, %s3085_s9 }
  0x75   : > { %727 = vmatpush.bf16.msra.mxu1 %v1848_v60  ;;  %p2590_p1 = scmp.ne.s32.totalorder %s2588_s17, %s2589_s21 }
  0x76   : > { %741 = vmatpush.bf16.msra.mxu2 %v1852_v61 }
  0x77   : > { %p2591_p3 = pnand %p2590_p1, %p2824_p0 }
  0x78   : > { %714 = vmatpush.bf16.msra.mxu0 %v1832_v3 }
  0x79   : > { %728 = vmatpush.bf16.msra.mxu1 %v1836_v7  ;;  %p2592_p13 = pneg %p2591_p3 }
  0xd4   : > { %v488_v9 = vpop.xlane.xlu0 %487 }
  0xd5   : > { %v498_v10 = vmul.f32 %v2923_v8, %v488_v9  ;;  %v1840_v9 = vor.u32 %v2084_v6, %v1839_v5 }
  0xd7   : > { %v2927_v11 = vsub.f32 %v2917_v0, %v498_v10  ;;  %742 = vmatpush.bf16.msra.mxu2 %v1840_v9  ;;  %v1819_v10 = vld [vmem:[#allocation8 + $0x18] sm:$0xf] }
  0xd9   : > { %v502_v12 = vmul.f32 %v2927_v11, %v2927_v11 }
  0xdb   : > { %504 = vadd.xlane.f32.xlu1 %v502_v12  ;;  %v2080_v12 = vld [vmem:[#allocation8 + $0x20] sm:$0xf0]  ;;  %743 = vmatpush.bf16.msra.mxu2 %v1828_v20 }
  0xdc   : > { %v490_v13 = vpop.xlane.xlu0 %489 }
  0xdd   : > { %v499_v14 = vmul.f32 %v2923_v8, %v490_v13  ;;  %v2079_v13 = vld [vmem:[#allocation8 + $0x1c] sm:$0xf] }
  0xdf   : > { %v2933_v15 = vsub.f32 %v2920_v1, %v499_v14  ;;  %v1820_v14 = vor.u32 %v2080_v12, %v1819_v10  ;;  %744 = vmatpush.bf16.msra.mxu2 %v1816_v31 }
  0xe1   : > { %v503_v16 = vmul.f32 %v2933_v15, %v2933_v15  ;;  %715 = vmatpush.bf16.msra.mxu0 %v1820_v14 }
  0xe3   : > { %506 = vadd.xlane.f32.xlu1 %v503_v16  ;;  %v1821_v16 = vld [vmem:[#allocation8 + $0x24] sm:$0xf0] }
  0xe4   : > { %v1824_v19 = vor.u32 %v2079_v13, %v1821_v16 }
  0xe5   : > { %716 = vmatpush.bf16.msra.mxu0 %v1808_v25 }
  0xe6   : > { %729 = vmatpush.bf16.msra.mxu1 %v1824_v19 }
  0xea   : > { %730 = vmatpush.bf16.msra.mxu1 %v1812_v30 }
 0x14e   : > { %v505_v24 = vpop.xlane.xlu1 %504 }
 0x14f   : > { %v508_v29 = vmul.f32 %v505_v24, %v2923_v8 }
 0x151   : > { %v510_v32 = vadd.f32 1e-05, %v508_v29 }
 0x153   : > { %2322 = vrsqrt.f32 %v510_v32  ;;  %vm518_vm2 = vweird.f32 %v510_v32 }
 0x156   : > { %v507_v33 = vpop.xlane.xlu1 %506 }
 0x157   : > { %v509_v34 = vmul.f32 %v507_v33, %v2923_v8 }
 0x159   : > { %v2323_v35 = vpop.eup %2322  ;;  %v511_v36 = vadd.f32 1e-05, %v509_v34 }
 0x15a   : > { %v513_v37 = vmul.f32 %v2323_v35, %v510_v32  ;;  %vm519_vm1 = vweird.f32 %v2323_v35 }
 0x15b   : > { %2324 = vrsqrt.f32 %v511_v36  ;;  %vm520_vm3 = vmor %vm518_vm2, %vm519_vm1  ;;  %vm528_vm5 = vweird.f32 %v511_v36 }
 0x15c   : > { %v514_v38 = vmul.f32 %v2323_v35, %v513_v37 }
 0x15e   : > { %v515_v39 = vmul.f32 0.5, %v514_v38 }
 0x160   : > { %v516_v40 = vsub.f32 1.5, %v515_v39 }
 0x161   : > { %v2325_v41 = vpop.eup %2324 }
 0x162   : > { %v517_v42 = vmul.f32 %v2323_v35, %v516_v40  ;;  %v523_v43 = vmul.f32 %v2325_v41, %v511_v36  ;;  %vm529_vm4 = vweird.f32 %v2325_v41 }
 0x163   : > { %vm530_vm6 = vmor %vm528_vm5, %vm529_vm4 }
 0x164   : > { %v524_v44 = vmul.f32 %v2325_v41, %v523_v43  ;;  %v521_v45 = vsel %vm520_vm3, %v2323_v35, %v517_v42 }
 0x165   : > { %v532_v49 = vmul.f32 %v521_v45, %v2927_v11  ;;  %v573_v11 = vld [vmem:[%s3080_s4] sm:$0x7] }
 0x166   : > { %v525_v46 = vmul.f32 0.5, %v524_v44  ;;  %v576_v62 = vperm.slane %v573_v11, 1  ;;  %v575_v63 = vperm.slane %v573_v11, 0  ;;  %v577_v3 = vperm.slane %v573_v11, 2 }
 0x167   : > { %v535_v54 = vmul.f32 %v534_v50, %v532_v49 }
 0x168   : > { %v526_v48 = vsub.f32 1.5, %v525_v46 }
 0x169   : > { %v538_v57 = vadd.f32 %v537_v55, %v535_v54 }
 0x16a   : > { %v527_v51 = vmul.f32 %v2325_v41, %v526_v48 }
 0x16c   : > { %v531_v52 = vsel %vm530_vm6, %v2325_v41, %v527_v51 }
 0x16d   : > { %v533_v53 = vmul.f32 %v531_v52, %v2933_v15 }
 0x16f   : > { %v536_v56 = vmul.f32 %v534_v50, %v533_v53 }
 0x171   : > { %v539_v58 = vadd.f32 %v537_v55, %v536_v56 }
 0x173   : > { %v540_v59 = vpack.c.bf16 %v539_v58, %v538_v57 }
 0x175   : > { %717 = vmatmul.bf16.vlgmr.msra.gmra.mxu0 %v540_v59  ;;  %731 = vmatmul.bf16.vlgmr.msra.gmra.mxu1 %v540_v59 }
 0x176   : > { %745 = vmatmul.bf16.vlgmr.msra.gmra.mxu2 %v540_v59 }
 0x1f2   : > { %v718_v60 = vpop.f32.mrf.mxu0  ;;  %v732_v61 = vpop.f32.mrf.mxu1 }
 0x1f3   : > { %v733_v2 = vadd.f32 %v732_v61, %v576_v62  ;;  %v719_v6 = vadd.f32 %v718_v60, %v575_v63 }
 0x1f5   : > { %v799_v10 = vpack.c.bf16 %v733_v2, %v733_v2  ;;  %v771_v25 = vpack.c.bf16 %v719_v6, %v719_v6 }
 0x1f7   : > { %v842_v17 = vunpack.c.l.b16 %v799_v10  ;;  %v837_v31 = vunpack.c.l.b16 %v771_v25  ;;  %v2142_v25 = vld [vmem:[%s2899_s13] sm:$0xff]   ;;  %s2593_s13 = scalar_lea.hbm %s3085_s9, 32 }
 0x1f8   : > { %p2595_p9 = scmp.lt.s32.totalorder %s2593_s13, %s2589_s21 }
 0x1f9   : > { %v746_v15 = vpop.f32.mrf.mxu2 }
 0x1fa   : > { %v720_v4 = vpop.f32.mrf.mxu0  ;;  %v734_v5 = vpop.f32.mrf.mxu1  ;;  %v747_v16 = vadd.f32 %v746_v15, %v577_v3  ;;  %p2596_p4 = por %p2595_p9, %p2594_p7 }
 0x1fb   : > { %v721_v7 = vadd.f32 %v720_v4, %v575_v63  ;;  %v735_v9 = vadd.f32 %v734_v5, %v576_v62 }
 0x1fc   : > { %v827_v23 = vpack.c.bf16 %v747_v16, %v747_v16  ;;  %p2597_p8 = pnand %p2596_p4, %p2592_p13 }
 0x1fd   : > { %v2270_v12 = vpack.i.bf16 %v735_v9, %v733_v2  ;;  %v2275_v13 = vpack.i.bf16 %v721_v7, %v719_v6  ;;  %v800_v14 = vpack.c.bf16 %v735_v9, %v735_v9  ;;  %v772_v21 = vpack.c.bf16 %v721_v7, %v721_v7 }
 0x1fe   : > { %v1052_v29 = vunpack.c.l.b16 %v827_v23 }
 0x1ff   : > { %2271 = vrot.lane.b32.xlu0 %v2270_v12, %s2669_s19  ;;  %2261 = vrot.lane.b32.xlu2 %v2270_v12, %s2670_s23  ;;  %v843_v18 = vunpack.c.l.b16 %v800_v14  ;;  %v838_v28 = vunpack.c.l.b16 %v772_v21 }
 0x200   : > { %2276 = vrot.lane.b32.xlu1 %v2275_v13, %s2669_s19 }
 0x201   : > { %v748_v19 = vpop.f32.mrf.mxu2  ;;  %v844_v20 = vpack.c.b16 %v843_v18, %v842_v17  ;;  %v839_v33 = vpack.c.b16 %v838_v28, %v837_v31  ;;  %v2672_v28 = vmov -1e+09  }
 0x202   : > { %v749_v22 = vadd.f32 %v748_v19, %v577_v3 }
 0x203   : > { %v850_v24 = vsel %vm845_vm7, %v844_v20, 0 }
 0x204   : > { %859 = vmatpush.bf16.xpose.msra.mxu3 %v850_v24  ;;  %v828_v26 = vpack.c.bf16 %v749_v22, %v749_v22  ;;  %v2952_v27 = vpack.i.bf16 %v749_v22, %v747_v16 }
 0x206   : > { %v1053_v30 = vunpack.c.l.b16 %v828_v26  ;;  %v2143_v26 = vunpack.c.l.bf16 %v2142_v25 }
 0x207   : > { %2266 = vrot.lane.b32.xlu2 %v2275_v13, %s2670_s23 }
 0x208   : > { %v1054_v32 = vpack.c.b16 %v1053_v30, %v1052_v29  ;;  %vm483_vm8 = vcmp.gt.f32.partialorder %v2143_v26, 0.0  ;;  %v2144_v30 = vunpack.c.h.bf16 %v2142_v25 }
 0x209   : > { %v485_v29 = vsel %vm483_vm8, 0.0, %v2672_v28 }
 0x20a   : > { %1066 = vmatpush.bf16.msrb.mxu2 %v1054_v32  ;;  %vm484_vm10 = vcmp.gt.f32.partialorder %v2144_v30, 0.0 }
 0x20b   : > { %1901 = vmatmul.msk.bf16.vlgmr.msra.gmra.mxu3 %vm845_vm7, %v839_v33 }
 0x20f   : > { %2281 = vrot.lane.b32.xlu2 %v2270_v12, %s2671_s14 }
 0x217   : > { %2286 = vrot.lane.b32.xlu2 %v2275_v13, %s2671_s14 }
 0x259   : > { %v2262_v34 = vpop.permute.xlu2 %2261 }
 0x25a   : > { %v2264_v35 = vunpack.i.h.bf16 %v2262_v34  ;;  %v2263_v36 = vunpack.i.l.bf16 %v2262_v34  ;;  %v486_v34 = vsel %vm484_vm10, 0.0, %v2672_v28 }
 0x25c   : > { %v802_v37 = vpack.c.bf16 %v2264_v35, %v2264_v35  ;;  %v801_v38 = vpack.c.bf16 %v2263_v36, %v2263_v36 }
 0x25e   : > { %v874_v39 = vunpack.c.l.b16 %v802_v37  ;;  %v873_v40 = vunpack.c.l.b16 %v801_v38 }
 0x260   : > { %v875_v41 = vpack.c.b16 %v874_v39, %v873_v40 }
 0x261   : > { %v2267_v42 = vpop.permute.xlu2 %2266 }
 0x262   : > { %v2269_v43 = vunpack.i.h.bf16 %v2267_v42  ;;  %v2268_v44 = vunpack.i.l.bf16 %v2267_v42  ;;  %v880_v45 = vsel %vm845_vm7, %v875_v41, 0 }
 0x263   : > { %889 = vmatpush.bf16.xpose.msrb.mxu3 %v880_v45 }
 0x264   : > { %v774_v46 = vpack.c.bf16 %v2269_v43, %v2269_v43  ;;  %v773_v48 = vpack.c.bf16 %v2268_v44, %v2268_v44 }
 0x266   : > { %v869_v49 = vunpack.c.l.b16 %v774_v46  ;;  %v868_v50 = vunpack.c.l.b16 %v773_v48 }
 0x268   : > { %v870_v51 = vpack.c.b16 %v869_v49, %v868_v50 }
 0x269   : > { %v2282_v52 = vpop.permute.xlu2 %2281 }
 0x26a   : > { %v2284_v53 = vunpack.i.h.bf16 %v2282_v52  ;;  %v2283_v54 = vunpack.i.l.bf16 %v2282_v52  ;;  %1902 = vmatmul.msk.bf16.vlgmr.msrb.gmra.mxu3 %vm845_vm7, %v870_v51 }
 0x26c   : > { %v806_v55 = vpack.c.bf16 %v2284_v53, %v2284_v53  ;;  %v805_v56 = vpack.c.bf16 %v2283_v54, %v2283_v54 }
 0x26e   : > { %v934_v57 = vunpack.c.l.b16 %v806_v55  ;;  %v933_v58 = vunpack.c.l.b16 %v805_v56 }
 0x270   : > { %v935_v59 = vpack.c.b16 %v934_v57, %v933_v58 }
 0x271   : > { %v2272_v11 = vpop.permute.xlu0 %2271  ;;  %v2287_v60 = vpop.permute.xlu2 %2286 }
 0x272   : > { %v2274_v61 = vunpack.i.h.bf16 %v2272_v11  ;;  %v2273_v62 = vunpack.i.l.bf16 %v2272_v11  ;;  %v2277_v63 = vpop.permute.xlu1 %2276  ;;  %v2289_v2 = vunpack.i.h.bf16 %v2287_v60  ;;  %v2288_v15 = vunpack.i.l.bf16 %v2287_v60 }
 0x273   : > { %v2279_v3 = vunpack.i.h.bf16 %v2277_v63  ;;  %v2278_v4 = vunpack.i.l.bf16 %v2277_v63  ;;  %v940_v5 = vsel %vm845_vm7, %v935_v59, 0 }
 0x274   : > { %v804_v6 = vpack.c.bf16 %v2274_v61, %v2274_v61  ;;  %v803_v7 = vpack.c.bf16 %v2273_v62, %v2273_v62  ;;  %v778_v9 = vpack.c.bf16 %v2289_v2, %v2289_v2  ;;  %v777_v10 = vpack.c.bf16 %v2288_v15, %v2288_v15  ;;  %949 = vmatpush.bf16.xpose.msrb.mxu0 %v940_v5 }
 0x275   : > { %v776_v18 = vpack.c.bf16 %v2279_v3, %v2279_v3  ;;  %v775_v19 = vpack.c.bf16 %v2278_v4, %v2278_v4 }
 0x276   : > { %v904_v12 = vunpack.c.l.b16 %v804_v6  ;;  %v903_v13 = vunpack.c.l.b16 %v803_v7  ;;  %v929_v14 = vunpack.c.l.b16 %v778_v9  ;;  %v928_v16 = vunpack.c.l.b16 %v777_v10 }
 0x277   : > { %v899_v22 = vunpack.c.l.b16 %v776_v18  ;;  %v898_v23 = vunpack.c.l.b16 %v775_v19 }
 0x278   : > { %v905_v17 = vpack.c.b16 %v904_v12, %v903_v13  ;;  %v930_v20 = vpack.c.b16 %v929_v14, %v928_v16 }
 0x279   : > { %v900_v24 = vpack.c.b16 %v899_v22, %v898_v23 }
 0x27a   : > { %v910_v21 = vsel %vm845_vm7, %v905_v17, 0 }
 0x27b   : > { %1904 = vmatmul.msk.bf16.vlgmr.msrb.gmra.mxu0 %vm845_vm7, %v930_v20  ;;  %919 = vmatpush.bf16.xpose.msra.mxu3 %v910_v21 }
 0x282   : > { %1903 = vmatmul.msk.bf16.vlgmr.msra.gmra.mxu3 %vm845_vm7, %v900_v24 }
 0x28e   : > { %v861_v31 = vpop.f32.mrf.mxu3 }
 0x28f   : > { %v862_v32 = vadd.f32 %v861_v31, %v485_v29 }
 0x291   : > { %v957_v33 = vsel %vm956_vm9, %v862_v32, -inf }
 0x292   : > { %958 = vmax.xlane.f32.xlu2 %v957_v33 }
 0x296   : > { %v863_v35 = vpop.f32.mrf.mxu3 }
 0x297   : > { %v864_v36 = vadd.f32 %v863_v35, %v486_v34 }
 0x299   : > { %v960_v37 = vsel %vm956_vm9, %v864_v36, -inf }
 0x29a   : > { %961 = vmax.xlane.f32.xlu0 %v960_v37 }
 0x2ed   : > { %v891_v38 = vpop.f32.mrf.mxu3 }
 0x2ee   : > { %v892_v45 = vadd.f32 %v891_v38, %v485_v29 }
 0x2f0   : > { %v963_v49 = vsel %vm956_vm9, %v892_v45, -inf }
 0x2f5   : > { %v893_v39 = vpop.f32.mrf.mxu3 }
 0x2f6   : > { %v894_v40 = vadd.f32 %v893_v39, %v486_v34 }
 0x2f8   : > { %v951_v41 = vpop.f32.mrf.mxu0  ;;  %v966_v42 = vsel %vm956_vm9, %v894_v40, -inf }
 0x2f9   : > { %v952_v43 = vadd.f32 %v951_v41, %v485_v29  ;;  %967 = vmax.xlane.f32.xlu2 %v966_v42 }
 0x2fb   : > { %v975_v44 = vsel %vm956_vm9, %v952_v43, -inf }
 0x2fc   : > { %976 = vmax.xlane.f32.xlu1 %v975_v44 }
 0x300   : > { %v953_v46 = vpop.f32.mrf.mxu0 }
 0x301   : > { %v954_v48 = vadd.f32 %v953_v46, %v486_v34 }
 0x303   : > { %v978_v50 = vsel %vm956_vm9, %v954_v48, -inf }
 0x304   : > { %964 = vmax.xlane.f32.xlu1 %v963_v49  ;;  %979 = vmax.xlane.f32.xlu0 %v978_v50 }
 0x305   : > { %v921_v51 = vpop.f32.mrf.mxu3  ;;  %v959_v52 = vpop.xlane.xlu2 %958 }
 0x306   : > { %v981_v53 = vsub.f32 %v862_v32, %v959_v52  ;;  %v922_v54 = vadd.f32 %v921_v51, %v485_v29 }
 0x308   : > { %v989_v55 = vmul.f32 1.442695, %v981_v53  ;;  %v969_v56 = vsel %vm956_vm9, %v922_v54, -inf }
 0x30a   : > { %2326 = vpow2.f32 %v989_v55 }
 0x30c   : > { %970 = vmax.xlane.f32.xlu0 %v969_v56 }
 0x30d   : > { %v923_v57 = vpop.f32.mrf.mxu3  ;;  %v962_v58 = vpop.xlane.xlu0 %961 }
 0x30e   : > { %v924_v59 = vadd.f32 %v923_v57, %v486_v34  ;;  %v982_v11 = vsub.f32 %v864_v36, %v962_v58 }
 0x310   : > { %v991_v60 = vmul.f32 1.442695, %v982_v11  ;;  %v972_v61 = vsel %vm956_vm9, %v924_v59, -inf  ;;  %v2973_v62 = vpop.eup %2326 }
 0x311   : > { %973 = vmax.xlane.f32.xlu2 %v972_v61  ;;  %v1037_v63 = vpack.c.bf16 %v2973_v62, %v2973_v62 }
 0x312   : > { %2328 = vpow2.f32 %v991_v60 }
 0x313   : > { %v1047_v3 = vunpack.c.l.b16 %v1037_v63 }
 0x318   : > { %v2329_v2 = vpop.eup %2328 }
 0x319   : > { %v1038_v15 = vpack.c.bf16 %v2329_v2, %v2329_v2  ;;  %v1008_v33 = vsel %vm956_vm9, %v2329_v2, 0.0 }
 0x31b   : > { %v1048_v4 = vunpack.c.l.b16 %v1038_v15 }
 0x31d   : > { %2296 = vrot.lane.b32.xlu1 %v2952_v27, %s2669_s19  ;;  %v1049_v5 = vpack.c.b16 %v1048_v4, %v1047_v3 }
 0x31f   : > { %1905 = vmatmul.msk.bf16.vlgmr.msrb.gmra.mxu2 %vm956_vm9, %v1049_v5 }
 0x320   : > { %2301 = vrot.lane.b32.xlu0 %v2952_v27, %s2671_s14 }
 0x329   : > { %2291 = vrot.lane.b32.xlu2 %v2952_v27, %s2670_s23 }
 0x36c   : > { %v968_v6 = vpop.xlane.xlu2 %967 }
 0x36d   : > { %v984_v7 = vsub.f32 %v894_v40, %v968_v6 }
 0x36f   : > { %v995_v9 = vmul.f32 1.442695, %v984_v7  ;;  %v977_v10 = vpop.xlane.xlu1 %976 }
 0x370   : > { %v987_v12 = vsub.f32 %v952_v43, %v977_v10 }
 0x371   : > { %2330 = vpow2.f32 %v995_v9 }
 0x372   : > { %v1001_v13 = vmul.f32 1.442695, %v987_v12 }
 0x374   : > { %2332 = vpow2.f32 %v1001_v13 }
 0x377   : > { %v2331_v14 = vpop.eup %2330  ;;  %v965_v16 = vpop.xlane.xlu1 %964 }
 0x378   : > { %v980_v17 = vpop.xlane.xlu0 %979  ;;  %v983_v18 = vsub.f32 %v892_v45, %v965_v16  ;;  %v1014_v19 = vsel %vm956_vm9, %v2331_v14, 0.0  ;;  %v1040_v45 = vpack.c.bf16 %v2331_v14, %v2331_v14  ;;  %v1005_v16 = vsel %vm956_vm9, %v2973_v62, 0.0 }
 0x379   : > { %1015 = vadd.xlane.f32.xlu0 %v1014_v19  ;;  %v988_v22 = vsub.f32 %v954_v48, %v980_v17 }
 0x37a   : > { %v993_v20 = vmul.f32 1.442695, %v983_v18  ;;  %v2985_v21 = vpop.eup %2332  ;;  %v1076_v61 = vunpack.c.l.b16 %v1040_v45 }
 0x37b   : > { %v1023_v24 = vsel %vm956_vm9, %v2985_v21, 0.0  ;;  %v1003_v29 = vmul.f32 1.442695, %v988_v22  ;;  %v1043_v6 = vpack.c.bf16 %v2985_v21, %v2985_v21 }
 0x37c   : > { %2334 = vpow2.f32 %v993_v20 }
 0x37d   : > { %v1131_v19 = vunpack.c.l.b16 %v1043_v6 }
 0x380   : > { %v971_v27 = vpop.xlane.xlu0 %970 }
 0x381   : > { %v985_v23 = vsub.f32 %v922_v54, %v971_v27  ;;  %1024 = vadd.xlane.f32.xlu0 %v1023_v24  ;;  %v2107_v27 = vld [vmem:[#allocation10 + $0x38] sm:$0xff] }
 0x382   : > { %v2335_v25 = vpop.eup %2334  ;;  %1263 = vmatpush.bf16.msrb.mxu1 %v2107_v27 }
 0x383   : > { %v997_v26 = vmul.f32 1.442695, %v985_v23  ;;  %v1011_v28 = vsel %vm956_vm9, %v2335_v25, 0.0  ;;  %v1039_v40 = vpack.c.bf16 %v2335_v25, %v2335_v25 }
 0x384   : > { %1012 = vadd.xlane.f32.xlu2 %v1011_v28  ;;  %v974_v30 = vpop.xlane.xlu2 %973 }
 0x385   : > { %2336 = vpow2.f32 %v997_v26  ;;  %v986_v31 = vsub.f32 %v924_v59, %v974_v30  ;;  %v1075_v53 = vunpack.c.l.b16 %v1039_v40 }
 0x386   : > { %2338 = vpow2.f32 %v1003_v29 }
 0x387   : > { %v999_v32 = vmul.f32 1.442695, %v986_v31  ;;  %v1077_v7 = vpack.c.b16 %v1076_v61, %v1075_v53  ;;  %v2104_v53 = vld [vmem:[#allocation10 + $0x20] sm:$0xff] }
 0x389   : > { %2340 = vpow2.f32 %v999_v32  ;;  %1009 = vadd.xlane.f32.xlu0 %v1008_v33 }
 0x38b   : > { %v2337_v34 = vpop.eup %2336 }
 0x38c   : > { %v1017_v35 = vsel %vm956_vm9, %v2337_v34, 0.0  ;;  %v2292_v36 = vpop.permute.xlu2 %2291  ;;  %v2339_v39 = vpop.eup %2338  ;;  %v1041_v58 = vpack.c.bf16 %v2337_v34, %v2337_v34 }
 0x38d   : > { %1018 = vadd.xlane.f32.xlu1 %v1017_v35  ;;  %v2294_v37 = vunpack.i.h.bf16 %v2292_v36  ;;  %v2293_v38 = vunpack.i.l.bf16 %v2292_v36  ;;  %v1026_v57 = vsel %vm956_vm9, %v2339_v39, 0.0  ;;  %v1044_v63 = vpack.c.bf16 %v2339_v39, %v2339_v39 }
 0x38e   : > { %v1103_v10 = vunpack.c.l.b16 %v1041_v58 }
 0x38f   : > { %v2341_v41 = vpop.eup %2340  ;;  %v830_v42 = vpack.c.bf16 %v2294_v37, %v2294_v37  ;;  %v829_v43 = vpack.c.bf16 %v2293_v38, %v2293_v38  ;;  %v2297_v44 = vpop.permute.xlu1 %2296  ;;  %v1132_v14 = vunpack.c.l.b16 %v1044_v63 }
 0x390   : > { %v2299_v46 = vunpack.i.h.bf16 %v2297_v44  ;;  %v2298_v48 = vunpack.i.l.bf16 %v2297_v44  ;;  %v1020_v49 = vsel %vm956_vm9, %v2341_v41, 0.0  ;;  %v1042_v50 = vpack.c.bf16 %v2341_v41, %v2341_v41 }
 0x391   : > { %v1081_v51 = vunpack.c.l.b16 %v830_v42  ;;  %v1080_v52 = vunpack.c.l.b16 %v829_v43  ;;  %1021 = vadd.xlane.f32.xlu2 %v1020_v49  ;;  %v1133_v20 = vpack.c.b16 %v1132_v14, %v1131_v19 }
 0x392   : > { %v832_v54 = vpack.c.bf16 %v2299_v46, %v2299_v46  ;;  %v831_v55 = vpack.c.bf16 %v2298_v48, %v2298_v48  ;;  %v2302_v56 = vpop.permute.xlu0 %2301  ;;  %v1104_v3 = vunpack.c.l.b16 %v1042_v50 }
 0x393   : > { %v1082_v59 = vpack.c.b16 %v1081_v51, %v1080_v52  ;;  %v2304_v11 = vunpack.i.h.bf16 %v2302_v56  ;;  %v2303_v60 = vunpack.i.l.bf16 %v2302_v56  ;;  %v2106_v51 = vld [vmem:[#allocation10 + $0x30] sm:$0xff]  ;;  %v2105_v52 = vld [vmem:[#allocation10 + $0x28] sm:$0xff] }
 0x394   : > { %v1109_v2 = vunpack.c.l.b16 %v832_v54  ;;  %v1108_v15 = vunpack.c.l.b16 %v831_v55  ;;  %v1105_v17 = vpack.c.b16 %v1104_v3, %v1103_v10  ;;  %1264 = vmatpush.bf16.msrb.mxu1 %v2106_v51  ;;  %v2103_v54 = vld [vmem:[#allocation10 + $0x18] sm:$0xff]  ;;  %v2102_v55 = vld [vmem:[#allocation10 + $0x10] sm:$0xff]  ;;  %v2101_v56 = vld [vmem:[#allocation10 + $0x8] sm:$0xff] }
 0x395   : > { %1027 = vadd.xlane.f32.xlu1 %v1026_v57  ;;  %v834_v4 = vpack.c.bf16 %v2304_v11, %v2304_v11  ;;  %v833_v5 = vpack.c.bf16 %v2303_v60, %v2303_v60  ;;  %1094 = vmatpush.bf16.msra.mxu2 %v1082_v59  ;;  %v2100_v57 = vld [vmem:[#allocation10] sm:$0xff] }
 0x396   : > { %v1110_v9 = vpack.c.b16 %v1109_v2, %v1108_v15  ;;  %v1975_v51 = vld [vmem:[#allocation11 + $0x40] sm:$0xf] }
 0x397   : > { %v1137_v12 = vunpack.c.l.b16 %v834_v4  ;;  %v1136_v13 = vunpack.c.l.b16 %v833_v5 }
 0x398   : > { %1122 = vmatpush.bf16.msrb.mxu3 %v1110_v9  ;;  %1906 = vmatmul.msk.bf16.vlgmr.msra.gmra.mxu2 %vm956_vm9, %v1077_v7 }
 0x399   : > { %v1138_v18 = vpack.c.b16 %v1137_v12, %v1136_v13  ;;  %1006 = vadd.xlane.f32.xlu2 %v1005_v16  ;;  %1265 = vmatpush.bf16.msrb.mxu1 %v2105_v52  ;;  %v2117_v52 = vld [vmem:[#allocation11 + $0x44] sm:$0xf0] }
 0x39b   : > { %1907 = vmatmul.msk.bf16.vlgmr.msrb.gmra.mxu3 %vm956_vm9, %v1105_v17  ;;  %1150 = vmatpush.bf16.msra.mxu0 %v1138_v18 }
 0x39d   : > { %1266 = vmatpush.bf16.msrb.mxu1 %v2104_v53  ;;  %v2116_v53 = vld [vmem:[#allocation11 + $0x44] sm:$0xf] }
 0x39e   : > { %1908 = vmatmul.msk.bf16.vlgmr.msra.gmra.mxu0 %vm956_vm9, %v1133_v20  ;;  %v1214_v20 = vperm.slane %v2939_v47, 4 }
 0x3a1   : > { %1267 = vmatpush.bf16.msrb.mxu1 %v2103_v54  ;;  %v1976_v54 = vor.u32 %v2117_v52, %v1975_v51 }
 0x3a2   : > { %v3001_v21 = vpop.f32.mrf.mxu2 }
 0x3a5   : > { %1268 = vmatpush.bf16.msrb.mxu1 %v2102_v55  ;;  %v1977_v55 = vld [vmem:[#allocation11 + $0x48] sm:$0xf0] }
 0x3a9   : > { %1269 = vmatpush.bf16.msrb.mxu1 %v2101_v56  ;;  %v1980_v56 = vor.u32 %v2116_v53, %v1977_v55 }
 0x3aa   : > { %v1070_v24 = vpop.f32.mrf.mxu2 }
 0x3ad   : > { %1270 = vmatpush.bf16.msrb.mxu1 %v2100_v57  ;;  %v1967_v57 = vld [vmem:[#allocation11 + $0x30] sm:$0xf] }
 0x3ec   : > { %v1016_v22 = vpop.xlane.xlu0 %1015 }
 0x3ed   : > { %2342 = vrcp.f32 %v1016_v22 }
 0x3f3   : > { %v2343_v32 = vpop.eup %2342 }
 0x3f4   : > { %v1025_v26 = vpop.xlane.xlu0 %1024 }
 0x3f5   : > { %2344 = vrcp.f32 %v1025_v26 }
 0x3f7   : > { %v1013_v25 = vpop.xlane.xlu2 %1012 }
 0x3f8   : > { %2346 = vrcp.f32 %v1013_v25 }
 0x3fb   : > { %v2345_v33 = vpop.eup %2344 }
 0x3fc   : > { %v1010_v58 = vpop.xlane.xlu0 %1009 }
 0x3fe   : > { %v2347_v34 = vpop.eup %2346 }
 0x400   : > { %v1019_v23 = vpop.xlane.xlu1 %1018 }
 0x404   : > { %v1022_v30 = vpop.xlane.xlu2 %1021 }
 0x408   : > { %v1028_v62 = vpop.xlane.xlu1 %1027 }
 0x409   : > { %2348 = vrcp.f32 %v1028_v62 }
 0x40a   : > { %2350 = vrcp.f32 %v1019_v23 }
 0x40b   : > { %2352 = vrcp.f32 %v1022_v30 }
 0x40c   : > { %v1007_v59 = vpop.xlane.xlu2 %1006  ;;  %2354 = vrcp.f32 %v1010_v58  ;;  %v2115_v58 = vld [vmem:[#allocation11 + $0x34] sm:$0xf0] }
 0x40d   : > { %2356 = vrcp.f32 %v1007_v59  ;;  %v2114_v59 = vld [vmem:[#allocation11 + $0x34] sm:$0xf] }
 0x40f   : > { %v2349_v35 = vpop.eup %2348 }
 0x410   : > { %v2351_v42 = vpop.eup %2350 }
 0x411   : > { %v2353_v43 = vpop.eup %2352 }
 0x412   : > { %v2355_v11 = vpop.eup %2354 }
 0x413   : > { %v2357_v60 = vpop.eup %2356  ;;  %v1158_v63 = vmul.f32 %v2355_v11, %v1070_v24  ;;  %v1968_v11 = vor.u32 %v2115_v58, %v1967_v57 }
 0x414   : > { %v1157_v3 = vmul.f32 %v2357_v60, %v3001_v21  ;;  %v1969_v60 = vld [vmem:[#allocation11 + $0x38] sm:$0xf0] }
 0x41b   : > { %v1152_v28 = vpop.f32.mrf.mxu0  ;;  %v1096_v29 = vpop.f32.mrf.mxu2 }
 0x41c   : > { %v1163_v38 = vmul.f32 %v2345_v33, %v1152_v28  ;;  %v1159_v39 = vmul.f32 %v2347_v34, %v1096_v29  ;;  %v2123_v33 = vld [vmem:[#allocation11 + $0x74] sm:$0xf0]  ;;  %v2122_v34 = vld [vmem:[#allocation11 + $0x74] sm:$0xf] }
 0x41e   : > { %v1124_v31 = vpop.f32.mrf.mxu3 }
 0x41f   : > { %v1161_v48 = vmul.f32 %v2351_v42, %v1124_v31  ;;  %v1993_v42 = vld [vmem:[#allocation11 + $0x68] sm:$0xf0] }
 0x423   : > { %v1154_v36 = vpop.f32.mrf.mxu0  ;;  %v1098_v37 = vpop.f32.mrf.mxu2 }
 0x424   : > { %v1164_v40 = vmul.f32 %v2349_v35, %v1154_v36  ;;  %v1160_v41 = vmul.f32 %v2343_v32, %v1098_v37  ;;  %v1999_v32 = vld [vmem:[#allocation11 + $0x70] sm:$0xf]  ;;  %v2001_v36 = vld [vmem:[#allocation11 + $0x78] sm:$0xf0] }
 0x425   : > { %v2000_v35 = vor.u32 %v2123_v33, %v1999_v32  ;;  %v2004_v37 = vor.u32 %v2122_v34, %v2001_v36  ;;  %v2129_v34 = vld [vmem:[#allocation13 + $0x28] sm:$0xff] }
 0x426   : > { %v2315_v44 = vpack.i.bf16 %v1164_v40, %v1163_v38  ;;  %v2305_v45 = vpack.i.bf16 %v1160_v41, %v1159_v39  ;;  %v1126_v46 = vpop.f32.mrf.mxu3  ;;  %v1991_v38 = vld [vmem:[#allocation11 + $0x60] sm:$0xf]  ;;  %v2121_v39 = vld [vmem:[#allocation11 + $0x64] sm:$0xf0]  ;;  %v2120_v40 = vld [vmem:[#allocation11 + $0x64] sm:$0xf] }
 0x427   : > { %v1162_v49 = vmul.f32 %v2353_v43, %v1126_v46  ;;  %1428 = vmatpush.bf16.msrb.mxu2 %v2000_v35  ;;  %1442 = vmatpush.bf16.msra.mxu3 %v2004_v37  ;;  %v1992_v41 = vor.u32 %v2121_v39, %v1991_v38  ;;  %v1996_v43 = vor.u32 %v2120_v40, %v1993_v42  ;;  %v2118_v46 = vld [vmem:[#allocation11 + $0x54] sm:$0xf]  ;;  %v2137_v35 = vld [vmem:[#allocation13 + $0x68] sm:$0xff]  ;;  %v2128_v38 = vld [vmem:[#allocation13 + $0x20] sm:$0xff] }
 0x428   : > { %2316 = vrot.lane.b32.xlu0 %v2315_v44, %s2670_s23  ;;  %2306 = vrot.lane.b32.xlu1 %v2305_v45, %s2671_s14  ;;  %v1983_v44 = vld [vmem:[#allocation11 + $0x50] sm:$0xf]  ;;  %v2119_v45 = vld [vmem:[#allocation11 + $0x54] sm:$0xf0]  ;;  %v2136_v39 = vld [vmem:[#allocation13 + $0x60] sm:$0xff] }
 0x429   : > { %v2310_v50 = vpack.i.bf16 %v1162_v49, %v1161_v48  ;;  %v1984_v48 = vor.u32 %v2119_v45, %v1983_v44  ;;  %v1985_v49 = vld [vmem:[#allocation11 + $0x58] sm:$0xf0] }
 0x42b   : > { %2311 = vrot.lane.b32.xlu2 %v2310_v50, %s2669_s19  ;;  %1429 = vmatpush.bf16.msrb.mxu2 %v1992_v41  ;;  %v1988_v50 = vor.u32 %v2118_v46, %v1985_v49  ;;  %v1319_v49 = vperm.slane %v2939_v47, 2 }
 0x42c   : > { %1443 = vmatpush.bf16.msra.mxu3 %v1996_v43 }
 0x42f   : > { %1430 = vmatpush.bf16.msrb.mxu2 %v1984_v48 }
 0x430   : > { %1444 = vmatpush.bf16.msra.mxu3 %v1988_v50 }
 0x433   : > { %1431 = vmatpush.bf16.msrb.mxu2 %v1976_v54  ;;  %v1322_v54 = vperm.slane %v2939_v47, 3  ;;  %v2132_v47 = vld [vmem:[#allocation13 + $0x40] sm:$0xff] }
 0x434   : > { %1445 = vmatpush.bf16.msra.mxu3 %v1980_v56 }
 0x437   : > { %1432 = vmatpush.bf16.msrb.mxu2 %v1968_v11  ;;  %v2135_v11 = vld [vmem:[#allocation13 + $0x58] sm:$0xff] }
 0x485   : > { %v2312_v61 = vpop.permute.xlu2 %2311 }
 0x486   : > { %v2314_v6 = vunpack.i.h.bf16 %v2312_v61  ;;  %v2313_v7 = vunpack.i.l.bf16 %v2312_v61  ;;  %v1972_v61 = vor.u32 %v2114_v59, %v1969_v60  ;;  %v2127_v59 = vld [vmem:[#allocation13 + $0x18] sm:$0xff]  ;;  %v2134_v60 = vld [vmem:[#allocation13 + $0x50] sm:$0xff] }
 0x488   : > { %1446 = vmatpush.bf16.msra.mxu3 %v1972_v61  ;;  %v2125_v61 = vld [vmem:[#allocation13 + $0x8] sm:$0xff] }
 0x49a   : > { %v2317_v2 = vpop.permute.xlu0 %2316  ;;  %v2307_v15 = vpop.permute.xlu1 %2306 }
 0x49b   : > { %v2309_v4 = vunpack.i.h.bf16 %v2307_v15  ;;  %v2308_v5 = vunpack.i.l.bf16 %v2307_v15  ;;  %v2319_v9 = vunpack.i.h.bf16 %v2317_v2  ;;  %v2318_v10 = vunpack.i.l.bf16 %v2317_v2  ;;  %v2113_v2 = vld [vmem:[#allocation11 + $0x24] sm:$0xf0]  ;;  %v2112_v15 = vld [vmem:[#allocation11 + $0x24] sm:$0xf] }
 0x49d   : > { %v1190_v12 = vsel %vm845_vm7, %v1158_v63, %v2309_v4  ;;  %v1189_v13 = vsel %vm845_vm7, %v1157_v3, %v2308_v5  ;;  %v1959_v63 = vld [vmem:[#allocation11 + $0x20] sm:$0xf]  ;;  %v1961_v4 = vld [vmem:[#allocation11 + $0x28] sm:$0xf0] }
 0x49e   : > { %v1192_v14 = vsel %vm1191_vm11, %v1189_v13, %v2313_v7  ;;  %v1193_v16 = vsel %vm1191_vm11, %v1190_v12, %v2314_v6  ;;  %v1960_v3 = vor.u32 %v2113_v2, %v1959_v63  ;;  %v1964_v5 = vor.u32 %v2112_v15, %v1961_v4  ;;  %v1951_v6 = vld [vmem:[#allocation11 + $0x10] sm:$0xf]  ;;  %v2111_v7 = vld [vmem:[#allocation11 + $0x14] sm:$0xf0]  ;;  %v1953_v13 = vld [vmem:[#allocation11 + $0x18] sm:$0xf0] }
 0x49f   : > { %v1195_v17 = vsel %vm1194_vm12, %v1192_v14, %v2318_v10  ;;  %v1196_v18 = vsel %vm1194_vm12, %v1193_v16, %v2319_v9  ;;  %v2110_v9 = vld [vmem:[#allocation11 + $0x14] sm:$0xf]  ;;  %v1952_v12 = vor.u32 %v2111_v7, %v1951_v6  ;;  %v1943_v14 = vld [vmem:[#allocation11] sm:$0xf]  ;;  %v2109_v16 = vld [vmem:[#allocation11 + $0x4] sm:$0xf0] }
 0x4a0   : > { %v1197_v19 = vpack.c.bf16 %v1196_v18, %v1195_v17  ;;  %1433 = vmatpush.bf16.msrb.mxu2 %v1960_v3  ;;  %1447 = vmatpush.bf16.msra.mxu3 %v1964_v5  ;;  %v1956_v18 = vor.u32 %v2110_v9, %v1953_v13  ;;  %v2133_v63 = vld [vmem:[#allocation13 + $0x48] sm:$0xff] }
 0x4a1   : > { %v1342_v2 = vld [vmem:[%s3083_s7] sm:$0x3] }
 0x4a2   : > { %1271 = vmatmul.bf16.vlgmr.msrb.gmra.mxu1 %v1197_v19  ;;  %v2108_v19 = vld [vmem:[#allocation11 + $0x4] sm:$0xf]  ;;  %v1344_v4 = vperm.slane %v1342_v2, 0  ;;  %v1345_v5 = vperm.slane %v1342_v2, 1 }
 0x4a4   : > { %1434 = vmatpush.bf16.msrb.mxu2 %v1952_v12  ;;  %1448 = vmatpush.bf16.msra.mxu3 %v1956_v18 }
 0x51f   : > { %v1272_v21 = vpop.f32.mrf.mxu1 }
 0x520   : > { %v1273_v27 = vadd.f32 %v1272_v21, %v1214_v20  ;;  %v1944_v21 = vor.u32 %v2109_v16, %v1943_v14 }
 0x522   : > { %v3011_v22 = vadd.f32 %v1273_v27, %v2917_v0  ;;  %1435 = vmatpush.bf16.msrb.mxu2 %v1944_v21  ;;  %v2362_v21 = vld [vmem:[#allocation7] sm:$0xff] }
 0x524   : > { %1279 = vadd.xlane.f32.xlu1 %v3011_v22 }
 0x527   : > { %v1274_v23 = vpop.f32.mrf.mxu1 }
 0x528   : > { %v1275_v24 = vadd.f32 %v1274_v23, %v1214_v20  ;;  %v1945_v20 = vld [vmem:[#allocation11 + $0x8] sm:$0xf0] }
 0x529   : > { %v1948_v23 = vor.u32 %v2108_v19, %v1945_v20 }
 0x52a   : > { %v3015_v25 = vadd.f32 %v1275_v24, %v2920_v1  ;;  %v2131_v24 = vld [vmem:[#allocation13 + $0x38] sm:$0xff] }
 0x52b   : > { %1449 = vmatpush.bf16.msra.mxu3 %v1948_v23  ;;  %1591 = vmatpush.bf16.msrb.mxu0 %v2131_v24 }
 0x52c   : > { %1281 = vadd.xlane.f32.xlu0 %v3015_v25 }
 0x597   : > { %v1280_v26 = vpop.xlane.xlu1 %1279 }
 0x598   : > { %v1283_v62 = vmul.f32 %v1280_v26, %v2923_v8  ;;  %v2139_v26 = vld [vmem:[#allocation13 + $0x78] sm:$0xff] }
 0x599   : > { %1605 = vmatpush.bf16.msra.mxu1 %v2139_v26 }
 0x59a   : > { %v3020_v28 = vsub.f32 %v3011_v22, %v1283_v62 }
 0x59c   : > { %v1287_v29 = vmul.f32 %v3020_v28, %v3020_v28 }
 0x59e   : > { %1289 = vadd.xlane.f32.xlu2 %v1287_v29 }
 0x59f   : > { %v1282_v0 = vpop.xlane.xlu0 %1281 }
 0x5a0   : > { %v1284_v30 = vmul.f32 %v1282_v0, %v2923_v8  ;;  %v2130_v0 = vld [vmem:[#allocation13 + $0x30] sm:$0xff] }
 0x5a1   : > { %1592 = vmatpush.bf16.msrb.mxu0 %v2130_v0 }
 0x5a2   : > { %v3026_v31 = vsub.f32 %v3015_v25, %v1284_v30  ;;  %v2138_v30 = vld [vmem:[#allocation13 + $0x70] sm:$0xff] }
 0x5a3   : > { %1606 = vmatpush.bf16.msra.mxu1 %v2138_v30 }
 0x5a4   : > { %v1288_v1 = vmul.f32 %v3026_v31, %v3026_v31 }
 0x5a5   : > { %1593 = vmatpush.bf16.msrb.mxu0 %v2129_v34 }
 0x5a6   : > { %1291 = vadd.xlane.f32.xlu1 %v1288_v1 }
 0x5a7   : > { %1607 = vmatpush.bf16.msra.mxu1 %v2137_v35 }
 0x5a9   : > { %1594 = vmatpush.bf16.msrb.mxu0 %v2128_v38 }
 0x5ab   : > { %1608 = vmatpush.bf16.msra.mxu1 %v2136_v39 }
 0x5ad   : > { %1595 = vmatpush.bf16.msrb.mxu0 %v2127_v59 }
 0x5af   : > { %1609 = vmatpush.bf16.msra.mxu1 %v2135_v11 }
 0x5b3   : > { %1610 = vmatpush.bf16.msra.mxu1 %v2134_v60 }
 0x5b7   : > { %1611 = vmatpush.bf16.msra.mxu1 %v2133_v63 }
 0x5bb   : > { %1612 = vmatpush.bf16.msra.mxu1 %v2132_v47 }
 0x611   : > { %v1290_v10 = vpop.xlane.xlu2 %1289 }
 0x612   : > { %v1293_v17 = vmul.f32 %v1290_v10, %v2923_v8 }
 0x614   : > { %v1295_v27 = vadd.f32 1e-05, %v1293_v17 }
 0x616   : > { %2358 = vrsqrt.f32 %v1295_v27  ;;  %vm1303_vm14 = vweird.f32 %v1295_v27 }
 0x619   : > { %v1292_v62 = vpop.xlane.xlu1 %1291 }
 0x61a   : > { %v1294_v29 = vmul.f32 %v1292_v62, %v2923_v8 }
 0x61c   : > { %v2359_v1 = vpop.eup %2358  ;;  %v1296_v32 = vadd.f32 1e-05, %v1294_v29 }
 0x61d   : > { %v1298_v33 = vmul.f32 %v2359_v1, %v1295_v27  ;;  %vm1304_vm13 = vweird.f32 %v2359_v1  ;;  %v1494_v27 = vperm.slane %v2362_v21, 5 }
 0x61e   : > { %2360 = vrsqrt.f32 %v1296_v32  ;;  %vm1305_vm15 = vmor %vm1303_vm14, %vm1304_vm13  ;;  %vm1313_vm1 = vweird.f32 %v1296_v32 }
 0x61f   : > { %v1299_v36 = vmul.f32 %v2359_v1, %v1298_v33 }
 0x621   : > { %v1300_v37 = vmul.f32 0.5, %v1299_v36 }
 0x623   : > { %v1301_v40 = vsub.f32 1.5, %v1300_v37 }
 0x624   : > { %v2361_v8 = vpop.eup %2360 }
 0x625   : > { %v1302_v41 = vmul.f32 %v2359_v1, %v1301_v40  ;;  %v1308_v42 = vmul.f32 %v2361_v8, %v1296_v32  ;;  %vm1314_vm0 = vweird.f32 %v2361_v8 }
 0x626   : > { %vm1315_vm2 = vmor %vm1313_vm1, %vm1314_vm0 }
 0x627   : > { %v1309_v43 = vmul.f32 %v2361_v8, %v1308_v42  ;;  %v1306_v44 = vsel %vm1305_vm15, %v2359_v1, %v1302_v41 }
 0x628   : > { %v1317_v48 = vmul.f32 %v1306_v44, %v3020_v28  ;;  %v2126_v28 = vld [vmem:[#allocation13 + $0x10] sm:$0xff] }
 0x629   : > { %v1310_v45 = vmul.f32 0.5, %v1309_v43  ;;  %1596 = vmatpush.bf16.msrb.mxu0 %v2126_v28 }
 0x62a   : > { %v1320_v53 = vmul.f32 %v1319_v49, %v1317_v48 }
 0x62b   : > { %v1311_v46 = vsub.f32 1.5, %v1310_v45 }
 0x62c   : > { %v1323_v56 = vadd.f32 %v1322_v54, %v1320_v53 }
 0x62d   : > { %v1312_v50 = vmul.f32 %v2361_v8, %v1311_v46  ;;  %1597 = vmatpush.bf16.msrb.mxu0 %v2125_v61 }
 0x62f   : > { %v1316_v51 = vsel %vm1315_vm2, %v2361_v8, %v1312_v50 }
 0x630   : > { %v1318_v52 = vmul.f32 %v1316_v51, %v3026_v31  ;;  %v2124_v31 = vld [vmem:[#allocation13] sm:$0xff] }
 0x631   : > { %1598 = vmatpush.bf16.msrb.mxu0 %v2124_v31 }
 0x632   : > { %v1321_v55 = vmul.f32 %v1319_v49, %v1318_v52 }
 0x634   : > { %v1324_v57 = vadd.f32 %v1322_v54, %v1321_v55 }
 0x636   : > { %v1325_v58 = vpack.c.bf16 %v1324_v57, %v1323_v56 }
 0x638   : > { %1436 = vmatmul.bf16.vlgmr.msrb.gmra.mxu2 %v1325_v58  ;;  %1450 = vmatmul.bf16.vlgmr.msra.gmra.mxu3 %v1325_v58 }
 0x6bb   : > { %v1437_v15 = vpop.f32.mrf.mxu2  ;;  %v1451_v3 = vpop.f32.mrf.mxu3 }
 0x6bc   : > { %v1438_v6 = vadd.f32 %v1437_v15, %v1344_v4  ;;  %v1452_v7 = vadd.f32 %v1451_v3, %v1345_v5 }
 0x6be   : > { %v1456_v14 = vmax.f32 %v1438_v6, 0.0  ;;  %v1457_v16 = vmax.f32 %v1452_v7, 0.0 }
 0x6c3   : > { %v1439_v9 = vpop.f32.mrf.mxu2  ;;  %v1453_v10 = vpop.f32.mrf.mxu3 }
 0x6c4   : > { %v1440_v12 = vadd.f32 %v1439_v9, %v1344_v4  ;;  %v1454_v13 = vadd.f32 %v1453_v10, %v1345_v5 }
 0x6c6   : > { %v1458_v17 = vmax.f32 %v1440_v12, 0.0  ;;  %v1459_v18 = vmax.f32 %v1454_v13, 0.0 }
 0x6c8   : > { %v1460_v19 = vpack.c.bf16 %v1458_v17, %v1456_v14  ;;  %v1461_v20 = vpack.c.bf16 %v1459_v18, %v1457_v16 }
 0x6ca   : > { %1599 = vmatmul.bf16.vlgmr.msrb.gmra.mxu0 %v1460_v19  ;;  %1613 = vmatmul.bf16.vlgmr.msra.gmra.mxu1 %v1461_v20 }
 0x747   : > { %v1600_v23 = vpop.f32.mrf.mxu0  ;;  %v1614_v24 = vpop.f32.mrf.mxu1 }
 0x748   : > { %v1601_v26 = vadd.f32 %v1600_v23, %v1494_v27 }
 0x74a   : > { %v1615_v62 = vadd.f32 %v1614_v24, %v1601_v26 }
 0x74c   : > { %v1619_v29 = vadd.f32 %v1615_v62, %v3011_v22 }
 0x74e   : > { %1621 = vst [vmem:[%s474_s11] sm:$0xff] %v1619_v29 }
 0x74f   : > { %v1602_v0 = vpop.f32.mrf.mxu0  ;;  %v1616_v1 = vpop.f32.mrf.mxu1 }
 0x750   : > { %v1603_v30 = vadd.f32 %v1602_v0, %v1494_v27 }
 0x752   : > { %v1617_v32 = vadd.f32 %v1616_v1, %v1603_v30 }
 0x754   : > { %v1620_v33 = vadd.f32 %v1617_v32, %v3015_v25 }
 0x756   : > { %1622 = vst [vmem:[%s474_s11 + $0x8] sm:$0xff] %v1620_v33 }
 0x757   : > { %2600 = shalt.err (!%p2597_p8)
}
 0x758   : > { %s2673_s28 = smov 128   ;;  %s2674_s19 = smov 8  }
 0x759   : > { %2169 = dma.vmem_to_hbm [thread:$0]  (%p2824_p0), %s1637_s24, 256, %s1639_s25, %s1624_s16, %s2673_s28, %s2673_s28, %s2674_s19  }
 0x75a PF: > { %s1653_s23 = sand.u32 1, %s2643_s30   ;;  %p3117_p10 = scmp.ge.s32.totalorder %s2655_s12, 2 }
 0x75b   : > { %s1654_s14 = scalar_lea.sflag [#allocation4], %s1653_s23 }
 0x75c   : > { %p2195_p11 = pnand %p3117_p10, %p2832_p6 }
 0x75e   : > { %p2196_p12 = pneg %p2195_p11 }
 0x760   : > { %2638 = dma.done.wait (%p2196_p12), %s1654_s14, 256  }
 0x761   : > { %2640 = vsyncadd (%p2196_p12), %s1654_s14, 4294967040  ;;  %s3118_s12 = sld [smem:[#allocation22_spill]]  ;;  %s3121_s30 = smov %s2647_s10 }
 0x762   : > { %s3119_s6 = sld [smem:[#allocation21_spill]] }
 0x763   : > { %s3120_s11 = sld [smem:[#allocation23_spill]] }
 0x767   : > { %p27_p2 = scmp.ge.s32.totalorder %s3118_s12, 4  }
 0x768   : > { %s3122_s10 = smov %s3119_s6 }
 0x769   :  { %29 = sbr.rel (!%p27_p2) target bundleno = 15 (0xf), region = 134 }
 0x76e   :  { %1660 = vsyncpa [#allocation3], 1 }
 0x76f   :  { %1662 = vsyncpa [#allocation3 + $0x1], 1 }
 0x770   :  { %1663 = vsyncpa [#allocation6], 1 }
 0x771   :  { %1665 = vsyncpa [#allocation6 + $0x1], 1 }
 0x772   :  { %1666 = vsyncpa [#allocation9], 1 }
 0x773   :  { %1667 = vsyncpa [#allocation12], 1 }
 0x774   :  { %1668 = vsyncpa [#allocation4], 1 }
 0x775   :  { %1670 = vsyncpa [#allocation4 + $0x1], 1 }

</bundles_post_ra>
